<compile_context>
chip_gen: v6e
topology: v6e:2x2x1
jax: 0.10.0
libtpu: 0.0.40
codegen_flags: <defaults>
</compile_context>

<pallas_src>
import math
import functools

import jax
import jax.numpy as jnp
from jax.experimental import pallas as pl
from jax.experimental.pallas import tpu as pltpu

NEG_INF = -1e9     # finite "masked" value (same softmax result for non-degenerate rows)
LN_EPS = 1e-5


# ----------------------------- in-kernel helpers ----------------------------- #

def _ln(x, g, b, eps=LN_EPS):
    """Row-wise LayerNorm over the last axis (f32)."""
    mu = jnp.mean(x, axis=-1, keepdims=True)
    var = jnp.mean(jnp.square(x - mu), axis=-1, keepdims=True)
    return (x - mu) * jax.lax.rsqrt(var + eps) * g + b


def _mm(a, w):
    """MXU matmul: activation cast to the (bf16) weight dtype, f32 accumulation."""
    return jnp.dot(a.astype(w.dtype), w, preferred_element_type=jnp.float32)


def _mha(q2d, k2d, v2d, mask, wo, bo, attn_scr, *, B, Lq, S, H, hd):
    """Multi-head attention with a single fused output projection.

    q2d: (B*Lq, E), k2d/v2d: (B*S, E) -- heads are contiguous hd-wide lane chunks.
    mask: (B, Lq, S) additive, shared across heads.  Each head writes its context into
    disjoint lanes of `attn_scr` (B*Lq, E); wo is then applied as ONE (B*Lq, E) @ (E, E)
    matmul instead of H accumulated (B*Lq, hd) @ (hd, E) matmuls.
    """
    scale = 1.0 / math.sqrt(hd)
    E = H * hd
    q = q2d.reshape(B, Lq, E).astype(jnp.bfloat16)
    k = k2d.reshape(B, S, E).astype(jnp.bfloat16)
    v = v2d.reshape(B, S, E).astype(jnp.bfloat16)
    for h in range(H):                              # static unroll, H is tiny
        sl = slice(h * hd, (h + 1) * hd)
        s = jnp.einsum("bqd,bkd->bqk", q[:, :, sl], k[:, :, sl],
                       preferred_element_type=jnp.float32) * scale + mask
        s = s - jnp.max(s, axis=-1, keepdims=True)
        p = jnp.exp(s)
        p = p * pl.reciprocal(jnp.sum(p, axis=-1, keepdims=True), approx=True)
        oh = jnp.einsum("bqk,bkd->bqd", p.astype(jnp.bfloat16), v[:, :, sl],
                        preferred_element_type=jnp.float32)
        attn_scr[:, sl] = oh.reshape(B * Lq, hd)    # disjoint lanes; "free" concat
    return _mm(attn_scr[...], wo) + bo


# ----------------------------- fused stack kernels ---------------------------- #

def _encoder_stack_kernel(x0_ref, mask_ref,
                          wqkv_ref, bqkv_ref, wo_ref,
                          w1_ref, b1_ref, w2_ref,
                          vec_ref, norm_ref,
                          mem_ref,
                          x_scr, attn_scr,
                          *, B, L, H, E):
    l = pl.program_id(0)
    hd = E // H

    @pl.when(l == 0)
    def _():
        x_scr[...] = x0_ref[...]          # load the embedded source once

    x = x_scr[...]                        # (B*L, E) activation carried across layers
    vecs = vec_ref[0]                     # (6, E): [bo, b2, ln1g, ln1b, ln2g, ln2b]
    bo, b2 = vecs[0:1], vecs[1:2]
    ln1g, ln1b, ln2g, ln2b = vecs[2:3], vecs[3:4], vecs[4:5], vecs[5:6]

    # --- self-attention: fused QKV matmul, per-head attention, single wo, residual + LN1 ---
    qkv = _mm(x, wqkv_ref[0]) + bqkv_ref[0]
    sa = _mha(qkv[:, :E], qkv[:, E:2 * E], qkv[:, 2 * E:], mask_ref[...],
              wo_ref[0], bo, attn_scr, B=B, Lq=L, S=L, H=H, hd=hd)
    x1 = _ln(x + sa, ln1g, ln1b)

    # --- FFN (intermediate stays in VMEM/vregs) + residual + LN2 ---
    hfeat = jnp.maximum(_mm(x1, w1_ref[0]) + b1_ref[0], 0.0)
    x2 = _ln(x1 + _mm(hfeat, w2_ref[0]) + b2, ln2g, ln2b)
    x_scr[...] = x2

    # --- final encoder LayerNorm fused into the last grid step ---
    @pl.when(l == pl.num_programs(0) - 1)
    def _():
        mem_ref[...] = _ln(x2, norm_ref[0:1], norm_ref[1:2])


def _decoder_stack_kernel(y0_ref, mem_ref, tgt_mask_ref, mem_mask_ref,
                          sa_wqkv_ref, sa_bqkv_ref, sa_wo_ref,
                          ca_wq_ref, ca_wkv_ref, ca_bkv_ref, ca_wo_ref,
                          w1_ref, b1_ref, w2_ref,
                          vec_ref, norm_ref, gen_w_ref, gen_b_ref,
                          logits_ref,
                          y_scr, attn_scr,
                          *, B, Lt, Ls, H, E):
    l = pl.program_id(0)
    hd = E // H

    @pl.when(l == 0)
    def _():
        y_scr[...] = y0_ref[...]

    y = y_scr[...]                        # (B*Lt, E)
    mem = mem_ref[...]                    # (B*Ls, E), encoder memory (resident input)
    vecs = vec_ref[0]                     # (10, E)
    sa_bo, ca_bq, ca_bo, b2 = vecs[0:1], vecs[1:2], vecs[2:3], vecs[3:4]
    ln1g, ln1b = vecs[4:5], vecs[5:6]
    ln2g, ln2b = vecs[6:7], vecs[7:8]
    ln3g, ln3b = vecs[8:9], vecs[9:10]

    # --- masked self-attention (fused QKV) + residual + LN1 ---
    qkv = _mm(y, sa_wqkv_ref[0]) + sa_bqkv_ref[0]
    sa = _mha(qkv[:, :E], qkv[:, E:2 * E], qkv[:, 2 * E:], tgt_mask_ref[...],
              sa_wo_ref[0], sa_bo, attn_scr, B=B, Lq=Lt, S=Lt, H=H, hd=hd)
    y1 = _ln(y + sa, ln1g, ln1b)

    # --- cross-attention (q from decoder, fused KV from memory) + residual + LN2 ---
    qx = _mm(y1, ca_wq_ref[0]) + ca_bq
    kv = _mm(mem, ca_wkv_ref[0]) + ca_bkv_ref[0]
    ca = _mha(qx, kv[:, :E], kv[:, E:], mem_mask_ref[...],
              ca_wo_ref[0], ca_bo, attn_scr, B=B, Lq=Lt, S=Ls, H=H, hd=hd)
    y2 = _ln(y1 + ca, ln2g, ln2b)

    # --- FFN + residual + LN3 ---
    hfeat = jnp.maximum(_mm(y2, w1_ref[0]) + b1_ref[0], 0.0)
    y3 = _ln(y2 + _mm(hfeat, w2_ref[0]) + b2, ln3g, ln3b)
    y_scr[...] = y3

    # --- final decoder LayerNorm + generator Linear fused into the last grid step.
    #     Vocab axis is zero-padded to a lane-dense multiple of 128 (unmasked stores);
    #     the host slices off the padding. ---
    @pl.when(l == pl.num_programs(0) - 1)
    def _():
        yn = _ln(y3, norm_ref[0:1], norm_ref[1:2])
        logits_ref[...] = _mm(yn, gen_w_ref[...]) + gen_b_ref[...]


# ----------------------------- pallas_call wrappers --------------------------- #

def _resident(shape):
    """Whole-array block, same block every grid step (fetched once, stays in VMEM)."""
    n = len(shape)
    return pl.BlockSpec(shape, lambda *_: (0,) * n)


def _per_layer(shape):
    """Per-layer block of a (n_layers, *shape) stacked array, indexed by the layer grid axis."""
    n = len(shape)
    return pl.BlockSpec((1,) + tuple(shape), lambda l: (l,) + (0,) * n)


_COMPILER_PARAMS = pltpu.CompilerParams(
    # single layer axis carries the activation -> "arbitrary"
    dimension_semantics=("arbitrary",),
    # tiny at these toy sizes; sweep upward per chip (v6e/v5e 128 MiB, v7x 64 MiB) at real sizes
    vmem_limit_bytes=32 * 1024 * 1024,
)


def encoder_stack(x2d, mask, enc, enc_norm, *, B, L, H, E):
    nL, _, FF = enc["w1"].shape
    M = B * L
    args = (x2d, mask, enc["wqkv"], enc["bqkv"], enc["wo"],
            enc["w1"], enc["b1"], enc["w2"], enc["vecs"], enc_norm)
    in_specs = [
        _resident((M, E)), _resident((B, L, L)),
        _per_layer((E, 3 * E)), _per_layer((1, 3 * E)), _per_layer((E, E)),
        _per_layer((E, FF)), _per_layer((1, FF)), _per_layer((FF, E)),
        _per_layer((6, E)), _resident((2, E)),
    ]
    return pl.pallas_call(
        functools.partial(_encoder_stack_kernel, B=B, L=L, H=H, E=E),
        grid_spec=pltpu.PrefetchScalarGridSpec(
            num_scalar_prefetch=0,
            grid=(nL,),
            in_specs=in_specs,
            out_specs=_resident((M, E)),
            scratch_shapes=[pltpu.VMEM((M, E), jnp.float32),    # activation carry
                            pltpu.VMEM((M, E), jnp.float32)],   # per-head context concat
        ),
        out_shape=jax.ShapeDtypeStruct((M, E), jnp.float32),
        compiler_params=_COMPILER_PARAMS,
    )(*args)


def decoder_stack(y2d, mem2d, tgt_mask, mem_mask, dec, dec_norm, gen_w, gen_b,
                  *, B, Lt, Ls, H, E):
    nL, _, FF = dec["w1"].shape
    Mt, Ms = B * Lt, B * Ls
    Vp = gen_w.shape[1]
    args = (y2d, mem2d, tgt_mask, mem_mask,
            dec["sa_wqkv"], dec["sa_bqkv"], dec["sa_wo"],
            dec["ca_wq"], dec["ca_wkv"], dec["ca_bkv"], dec["ca_wo"],
            dec["w1"], dec["b1"], dec["w2"],
            dec["vecs"], dec_norm, gen_w, gen_b)
    in_specs = [
        _resident((Mt, E)), _resident((Ms, E)),
        _resident((B, Lt, Lt)), _resident((B, Lt, Ls)),
        _per_layer((E, 3 * E)), _per_layer((1, 3 * E)), _per_layer((E, E)),
        _per_layer((E, E)), _per_layer((E, 2 * E)), _per_layer((1, 2 * E)), _per_layer((E, E)),
        _per_layer((E, FF)), _per_layer((1, FF)), _per_layer((FF, E)),
        _per_layer((10, E)), _resident((2, E)), _resident((E, Vp)), _resident((1, Vp)),
    ]
    return pl.pallas_call(
        functools.partial(_decoder_stack_kernel, B=B, Lt=Lt, Ls=Ls, H=H, E=E),
        grid_spec=pltpu.PrefetchScalarGridSpec(
            num_scalar_prefetch=0,
            grid=(nL,),
            in_specs=in_specs,
            out_specs=_resident((Mt, Vp)),
            scratch_shapes=[pltpu.VMEM((Mt, E), jnp.float32),   # activation carry
                            pltpu.VMEM((Mt, E), jnp.float32)],  # per-head context concat
        ),
        out_shape=jax.ShapeDtypeStruct((Mt, Vp), jnp.float32),
        compiler_params=_COMPILER_PARAMS,
    )(*args)


# ----------------------------- transformer glue ------------------------------ #

def combine_masks(attn_mask, key_padding_mask, B, Lq, S):
    """Merge additive attn_mask (Lq,S) with boolean key_padding_mask (B,S) -> (B, Lq, S)."""
    m = jnp.zeros((B, Lq, S), jnp.float32)
    if attn_mask is not None:
        m = m + attn_mask[None, :, :].astype(jnp.float32)
    if key_padding_mask is not None:
        m = m + jnp.where(key_padding_mask, NEG_INF, 0.0)[:, None, :]
    return m


def make_pos_embedding(maxlen, emb_size):
    den = jnp.exp(-jnp.arange(0, emb_size, 2, dtype=jnp.float32) * math.log(10000.0) / emb_size)
    pos = jnp.arange(0, maxlen, dtype=jnp.float32)[:, None]
    pe = jnp.zeros((maxlen, emb_size), jnp.float32)
    pe = pe.at[:, 0::2].set(jnp.sin(pos * den))
    pe = pe.at[:, 1::2].set(jnp.cos(pos * den))
    return pe  # (maxlen, emb_size)


def init_params(key, cfg):
    E, FF = cfg["emb_size"], cfg["dim_feedforward"]
    nE, nD = cfg["num_encoder_layers"], cfg["num_decoder_layers"]
    Vs, Vt = cfg["src_vocab_size"], cfg["tgt_vocab_size"]
    Vp = ((Vt + 127) // 128) * 128           # lane-dense generator output, sliced on host

    keys = iter(jax.random.split(key, 64))

    def dense(shape):                        # matmul weights -> bf16 (f32 MXU accumulation)
        return (0.02 * jax.random.normal(next(keys), shape, jnp.float32)).astype(jnp.bfloat16)

    def vec(shape):                          # biases / embeddings -> f32
        return 0.02 * jax.random.normal(next(keys), shape, jnp.float32)

    def ln_rows(n_layers, n_ln):             # [g, b] per LayerNorm, each (n_layers, E)
        rows = []
        for _ in range(n_ln):
            rows += [jnp.ones((n_layers, E), jnp.float32), jnp.zeros((n_layers, E), jnp.float32)]
        return rows

    # packed small-vector slabs: one DMA per layer instead of 6-10
    enc_vecs = jnp.stack([vec((nE, E)), vec((nE, E))] + ln_rows(nE, 2), axis=1)         # (nE,6,E)
    dec_vecs = jnp.stack([vec((nD, E)), vec((nD, E)), vec((nD, E)), vec((nD, E))]
                         + ln_rows(nD, 3), axis=1)                                       # (nD,10,E)

    gen_w = jnp.zeros((E, Vp), jnp.bfloat16).at[:, :Vt].set(dense((E, Vt)))
    gen_b = jnp.zeros((1, Vp), jnp.float32).at[:, :Vt].set(vec((1, Vt)))

    return dict(
        src_emb=vec((Vs, E)), tgt_emb=vec((Vt, E)),
        pos_embedding=make_pos_embedding(cfg["maxlen"], E),
        enc=dict(wqkv=dense((nE, E, 3 * E)), bqkv=vec((nE, 1, 3 * E)),
                 wo=dense((nE, E, E)),
                 w1=dense((nE, E, FF)), b1=vec((nE, 1, FF)),
                 w2=dense((nE, FF, E)),
                 vecs=enc_vecs),
        dec=dict(sa_wqkv=dense((nD, E, 3 * E)), sa_bqkv=vec((nD, 1, 3 * E)),
                 sa_wo=dense((nD, E, E)),
                 ca_wq=dense((nD, E, E)), ca_wkv=dense((nD, E, 2 * E)),
                 ca_bkv=vec((nD, 1, 2 * E)), ca_wo=dense((nD, E, E)),
                 w1=dense((nD, E, FF)), b1=vec((nD, 1, FF)),
                 w2=dense((nD, FF, E)),
                 vecs=dec_vecs),
        enc_norm=jnp.stack([jnp.ones(E, jnp.float32), jnp.zeros(E, jnp.float32)]),
        dec_norm=jnp.stack([jnp.ones(E, jnp.float32), jnp.zeros(E, jnp.float32)]),
        gen_w=gen_w, gen_b=gen_b,
    )


def seq2seq_forward(params, cfg, src, trg, src_mask, tgt_mask,
                    src_padding_mask, tgt_padding_mask, memory_key_padding_mask):
    E, H = cfg["emb_size"], cfg["nhead"]
    B, Ls = src.shape
    Lt = trg.shape[1]
    V = cfg["tgt_vocab_size"]

    # Token embedding * sqrt(E) + sinusoidal positional encoding (dropout = identity).
    # TODO(synk): the token-embedding gather stays in plain JAX (a per-token DMA-gather kernel
    #             would reintroduce launch overhead at these sizes).
    pe = params["pos_embedding"]
    src_x = jnp.take(params["src_emb"], src, axis=0) * math.sqrt(E) + pe[:Ls][None]
    tgt_x = jnp.take(params["tgt_emb"], trg, axis=0) * math.sqrt(E) + pe[:Lt][None]

    # Masks are kept un-broadcast over heads: (B, Lq, S); heads share them inside the kernels.
    src_attn = combine_masks(src_mask, src_padding_mask, B, Ls, Ls)
    tgt_attn = combine_masks(tgt_mask, tgt_padding_mask, B, Lt, Lt)
    mem_attn = combine_masks(None, memory_key_padding_mask, B, Lt, Ls)

    # Encoder stack: ONE pallas_call (grid over layers, final LayerNorm fused into last step).
    memory = encoder_stack(src_x.reshape(B * Ls, E), src_attn,
                           params["enc"], params["enc_norm"], B=B, L=Ls, H=H, E=E)

    # Decoder stack: ONE pallas_call (grid over layers, final LayerNorm + generator fused).
    logits_p = decoder_stack(tgt_x.reshape(B * Lt, E), memory, tgt_attn, mem_attn,
                             params["dec"], params["dec_norm"],
                             params["gen_w"], params["gen_b"],
                             B=B, Lt=Lt, Ls=Ls, H=H, E=E)
    return logits_p[:, :V].reshape(B, Lt, V)


# ----------------------------------- main ------------------------------------ #

if __name__ == "__main__":
    cfg = dict(
        num_encoder_layers=2,
        num_decoder_layers=2,
        emb_size=32,
        nhead=4,
        src_vocab_size=48,
        tgt_vocab_size=40,
        dim_feedforward=64,
        maxlen=64,
    )

    key = jax.random.PRNGKey(0)
    k_params, k_src, k_trg = jax.random.split(key, 3)
    params = init_params(k_params, cfg)

    B, Ls, Lt = 2, 8, 8
    src = jax.random.randint(k_src, (B, Ls), 0, cfg["src_vocab_size"], dtype=jnp.int32)
    trg = jax.random.randint(k_trg, (B, Lt), 0, cfg["tgt_vocab_size"], dtype=jnp.int32)

    # src_mask: no masking; tgt_mask: causal (additive); padding masks: last token of batch 1 padded.
    src_mask = jnp.zeros((Ls, Ls), jnp.float32)
    tgt_mask = jnp.where(jnp.triu(jnp.ones((Lt, Lt), jnp.bool_), k=1), NEG_INF, 0.0)
    src_padding_mask = jnp.zeros((B, Ls), jnp.bool_).at[1, Ls - 1].set(True)
    tgt_padding_mask = jnp.zeros((B, Lt), jnp.bool_).at[1, Lt - 1].set(True)
    memory_key_padding_mask = src_padding_mask

    fwd = jax.jit(lambda p, *a: seq2seq_forward(p, cfg, *a))
    logits = fwd(params, src, trg, src_mask, tgt_mask,
                 src_padding_mask, tgt_padding_mask, memory_key_padding_mask)
    logits = jax.block_until_ready(logits)

    assert logits.shape == (B, Lt, cfg["tgt_vocab_size"])
    assert bool(jnp.all(jnp.isfinite(logits)))
    print("KERNEL_OK")
</pallas_src>

<mosaic_0001>
module attributes {stable_mosaic.version = 11 : i64} {
  func.func @_encoder_stack_kernel(%arg0: i32, %arg1: memref<16x32xf32, #tpu.memory_space<vmem>>, %arg2: memref<2x8x8xf32, #tpu.memory_space<vmem>>, %arg3: memref<1x32x96xbf16, #tpu.memory_space<vmem>>, %arg4: memref<1x1x96xf32, #tpu.memory_space<vmem>>, %arg5: memref<1x32x32xbf16, #tpu.memory_space<vmem>>, %arg6: memref<1x32x64xbf16, #tpu.memory_space<vmem>>, %arg7: memref<1x1x64xf32, #tpu.memory_space<vmem>>, %arg8: memref<1x64x32xbf16, #tpu.memory_space<vmem>>, %arg9: memref<1x6x32xf32, #tpu.memory_space<vmem>>, %arg10: memref<2x32xf32, #tpu.memory_space<vmem>>, %arg11: memref<16x32xf32, #tpu.memory_space<vmem>>, %arg12: memref<16x32xf32, #tpu.memory_space<vmem>>, %arg13: memref<16x32xf32, #tpu.memory_space<vmem>>) attributes {dimension_semantics = [#tpu.dimension_semantics<arbitrary>], iteration_bounds = array<i64: 2>, scalar_prefetch = 0 : i64, scratch_operands = 2 : i64, tpu.core_type = #tpu.core_type<tc>, window_params = [{pipeline_mode = #tpu.pipeline_mode<synchronous>, transform_indices = @transform_0, window_bounds = array<i64: 16, 32>}, {pipeline_mode = #tpu.pipeline_mode<synchronous>, transform_indices = @transform_1, window_bounds = array<i64: 2, 8, 8>}, {transform_indices = @transform_2, window_bounds = array<i64: 1, 32, 96>}, {transform_indices = @transform_3, window_bounds = array<i64: 1, 1, 96>}, {transform_indices = @transform_4, window_bounds = array<i64: 1, 32, 32>}, {transform_indices = @transform_5, window_bounds = array<i64: 1, 32, 64>}, {transform_indices = @transform_6, window_bounds = array<i64: 1, 1, 64>}, {transform_indices = @transform_7, window_bounds = array<i64: 1, 64, 32>}, {transform_indices = @transform_8, window_bounds = array<i64: 1, 6, 32>}, {pipeline_mode = #tpu.pipeline_mode<synchronous>, transform_indices = @transform_9, window_bounds = array<i64: 2, 32>}, {pipeline_mode = #tpu.pipeline_mode<synchronous>, transform_indices = @transform_10, window_bounds = array<i64: 16, 32>}]} {
    %c0_i32 = arith.constant 0 : i32
    %0 = arith.cmpi eq, %arg0, %c0_i32 : i32
    %1 = arith.extui %0 : i1 to i32
    %c0_i32_0 = arith.constant 0 : i32
    %2 = arith.cmpi ne, %1, %c0_i32_0 : i32
    scf.if %2 {
      %c0_70 = arith.constant 0 : index
      %c0_71 = arith.constant 0 : index
      %187 = vector.load %arg1[%c0_70, %c0_71] : memref<16x32xf32, #tpu.memory_space<vmem>>, vector<16x32xf32>
      %c0_72 = arith.constant 0 : index
      %c0_73 = arith.constant 0 : index
      %188 = vector.load %arg12[%c0_72, %c0_73] : memref<16x32xf32, #tpu.memory_space<vmem>>, vector<16x32xf32>
      tpu.vector_store %arg12[%c0_72, %c0_73], %187 {strides = array<i32>} : memref<16x32xf32, #tpu.memory_space<vmem>>, vector<16x32xf32>,
    } else {
    }
    %c0 = arith.constant 0 : index
    %c0_1 = arith.constant 0 : index
    %3 = vector.load %arg12[%c0, %c0_1] : memref<16x32xf32, #tpu.memory_space<vmem>>, vector<16x32xf32>
    %c0_2 = arith.constant 0 : index
    %c0_3 = arith.constant 0 : index
    %c0_4 = arith.constant 0 : index
    %4 = vector.load %arg9[%c0_2, %c0_3, %c0_4] : memref<1x6x32xf32, #tpu.memory_space<vmem>>, vector<1x6x32xf32>
    %5 = vector.shape_cast %4 : vector<1x6x32xf32> to vector<6x32xf32>
    %6 = vector.extract_strided_slice %5 {offsets = [0, 0], sizes = [1, 32], strides = [1, 1]} : vector<6x32xf32> to vector<1x32xf32>
    %7 = vector.extract_strided_slice %5 {offsets = [1, 0], sizes = [1, 32], strides = [1, 1]} : vector<6x32xf32> to vector<1x32xf32>
    %8 = vector.extract_strided_slice %5 {offsets = [2, 0], sizes = [1, 32], strides = [1, 1]} : vector<6x32xf32> to vector<1x32xf32>
    %9 = vector.extract_strided_slice %5 {offsets = [3, 0], sizes = [1, 32], strides = [1, 1]} : vector<6x32xf32> to vector<1x32xf32>
    %10 = vector.extract_strided_slice %5 {offsets = [4, 0], sizes = [1, 32], strides = [1, 1]} : vector<6x32xf32> to vector<1x32xf32>
    %11 = vector.extract_strided_slice %5 {offsets = [5, 0], sizes = [1, 32], strides = [1, 1]} : vector<6x32xf32> to vector<1x32xf32>
    %c0_5 = arith.constant 0 : index
    %c0_6 = arith.constant 0 : index
    %c0_7 = arith.constant 0 : index
    %12 = vector.load %arg3[%c0_5, %c0_6, %c0_7] : memref<1x32x96xbf16, #tpu.memory_space<vmem>>, vector<1x32x96xbf16>
    %13 = vector.shape_cast %12 : vector<1x32x96xbf16> to vector<32x96xbf16>
    %14 = arith.truncf %3 : vector<16x32xf32> to vector<16x32xbf16>
    %cst = arith.constant dense<0.000000e+00> : vector<16x96xf32>
    %15 = tpu.matmul %14, %13, %cst {dimension_numbers = #tpu.dot_dimension_numbers<[1], [0], [0], [1], [0, 0, 1, 1], [], []>} : vector<16x32xbf16>, vector<32x96xbf16>, vector<16x96xf32> -> vector<16x96xf32>
    %c0_8 = arith.constant 0 : index
    %c0_9 = arith.constant 0 : index
    %c0_10 = arith.constant 0 : index
    %16 = vector.load %arg4[%c0_8, %c0_9, %c0_10] : memref<1x1x96xf32, #tpu.memory_space<vmem>>, vector<1x1x96xf32>
    %17 = vector.shape_cast %16 : vector<1x1x96xf32> to vector<1x96xf32>
    %18 = vector.broadcast %17 : vector<1x96xf32> to vector<16x96xf32>
    %19 = arith.addf %15, %18 : vector<16x96xf32>
    %20 = vector.extract_strided_slice %19 {offsets = [0, 0], sizes = [16, 32], strides = [1, 1]} : vector<16x96xf32> to vector<16x32xf32>
    %21 = vector.extract_strided_slice %19 {offsets = [0, 32], sizes = [16, 32], strides = [1, 1]} : vector<16x96xf32> to vector<16x32xf32>
    %22 = vector.extract_strided_slice %19 {offsets = [0, 64], sizes = [16, 32], strides = [1, 1]} : vector<16x96xf32> to vector<16x32xf32>
    %c0_11 = arith.constant 0 : index
    %c0_12 = arith.constant 0 : index
    %c0_13 = arith.constant 0 : index
    %23 = vector.load %arg2[%c0_11, %c0_12, %c0_13] : memref<2x8x8xf32, #tpu.memory_space<vmem>>, vector<2x8x8xf32>
    %c0_14 = arith.constant 0 : index
    %c0_15 = arith.constant 0 : index
    %c0_16 = arith.constant 0 : index
    %24 = vector.load %arg5[%c0_14, %c0_15, %c0_16] : memref<1x32x32xbf16, #tpu.memory_space<vmem>>, vector<1x32x32xbf16>
    %25 = vector.shape_cast %24 : vector<1x32x32xbf16> to vector<32x32xbf16>
    %26 = vector.shape_cast %20 : vector<16x32xf32> to vector<2x8x32xf32>
    %27 = arith.truncf %26 : vector<2x8x32xf32> to vector<2x8x32xbf16>
    %28 = vector.shape_cast %21 : vector<16x32xf32> to vector<2x8x32xf32>
    %29 = arith.truncf %28 : vector<2x8x32xf32> to vector<2x8x32xbf16>
    %30 = vector.shape_cast %22 : vector<16x32xf32> to vector<2x8x32xf32>
    %31 = arith.truncf %30 : vector<2x8x32xf32> to vector<2x8x32xbf16>
    %32 = vector.extract_strided_slice %27 {offsets = [0, 0, 0], sizes = [2, 8, 8], strides = [1, 1, 1]} : vector<2x8x32xbf16> to vector<2x8x8xbf16>
    %33 = vector.extract_strided_slice %29 {offsets = [0, 0, 0], sizes = [2, 8, 8], strides = [1, 1, 1]} : vector<2x8x32xbf16> to vector<2x8x8xbf16>
    "tpu.trace_start"() <{level = 10 : i32, message = "bqd,bkd->bqk"}> : () -> ()
    %cst_17 = arith.constant dense<0.000000e+00> : vector<2x8x8xf32>
    %34 = tpu.matmul %32, %33, %cst_17 {dimension_numbers = #tpu.dot_dimension_numbers<[2], [2], [1], [1], [0, 0, 0, 1, 1, 1], [0], [0]>} : vector<2x8x8xbf16>, vector<2x8x8xbf16>, vector<2x8x8xf32> -> vector<2x8x8xf32>
    "tpu.trace_stop"() : () -> ()
    %cst_18 = arith.constant 0.353553385 : f32
    %35 = vector.broadcast %cst_18 : f32 to vector<2x8x8xf32>
    %36 = arith.mulf %34, %35 : vector<2x8x8xf32>
    %37 = arith.addf %36, %23 : vector<2x8x8xf32>
    %cst_19 = arith.constant dense<0xFF800000> : vector<2x8xf32>
    %38 = vector.multi_reduction <maximumf>, %37, %cst_19 [2] : vector<2x8x8xf32> to vector<2x8xf32>
    %39 = vector.shape_cast %38 : vector<2x8xf32> to vector<2x8x1xf32>
    %40 = vector.broadcast %39 : vector<2x8x1xf32> to vector<2x8x8xf32>
    %41 = arith.subf %37, %40 : vector<2x8x8xf32>
    %42 = math.exp %41 : vector<2x8x8xf32>
    %cst_20 = arith.constant dense<0.000000e+00> : vector<2x8xf32>
    %43 = vector.multi_reduction <add>, %42, %cst_20 [2] : vector<2x8x8xf32> to vector<2x8xf32>
    %44 = vector.shape_cast %43 : vector<2x8xf32> to vector<2x8x1xf32>
    %45 = tpu.reciprocal %44 {approx = true} : vector<2x8x1xf32> -> vector<2x8x1xf32>
    %46 = vector.broadcast %45 : vector<2x8x1xf32> to vector<2x8x8xf32>
    %47 = arith.mulf %42, %46 : vector<2x8x8xf32>
    %48 = arith.truncf %47 : vector<2x8x8xf32> to vector<2x8x8xbf16>
    %49 = vector.extract_strided_slice %31 {offsets = [0, 0, 0], sizes = [2, 8, 8], strides = [1, 1, 1]} : vector<2x8x32xbf16> to vector<2x8x8xbf16>
    "tpu.trace_start"() <{level = 10 : i32, message = "bqk,bkd->bqd"}> : () -> ()
    %cst_21 = arith.constant dense<0.000000e+00> : vector<2x8x8xf32>
    %50 = tpu.matmul %48, %49, %cst_21 {dimension_numbers = #tpu.dot_dimension_numbers<[2], [1], [1], [2], [0, 0, 0, 1, 1, 2], [0], [0]>} : vector<2x8x8xbf16>, vector<2x8x8xbf16>, vector<2x8x8xf32> -> vector<2x8x8xf32>
    "tpu.trace_stop"() : () -> ()
    %51 = vector.shape_cast %50 : vector<2x8x8xf32> to vector<16x8xf32>
    %c0_22 = arith.constant 0 : index
    %c0_23 = arith.constant 0 : index
    %52 = vector.load %arg13[%c0_22, %c0_23] : memref<16x32xf32, #tpu.memory_space<vmem>>, vector<16x8xf32>
    tpu.vector_store %arg13[%c0_22, %c0_23], %51 {strides = array<i32>} : memref<16x32xf32, #tpu.memory_space<vmem>>, vector<16x8xf32>,
    %53 = vector.extract_strided_slice %27 {offsets = [0, 0, 8], sizes = [2, 8, 8], strides = [1, 1, 1]} : vector<2x8x32xbf16> to vector<2x8x8xbf16>
    %54 = vector.extract_strided_slice %29 {offsets = [0, 0, 8], sizes = [2, 8, 8], strides = [1, 1, 1]} : vector<2x8x32xbf16> to vector<2x8x8xbf16>
    "tpu.trace_start"() <{level = 10 : i32, message = "bqd,bkd->bqk"}> : () -> ()
    %cst_24 = arith.constant dense<0.000000e+00> : vector<2x8x8xf32>
    %55 = tpu.matmul %53, %54, %cst_24 {dimension_numbers = #tpu.dot_dimension_numbers<[2], [2], [1], [1], [0, 0, 0, 1, 1, 1], [0], [0]>} : vector<2x8x8xbf16>, vector<2x8x8xbf16>, vector<2x8x8xf32> -> vector<2x8x8xf32>
    "tpu.trace_stop"() : () -> ()
    %cst_25 = arith.constant 0.353553385 : f32
    %56 = vector.broadcast %cst_25 : f32 to vector<2x8x8xf32>
    %57 = arith.mulf %55, %56 : vector<2x8x8xf32>
    %58 = arith.addf %57, %23 : vector<2x8x8xf32>
    %cst_26 = arith.constant dense<0xFF800000> : vector<2x8xf32>
    %59 = vector.multi_reduction <maximumf>, %58, %cst_26 [2] : vector<2x8x8xf32> to vector<2x8xf32>
    %60 = vector.shape_cast %59 : vector<2x8xf32> to vector<2x8x1xf32>
    %61 = vector.broadcast %60 : vector<2x8x1xf32> to vector<2x8x8xf32>
    %62 = arith.subf %58, %61 : vector<2x8x8xf32>
    %63 = math.exp %62 : vector<2x8x8xf32>
    %cst_27 = arith.constant dense<0.000000e+00> : vector<2x8xf32>
    %64 = vector.multi_reduction <add>, %63, %cst_27 [2] : vector<2x8x8xf32> to vector<2x8xf32>
    %65 = vector.shape_cast %64 : vector<2x8xf32> to vector<2x8x1xf32>
    %66 = tpu.reciprocal %65 {approx = true} : vector<2x8x1xf32> -> vector<2x8x1xf32>
    %67 = vector.broadcast %66 : vector<2x8x1xf32> to vector<2x8x8xf32>
    %68 = arith.mulf %63, %67 : vector<2x8x8xf32>
    %69 = arith.truncf %68 : vector<2x8x8xf32> to vector<2x8x8xbf16>
    %70 = vector.extract_strided_slice %31 {offsets = [0, 0, 8], sizes = [2, 8, 8], strides = [1, 1, 1]} : vector<2x8x32xbf16> to vector<2x8x8xbf16>
    "tpu.trace_start"() <{level = 10 : i32, message = "bqk,bkd->bqd"}> : () -> ()
    %cst_28 = arith.constant dense<0.000000e+00> : vector<2x8x8xf32>
    %71 = tpu.matmul %69, %70, %cst_28 {dimension_numbers = #tpu.dot_dimension_numbers<[2], [1], [1], [2], [0, 0, 0, 1, 1, 2], [0], [0]>} : vector<2x8x8xbf16>, vector<2x8x8xbf16>, vector<2x8x8xf32> -> vector<2x8x8xf32>
    "tpu.trace_stop"() : () -> ()
    %72 = vector.shape_cast %71 : vector<2x8x8xf32> to vector<16x8xf32>
    %c0_29 = arith.constant 0 : index
    %c8 = arith.constant 8 : index
    %73 = vector.load %arg13[%c0_29, %c8] : memref<16x32xf32, #tpu.memory_space<vmem>>, vector<16x8xf32>
    tpu.vector_store %arg13[%c0_29, %c8], %72 {strides = array<i32>} : memref<16x32xf32, #tpu.memory_space<vmem>>, vector<16x8xf32>,
    %74 = vector.extract_strided_slice %27 {offsets = [0, 0, 16], sizes = [2, 8, 8], strides = [1, 1, 1]} : vector<2x8x32xbf16> to vector<2x8x8xbf16>
    %75 = vector.extract_strided_slice %29 {offsets = [0, 0, 16], sizes = [2, 8, 8], strides = [1, 1, 1]} : vector<2x8x32xbf16> to vector<2x8x8xbf16>
    "tpu.trace_start"() <{level = 10 : i32, message = "bqd,bkd->bqk"}> : () -> ()
    %cst_30 = arith.constant dense<0.000000e+00> : vector<2x8x8xf32>
    %76 = tpu.matmul %74, %75, %cst_30 {dimension_numbers = #tpu.dot_dimension_numbers<[2], [2], [1], [1], [0, 0, 0, 1, 1, 1], [0], [0]>} : vector<2x8x8xbf16>, vector<2x8x8xbf16>, vector<2x8x8xf32> -> vector<2x8x8xf32>
    "tpu.trace_stop"() : () -> ()
    %cst_31 = arith.constant 0.353553385 : f32
    %77 = vector.broadcast %cst_31 : f32 to vector<2x8x8xf32>
    %78 = arith.mulf %76, %77 : vector<2x8x8xf32>
    %79 = arith.addf %78, %23 : vector<2x8x8xf32>
    %cst_32 = arith.constant dense<0xFF800000> : vector<2x8xf32>
    %80 = vector.multi_reduction <maximumf>, %79, %cst_32 [2] : vector<2x8x8xf32> to vector<2x8xf32>
    %81 = vector.shape_cast %80 : vector<2x8xf32> to vector<2x8x1xf32>
    %82 = vector.broadcast %81 : vector<2x8x1xf32> to vector<2x8x8xf32>
    %83 = arith.subf %79, %82 : vector<2x8x8xf32>
    %84 = math.exp %83 : vector<2x8x8xf32>
    %cst_33 = arith.constant dense<0.000000e+00> : vector<2x8xf32>
    %85 = vector.multi_reduction <add>, %84, %cst_33 [2] : vector<2x8x8xf32> to vector<2x8xf32>
    %86 = vector.shape_cast %85 : vector<2x8xf32> to vector<2x8x1xf32>
    %87 = tpu.reciprocal %86 {approx = true} : vector<2x8x1xf32> -> vector<2x8x1xf32>
    %88 = vector.broadcast %87 : vector<2x8x1xf32> to vector<2x8x8xf32>
    %89 = arith.mulf %84, %88 : vector<2x8x8xf32>
    %90 = arith.truncf %89 : vector<2x8x8xf32> to vector<2x8x8xbf16>
    %91 = vector.extract_strided_slice %31 {offsets = [0, 0, 16], sizes = [2, 8, 8], strides = [1, 1, 1]} : vector<2x8x32xbf16> to vector<2x8x8xbf16>
    "tpu.trace_start"() <{level = 10 : i32, message = "bqk,bkd->bqd"}> : () -> ()
    %cst_34 = arith.constant dense<0.000000e+00> : vector<2x8x8xf32>
    %92 = tpu.matmul %90, %91, %cst_34 {dimension_numbers = #tpu.dot_dimension_numbers<[2], [1], [1], [2], [0, 0, 0, 1, 1, 2], [0], [0]>} : vector<2x8x8xbf16>, vector<2x8x8xbf16>, vector<2x8x8xf32> -> vector<2x8x8xf32>
    "tpu.trace_stop"() : () -> ()
    %93 = vector.shape_cast %92 : vector<2x8x8xf32> to vector<16x8xf32>
    %c0_35 = arith.constant 0 : index
    %c16 = arith.constant 16 : index
    %94 = vector.load %arg13[%c0_35, %c16] : memref<16x32xf32, #tpu.memory_space<vmem>>, vector<16x8xf32>
    tpu.vector_store %arg13[%c0_35, %c16], %93 {strides = array<i32>} : memref<16x32xf32, #tpu.memory_space<vmem>>, vector<16x8xf32>,
    %95 = vector.extract_strided_slice %27 {offsets = [0, 0, 24], sizes = [2, 8, 8], strides = [1, 1, 1]} : vector<2x8x32xbf16> to vector<2x8x8xbf16>
    %96 = vector.extract_strided_slice %29 {offsets = [0, 0, 24], sizes = [2, 8, 8], strides = [1, 1, 1]} : vector<2x8x32xbf16> to vector<2x8x8xbf16>
    "tpu.trace_start"() <{level = 10 : i32, message = "bqd,bkd->bqk"}> : () -> ()
    %cst_36 = arith.constant dense<0.000000e+00> : vector<2x8x8xf32>
    %97 = tpu.matmul %95, %96, %cst_36 {dimension_numbers = #tpu.dot_dimension_numbers<[2], [2], [1], [1], [0, 0, 0, 1, 1, 1], [0], [0]>} : vector<2x8x8xbf16>, vector<2x8x8xbf16>, vector<2x8x8xf32> -> vector<2x8x8xf32>
    "tpu.trace_stop"() : () -> ()
    %cst_37 = arith.constant 0.353553385 : f32
    %98 = vector.broadcast %cst_37 : f32 to vector<2x8x8xf32>
    %99 = arith.mulf %97, %98 : vector<2x8x8xf32>
    %100 = arith.addf %99, %23 : vector<2x8x8xf32>
    %cst_38 = arith.constant dense<0xFF800000> : vector<2x8xf32>
    %101 = vector.multi_reduction <maximumf>, %100, %cst_38 [2] : vector<2x8x8xf32> to vector<2x8xf32>
    %102 = vector.shape_cast %101 : vector<2x8xf32> to vector<2x8x1xf32>
    %103 = vector.broadcast %102 : vector<2x8x1xf32> to vector<2x8x8xf32>
    %104 = arith.subf %100, %103 : vector<2x8x8xf32>
    %105 = math.exp %104 : vector<2x8x8xf32>
    %cst_39 = arith.constant dense<0.000000e+00> : vector<2x8xf32>
    %106 = vector.multi_reduction <add>, %105, %cst_39 [2] : vector<2x8x8xf32> to vector<2x8xf32>
    %107 = vector.shape_cast %106 : vector<2x8xf32> to vector<2x8x1xf32>
    %108 = tpu.reciprocal %107 {approx = true} : vector<2x8x1xf32> -> vector<2x8x1xf32>
    %109 = vector.broadcast %108 : vector<2x8x1xf32> to vector<2x8x8xf32>
    %110 = arith.mulf %105, %109 : vector<2x8x8xf32>
    %111 = arith.truncf %110 : vector<2x8x8xf32> to vector<2x8x8xbf16>
    %112 = vector.extract_strided_slice %31 {offsets = [0, 0, 24], sizes = [2, 8, 8], strides = [1, 1, 1]} : vector<2x8x32xbf16> to vector<2x8x8xbf16>
    "tpu.trace_start"() <{level = 10 : i32, message = "bqk,bkd->bqd"}> : () -> ()
    %cst_40 = arith.constant dense<0.000000e+00> : vector<2x8x8xf32>
    %113 = tpu.matmul %111, %112, %cst_40 {dimension_numbers = #tpu.dot_dimension_numbers<[2], [1], [1], [2], [0, 0, 0, 1, 1, 2], [0], [0]>} : vector<2x8x8xbf16>, vector<2x8x8xbf16>, vector<2x8x8xf32> -> vector<2x8x8xf32>
    "tpu.trace_stop"() : () -> ()
    %114 = vector.shape_cast %113 : vector<2x8x8xf32> to vector<16x8xf32>
    %c0_41 = arith.constant 0 : index
    %c24 = arith.constant 24 : index
    %115 = vector.load %arg13[%c0_41, %c24] : memref<16x32xf32, #tpu.memory_space<vmem>>, vector<16x8xf32>
    tpu.vector_store %arg13[%c0_41, %c24], %114 {strides = array<i32>} : memref<16x32xf32, #tpu.memory_space<vmem>>, vector<16x8xf32>,
    %c0_42 = arith.constant 0 : index
    %c0_43 = arith.constant 0 : index
    %116 = vector.load %arg13[%c0_42, %c0_43] : memref<16x32xf32, #tpu.memory_space<vmem>>, vector<16x32xf32>
    %117 = arith.truncf %116 : vector<16x32xf32> to vector<16x32xbf16>
    %cst_44 = arith.constant dense<0.000000e+00> : vector<16x32xf32>
    %118 = tpu.matmul %117, %25, %cst_44 {dimension_numbers = #tpu.dot_dimension_numbers<[1], [0], [0], [1], [0, 0, 1, 1], [], []>} : vector<16x32xbf16>, vector<32x32xbf16>, vector<16x32xf32> -> vector<16x32xf32>
    %119 = vector.broadcast %6 : vector<1x32xf32> to vector<16x32xf32>
    %120 = arith.addf %118, %119 : vector<16x32xf32>
    %121 = arith.addf %3, %120 : vector<16x32xf32>
    %cst_45 = arith.constant dense<0.000000e+00> : vector<16xf32>
    %122 = vector.multi_reduction <add>, %121, %cst_45 [1] : vector<16x32xf32> to vector<16xf32>
    %123 = vector.shape_cast %122 : vector<16xf32> to vector<16x1xf32>
    %cst_46 = arith.constant 3.200000e+01 : f32
    %124 = vector.broadcast %cst_46 : f32 to vector<16x1xf32>
    %125 = arith.divf %123, %124 : vector<16x1xf32>
    %126 = vector.broadcast %125 : vector<16x1xf32> to vector<16x32xf32>
    %127 = arith.subf %121, %126 : vector<16x32xf32>
    %128 = arith.mulf %127, %127 : vector<16x32xf32>
    %cst_47 = arith.constant dense<0.000000e+00> : vector<16xf32>
    %129 = vector.multi_reduction <add>, %128, %cst_47 [1] : vector<16x32xf32> to vector<16xf32>
    %130 = vector.shape_cast %129 : vector<16xf32> to vector<16x1xf32>
    %cst_48 = arith.constant 3.200000e+01 : f32
    %131 = vector.broadcast %cst_48 : f32 to vector<16x1xf32>
    %132 = arith.divf %130, %131 : vector<16x1xf32>
    %133 = vector.broadcast %125 : vector<16x1xf32> to vector<16x32xf32>
    %134 = arith.subf %121, %133 : vector<16x32xf32>
    %cst_49 = arith.constant 9.99999974E-6 : f32
    %135 = vector.broadcast %cst_49 : f32 to vector<16x1xf32>
    %136 = arith.addf %132, %135 : vector<16x1xf32>
    %137 = math.rsqrt %136 : vector<16x1xf32>
    %138 = vector.broadcast %137 : vector<16x1xf32> to vector<16x32xf32>
    %139 = arith.mulf %134, %138 : vector<16x32xf32>
    %140 = vector.broadcast %8 : vector<1x32xf32> to vector<16x32xf32>
    %141 = arith.mulf %139, %140 : vector<16x32xf32>
    %142 = vector.broadcast %9 : vector<1x32xf32> to vector<16x32xf32>
    %143 = arith.addf %141, %142 : vector<16x32xf32>
    %c0_50 = arith.constant 0 : index
    %c0_51 = arith.constant 0 : index
    %c0_52 = arith.constant 0 : index
    %144 = vector.load %arg6[%c0_50, %c0_51, %c0_52] : memref<1x32x64xbf16, #tpu.memory_space<vmem>>, vector<1x32x64xbf16>
    %145 = vector.shape_cast %144 : vector<1x32x64xbf16> to vector<32x64xbf16>
    %146 = arith.truncf %143 : vector<16x32xf32> to vector<16x32xbf16>
    %cst_53 = arith.constant dense<0.000000e+00> : vector<16x64xf32>
    %147 = tpu.matmul %146, %145, %cst_53 {dimension_numbers = #tpu.dot_dimension_numbers<[1], [0], [0], [1], [0, 0, 1, 1], [], []>} : vector<16x32xbf16>, vector<32x64xbf16>, vector<16x64xf32> -> vector<16x64xf32>
    %c0_54 = arith.constant 0 : index
    %c0_55 = arith.constant 0 : index
    %c0_56 = arith.constant 0 : index
    %148 = vector.load %arg7[%c0_54, %c0_55, %c0_56] : memref<1x1x64xf32, #tpu.memory_space<vmem>>, vector<1x1x64xf32>
    %149 = vector.shape_cast %148 : vector<1x1x64xf32> to vector<1x64xf32>
    %150 = vector.broadcast %149 : vector<1x64xf32> to vector<16x64xf32>
    %151 = arith.addf %147, %150 : vector<16x64xf32>
    %cst_57 = arith.constant 0.000000e+00 : f32
    %152 = vector.broadcast %cst_57 : f32 to vector<16x64xf32>
    %153 = arith.maximumf %151, %152 : vector<16x64xf32>
    %c0_58 = arith.constant 0 : index
    %c0_59 = arith.constant 0 : index
    %c0_60 = arith.constant 0 : index
    %154 = vector.load %arg8[%c0_58, %c0_59, %c0_60] : memref<1x64x32xbf16, #tpu.memory_space<vmem>>, vector<1x64x32xbf16>
    %155 = vector.shape_cast %154 : vector<1x64x32xbf16> to vector<64x32xbf16>
    %156 = arith.truncf %153 : vector<16x64xf32> to vector<16x64xbf16>
    %cst_61 = arith.constant dense<0.000000e+00> : vector<16x32xf32>
    %157 = tpu.matmul %156, %155, %cst_61 {dimension_numbers = #tpu.dot_dimension_numbers<[1], [0], [0], [1], [0, 0, 1, 1], [], []>} : vector<16x64xbf16>, vector<64x32xbf16>, vector<16x32xf32> -> vector<16x32xf32>
    %158 = arith.addf %143, %157 : vector<16x32xf32>
    %159 = vector.broadcast %7 : vector<1x32xf32> to vector<16x32xf32>
    %160 = arith.addf %158, %159 : vector<16x32xf32>
    %cst_62 = arith.constant dense<0.000000e+00> : vector<16xf32>
    %161 = vector.multi_reduction <add>, %160, %cst_62 [1] : vector<16x32xf32> to vector<16xf32>
    %162 = vector.shape_cast %161 : vector<16xf32> to vector<16x1xf32>
    %cst_63 = arith.constant 3.200000e+01 : f32
    %163 = vector.broadcast %cst_63 : f32 to vector<16x1xf32>
    %164 = arith.divf %162, %163 : vector<16x1xf32>
    %165 = vector.broadcast %164 : vector<16x1xf32> to vector<16x32xf32>
    %166 = arith.subf %160, %165 : vector<16x32xf32>
    %167 = arith.mulf %166, %166 : vector<16x32xf32>
    %cst_64 = arith.constant dense<0.000000e+00> : vector<16xf32>
    %168 = vector.multi_reduction <add>, %167, %cst_64 [1] : vector<16x32xf32> to vector<16xf32>
    %169 = vector.shape_cast %168 : vector<16xf32> to vector<16x1xf32>
    %cst_65 = arith.constant 3.200000e+01 : f32
    %170 = vector.broadcast %cst_65 : f32 to vector<16x1xf32>
    %171 = arith.divf %169, %170 : vector<16x1xf32>
    %172 = vector.broadcast %164 : vector<16x1xf32> to vector<16x32xf32>
    %173 = arith.subf %160, %172 : vector<16x32xf32>
    %cst_66 = arith.constant 9.99999974E-6 : f32
    %174 = vector.broadcast %cst_66 : f32 to vector<16x1xf32>
    %175 = arith.addf %171, %174 : vector<16x1xf32>
    %176 = math.rsqrt %175 : vector<16x1xf32>
    %177 = vector.broadcast %176 : vector<16x1xf32> to vector<16x32xf32>
    %178 = arith.mulf %173, %177 : vector<16x32xf32>
    %179 = vector.broadcast %10 : vector<1x32xf32> to vector<16x32xf32>
    %180 = arith.mulf %178, %179 : vector<16x32xf32>
    %181 = vector.broadcast %11 : vector<1x32xf32> to vector<16x32xf32>
    %182 = arith.addf %180, %181 : vector<16x32xf32>
    %c0_67 = arith.constant 0 : index
    %c0_68 = arith.constant 0 : index
    %183 = vector.load %arg12[%c0_67, %c0_68] : memref<16x32xf32, #tpu.memory_space<vmem>>, vector<16x32xf32>
    tpu.vector_store %arg12[%c0_67, %c0_68], %182 {strides = array<i32>} : memref<16x32xf32, #tpu.memory_space<vmem>>, vector<16x32xf32>,
    %c1_i32 = arith.constant 1 : i32
    %184 = arith.cmpi eq, %arg0, %c1_i32 : i32
    %185 = arith.extui %184 : i1 to i32
    %c0_i32_69 = arith.constant 0 : i32
    %186 = arith.cmpi ne, %185, %c0_i32_69 : i32
    scf.if %186 {
      %c0_70 = arith.constant 0 : index
      %c0_71 = arith.constant 0 : index
      %187 = vector.load %arg10[%c0_70, %c0_71] : memref<2x32xf32, #tpu.memory_space<vmem>>, vector<1x32xf32>
      %c1 = arith.constant 1 : index
      %c0_72 = arith.constant 0 : index
      %188 = vector.load %arg10[%c1, %c0_72] : memref<2x32xf32, #tpu.memory_space<vmem>>, vector<1x32xf32>
      %cst_73 = arith.constant dense<0.000000e+00> : vector<16xf32>
      %189 = vector.multi_reduction <add>, %182, %cst_73 [1] : vector<16x32xf32> to vector<16xf32>
      %190 = vector.shape_cast %189 : vector<16xf32> to vector<16x1xf32>
      %cst_74 = arith.constant 3.200000e+01 : f32
      %191 = vector.broadcast %cst_74 : f32 to vector<16x1xf32>
      %192 = arith.divf %190, %191 : vector<16x1xf32>
      %193 = vector.broadcast %192 : vector<16x1xf32> to vector<16x32xf32>
      %194 = arith.subf %182, %193 : vector<16x32xf32>
      %195 = arith.mulf %194, %194 : vector<16x32xf32>
      %cst_75 = arith.constant dense<0.000000e+00> : vector<16xf32>
      %196 = vector.multi_reduction <add>, %195, %cst_75 [1] : vector<16x32xf32> to vector<16xf32>
      %197 = vector.shape_cast %196 : vector<16xf32> to vector<16x1xf32>
      %cst_76 = arith.constant 3.200000e+01 : f32
      %198 = vector.broadcast %cst_76 : f32 to vector<16x1xf32>
      %199 = arith.divf %197, %198 : vector<16x1xf32>
      %200 = vector.broadcast %192 : vector<16x1xf32> to vector<16x32xf32>
      %201 = arith.subf %182, %200 : vector<16x32xf32>
      %cst_77 = arith.constant 9.99999974E-6 : f32
      %202 = vector.broadcast %cst_77 : f32 to vector<16x1xf32>
      %203 = arith.addf %199, %202 : vector<16x1xf32>
      %204 = math.rsqrt %203 : vector<16x1xf32>
      %205 = vector.broadcast %204 : vector<16x1xf32> to vector<16x32xf32>
      %206 = arith.mulf %201, %205 : vector<16x32xf32>
      %207 = vector.broadcast %187 : vector<1x32xf32> to vector<16x32xf32>
      %208 = arith.mulf %206, %207 : vector<16x32xf32>
      %209 = vector.broadcast %188 : vector<1x32xf32> to vector<16x32xf32>
      %210 = arith.addf %208, %209 : vector<16x32xf32>
      %c0_78 = arith.constant 0 : index
      %c0_79 = arith.constant 0 : index
      %211 = vector.load %arg11[%c0_78, %c0_79] : memref<16x32xf32, #tpu.memory_space<vmem>>, vector<16x32xf32>
      tpu.vector_store %arg11[%c0_78, %c0_79], %210 {strides = array<i32>} : memref<16x32xf32, #tpu.memory_space<vmem>>, vector<16x32xf32>,
    } else {
    }
    return
  }
  func.func @transform_0(%arg0: i32) -> (i32, i32) {
    %c0_i32 = arith.constant 0 : i32
    %c0_i32_0 = arith.constant 0 : i32
    %c0_i32_1 = arith.constant 0 : i32
    return %c0_i32, %c0_i32_0 : i32, i32
  }
  func.func @transform_1(%arg0: i32) -> (i32, i32, i32) {
    %c0_i32 = arith.constant 0 : i32
    %c0_i32_0 = arith.constant 0 : i32
    %c0_i32_1 = arith.constant 0 : i32
    %c0_i32_2 = arith.constant 0 : i32
    return %c0_i32, %c0_i32_0, %c0_i32_1 : i32, i32, i32
  }
  func.func @transform_2(%arg0: i32) -> (i32, i32, i32) {
    %c0_i32 = arith.constant 0 : i32
    %c0_i32_0 = arith.constant 0 : i32
    %c0_i32_1 = arith.constant 0 : i32
    return %arg0, %c0_i32, %c0_i32_0 : i32, i32, i32
  }
  func.func @transform_3(%arg0: i32) -> (i32, i32, i32) {
    %c0_i32 = arith.constant 0 : i32
    %c0_i32_0 = arith.constant 0 : i32
    %c0_i32_1 = arith.constant 0 : i32
    return %arg0, %c0_i32, %c0_i32_0 : i32, i32, i32
  }
  func.func @transform_4(%arg0: i32) -> (i32, i32, i32) {
    %c0_i32 = arith.constant 0 : i32
    %c0_i32_0 = arith.constant 0 : i32
    %c0_i32_1 = arith.constant 0 : i32
    return %arg0, %c0_i32, %c0_i32_0 : i32, i32, i32
  }
  func.func @transform_5(%arg0: i32) -> (i32, i32, i32) {
    %c0_i32 = arith.constant 0 : i32
    %c0_i32_0 = arith.constant 0 : i32
    %c0_i32_1 = arith.constant 0 : i32
    return %arg0, %c0_i32, %c0_i32_0 : i32, i32, i32
  }
  func.func @transform_6(%arg0: i32) -> (i32, i32, i32) {
    %c0_i32 = arith.constant 0 : i32
    %c0_i32_0 = arith.constant 0 : i32
    %c0_i32_1 = arith.constant 0 : i32
    return %arg0, %c0_i32, %c0_i32_0 : i32, i32, i32
  }
  func.func @transform_7(%arg0: i32) -> (i32, i32, i32) {
    %c0_i32 = arith.constant 0 : i32
    %c0_i32_0 = arith.constant 0 : i32
    %c0_i32_1 = arith.constant 0 : i32
    return %arg0, %c0_i32, %c0_i32_0 : i32, i32, i32
  }
  func.func @transform_8(%arg0: i32) -> (i32, i32, i32) {
    %c0_i32 = arith.constant 0 : i32
    %c0_i32_0 = arith.constant 0 : i32
    %c0_i32_1 = arith.constant 0 : i32
    return %arg0, %c0_i32, %c0_i32_0 : i32, i32, i32
  }
  func.func @transform_9(%arg0: i32) -> (i32, i32) {
    %c0_i32 = arith.constant 0 : i32
    %c0_i32_0 = arith.constant 0 : i32
    %c0_i32_1 = arith.constant 0 : i32
    return %c0_i32, %c0_i32_0 : i32, i32
  }
  func.func @transform_10(%arg0: i32) -> (i32, i32) {
    %c0_i32 = arith.constant 0 : i32
    %c0_i32_0 = arith.constant 0 : i32
    %c0_i32_1 = arith.constant 0 : i32
    return %c0_i32, %c0_i32_0 : i32, i32
  }
}

module attributes {stable_mosaic.version = 11 : i64} {
  func.func @_decoder_stack_kernel(%arg0: i32, %arg1: memref<16x32xf32, #tpu.memory_space<vmem>>, %arg2: memref<16x32xf32, #tpu.memory_space<vmem>>, %arg3: memref<2x8x8xf32, #tpu.memory_space<vmem>>, %arg4: memref<2x8x8xf32, #tpu.memory_space<vmem>>, %arg5: memref<1x32x96xbf16, #tpu.memory_space<vmem>>, %arg6: memref<1x1x96xf32, #tpu.memory_space<vmem>>, %arg7: memref<1x32x32xbf16, #tpu.memory_space<vmem>>, %arg8: memref<1x32x32xbf16, #tpu.memory_space<vmem>>, %arg9: memref<1x32x64xbf16, #tpu.memory_space<vmem>>, %arg10: memref<1x1x64xf32, #tpu.memory_space<vmem>>, %arg11: memref<1x32x32xbf16, #tpu.memory_space<vmem>>, %arg12: memref<1x32x64xbf16, #tpu.memory_space<vmem>>, %arg13: memref<1x1x64xf32, #tpu.memory_space<vmem>>, %arg14: memref<1x64x32xbf16, #tpu.memory_space<vmem>>, %arg15: memref<1x10x32xf32, #tpu.memory_space<vmem>>, %arg16: memref<2x32xf32, #tpu.memory_space<vmem>>, %arg17: memref<32x128xbf16, #tpu.memory_space<vmem>>, %arg18: memref<1x128xf32, #tpu.memory_space<vmem>>, %arg19: memref<16x128xf32, #tpu.memory_space<vmem>>, %arg20: memref<16x32xf32, #tpu.memory_space<vmem>>, %arg21: memref<16x32xf32, #tpu.memory_space<vmem>>) attributes {dimension_semantics = [#tpu.dimension_semantics<arbitrary>], iteration_bounds = array<i64: 2>, scalar_prefetch = 0 : i64, scratch_operands = 2 : i64, tpu.core_type = #tpu.core_type<tc>, window_params = [{pipeline_mode = #tpu.pipeline_mode<synchronous>, transform_indices = @transform_0, window_bounds = array<i64: 16, 32>}, {pipeline_mode = #tpu.pipeline_mode<synchronous>, transform_indices = @transform_1, window_bounds = array<i64: 16, 32>}, {pipeline_mode = #tpu.pipeline_mode<synchronous>, transform_indices = @transform_2, window_bounds = array<i64: 2, 8, 8>}, {pipeline_mode = #tpu.pipeline_mode<synchronous>, transform_indices = @transform_3, window_bounds = array<i64: 2, 8, 8>}, {transform_indices = @transform_4, window_bounds = array<i64: 1, 32, 96>}, {transform_indices = @transform_5, window_bounds = array<i64: 1, 1, 96>}, {transform_indices = @transform_6, window_bounds = array<i64: 1, 32, 32>}, {transform_indices = @transform_7, window_bounds = array<i64: 1, 32, 32>}, {transform_indices = @transform_8, window_bounds = array<i64: 1, 32, 64>}, {transform_indices = @transform_9, window_bounds = array<i64: 1, 1, 64>}, {transform_indices = @transform_10, window_bounds = array<i64: 1, 32, 32>}, {transform_indices = @transform_11, window_bounds = array<i64: 1, 32, 64>}, {transform_indices = @transform_12, window_bounds = array<i64: 1, 1, 64>}, {transform_indices = @transform_13, window_bounds = array<i64: 1, 64, 32>}, {transform_indices = @transform_14, window_bounds = array<i64: 1, 10, 32>}, {pipeline_mode = #tpu.pipeline_mode<synchronous>, transform_indices = @transform_15, window_bounds = array<i64: 2, 32>}, {pipeline_mode = #tpu.pipeline_mode<synchronous>, transform_indices = @transform_16, window_bounds = array<i64: 32, 128>}, {pipeline_mode = #tpu.pipeline_mode<synchronous>, transform_indices = @transform_17, window_bounds = array<i64: 1, 128>}, {pipeline_mode = #tpu.pipeline_mode<synchronous>, transform_indices = @transform_18, window_bounds = array<i64: 16, 128>}]} {
    %c0_i32 = arith.constant 0 : i32
    %0 = arith.cmpi eq, %arg0, %c0_i32 : i32
    %1 = arith.extui %0 : i1 to i32
    %c0_i32_0 = arith.constant 0 : i32
    %2 = arith.cmpi ne, %1, %c0_i32_0 : i32
    scf.if %2 {
      %c0_125 = arith.constant 0 : index
      %c0_126 = arith.constant 0 : index
      %329 = vector.load %arg1[%c0_125, %c0_126] : memref<16x32xf32, #tpu.memory_space<vmem>>, vector<16x32xf32>
      %c0_127 = arith.constant 0 : index
      %c0_128 = arith.constant 0 : index
      %330 = vector.load %arg20[%c0_127, %c0_128] : memref<16x32xf32, #tpu.memory_space<vmem>>, vector<16x32xf32>
      tpu.vector_store %arg20[%c0_127, %c0_128], %329 {strides = array<i32>} : memref<16x32xf32, #tpu.memory_space<vmem>>, vector<16x32xf32>,
    } else {
    }
    %c0 = arith.constant 0 : index
    %c0_1 = arith.constant 0 : index
    %3 = vector.load %arg20[%c0, %c0_1] : memref<16x32xf32, #tpu.memory_space<vmem>>, vector<16x32xf32>
    %c0_2 = arith.constant 0 : index
    %c0_3 = arith.constant 0 : index
    %4 = vector.load %arg2[%c0_2, %c0_3] : memref<16x32xf32, #tpu.memory_space<vmem>>, vector<16x32xf32>
    %c0_4 = arith.constant 0 : index
    %c0_5 = arith.constant 0 : index
    %c0_6 = arith.constant 0 : index
    %5 = vector.load %arg15[%c0_4, %c0_5, %c0_6] : memref<1x10x32xf32, #tpu.memory_space<vmem>>, vector<1x10x32xf32>
    %6 = vector.shape_cast %5 : vector<1x10x32xf32> to vector<10x32xf32>
    %7 = vector.extract_strided_slice %6 {offsets = [0, 0], sizes = [1, 32], strides = [1, 1]} : vector<10x32xf32> to vector<1x32xf32>
    %8 = vector.extract_strided_slice %6 {offsets = [1, 0], sizes = [1, 32], strides = [1, 1]} : vector<10x32xf32> to vector<1x32xf32>
    %9 = vector.extract_strided_slice %6 {offsets = [2, 0], sizes = [1, 32], strides = [1, 1]} : vector<10x32xf32> to vector<1x32xf32>
    %10 = vector.extract_strided_slice %6 {offsets = [3, 0], sizes = [1, 32], strides = [1, 1]} : vector<10x32xf32> to vector<1x32xf32>
    %11 = vector.extract_strided_slice %6 {offsets = [4, 0], sizes = [1, 32], strides = [1, 1]} : vector<10x32xf32> to vector<1x32xf32>
    %12 = vector.extract_strided_slice %6 {offsets = [5, 0], sizes = [1, 32], strides = [1, 1]} : vector<10x32xf32> to vector<1x32xf32>
    %13 = vector.extract_strided_slice %6 {offsets = [6, 0], sizes = [1, 32], strides = [1, 1]} : vector<10x32xf32> to vector<1x32xf32>
    %14 = vector.extract_strided_slice %6 {offsets = [7, 0], sizes = [1, 32], strides = [1, 1]} : vector<10x32xf32> to vector<1x32xf32>
    %15 = vector.extract_strided_slice %6 {offsets = [8, 0], sizes = [1, 32], strides = [1, 1]} : vector<10x32xf32> to vector<1x32xf32>
    %16 = vector.extract_strided_slice %6 {offsets = [9, 0], sizes = [1, 32], strides = [1, 1]} : vector<10x32xf32> to vector<1x32xf32>
    %c0_7 = arith.constant 0 : index
    %c0_8 = arith.constant 0 : index
    %c0_9 = arith.constant 0 : index
    %17 = vector.load %arg5[%c0_7, %c0_8, %c0_9] : memref<1x32x96xbf16, #tpu.memory_space<vmem>>, vector<1x32x96xbf16>
    %18 = vector.shape_cast %17 : vector<1x32x96xbf16> to vector<32x96xbf16>
    %19 = arith.truncf %3 : vector<16x32xf32> to vector<16x32xbf16>
    %cst = arith.constant dense<0.000000e+00> : vector<16x96xf32>
    %20 = tpu.matmul %19, %18, %cst {dimension_numbers = #tpu.dot_dimension_numbers<[1], [0], [0], [1], [0, 0, 1, 1], [], []>} : vector<16x32xbf16>, vector<32x96xbf16>, vector<16x96xf32> -> vector<16x96xf32>
    %c0_10 = arith.constant 0 : index
    %c0_11 = arith.constant 0 : index
    %c0_12 = arith.constant 0 : index
    %21 = vector.load %arg6[%c0_10, %c0_11, %c0_12] : memref<1x1x96xf32, #tpu.memory_space<vmem>>, vector<1x1x96xf32>
    %22 = vector.shape_cast %21 : vector<1x1x96xf32> to vector<1x96xf32>
    %23 = vector.broadcast %22 : vector<1x96xf32> to vector<16x96xf32>
    %24 = arith.addf %20, %23 : vector<16x96xf32>
    %25 = vector.extract_strided_slice %24 {offsets = [0, 0], sizes = [16, 32], strides = [1, 1]} : vector<16x96xf32> to vector<16x32xf32>
    %26 = vector.extract_strided_slice %24 {offsets = [0, 32], sizes = [16, 32], strides = [1, 1]} : vector<16x96xf32> to vector<16x32xf32>
    %27 = vector.extract_strided_slice %24 {offsets = [0, 64], sizes = [16, 32], strides = [1, 1]} : vector<16x96xf32> to vector<16x32xf32>
    %c0_13 = arith.constant 0 : index
    %c0_14 = arith.constant 0 : index
    %c0_15 = arith.constant 0 : index
    %28 = vector.load %arg3[%c0_13, %c0_14, %c0_15] : memref<2x8x8xf32, #tpu.memory_space<vmem>>, vector<2x8x8xf32>
    %c0_16 = arith.constant 0 : index
    %c0_17 = arith.constant 0 : index
    %c0_18 = arith.constant 0 : index
    %29 = vector.load %arg7[%c0_16, %c0_17, %c0_18] : memref<1x32x32xbf16, #tpu.memory_space<vmem>>, vector<1x32x32xbf16>
    %30 = vector.shape_cast %29 : vector<1x32x32xbf16> to vector<32x32xbf16>
    %31 = vector.shape_cast %25 : vector<16x32xf32> to vector<2x8x32xf32>
    %32 = arith.truncf %31 : vector<2x8x32xf32> to vector<2x8x32xbf16>
    %33 = vector.shape_cast %26 : vector<16x32xf32> to vector<2x8x32xf32>
    %34 = arith.truncf %33 : vector<2x8x32xf32> to vector<2x8x32xbf16>
    %35 = vector.shape_cast %27 : vector<16x32xf32> to vector<2x8x32xf32>
    %36 = arith.truncf %35 : vector<2x8x32xf32> to vector<2x8x32xbf16>
    %37 = vector.extract_strided_slice %32 {offsets = [0, 0, 0], sizes = [2, 8, 8], strides = [1, 1, 1]} : vector<2x8x32xbf16> to vector<2x8x8xbf16>
    %38 = vector.extract_strided_slice %34 {offsets = [0, 0, 0], sizes = [2, 8, 8], strides = [1, 1, 1]} : vector<2x8x32xbf16> to vector<2x8x8xbf16>
    "tpu.trace_start"() <{level = 10 : i32, message = "bqd,bkd->bqk"}> : () -> ()
    %cst_19 = arith.constant dense<0.000000e+00> : vector<2x8x8xf32>
    %39 = tpu.matmul %37, %38, %cst_19 {dimension_numbers = #tpu.dot_dimension_numbers<[2], [2], [1], [1], [0, 0, 0, 1, 1, 1], [0], [0]>} : vector<2x8x8xbf16>, vector<2x8x8xbf16>, vector<2x8x8xf32> -> vector<2x8x8xf32>
    "tpu.trace_stop"() : () -> ()
    %cst_20 = arith.constant 0.353553385 : f32
    %40 = vector.broadcast %cst_20 : f32 to vector<2x8x8xf32>
    %41 = arith.mulf %39, %40 : vector<2x8x8xf32>
    %42 = arith.addf %41, %28 : vector<2x8x8xf32>
    %cst_21 = arith.constant dense<0xFF800000> : vector<2x8xf32>
    %43 = vector.multi_reduction <maximumf>, %42, %cst_21 [2] : vector<2x8x8xf32> to vector<2x8xf32>
    %44 = vector.shape_cast %43 : vector<2x8xf32> to vector<2x8x1xf32>
    %45 = vector.broadcast %44 : vector<2x8x1xf32> to vector<2x8x8xf32>
    %46 = arith.subf %42, %45 : vector<2x8x8xf32>
    %47 = math.exp %46 : vector<2x8x8xf32>
    %cst_22 = arith.constant dense<0.000000e+00> : vector<2x8xf32>
    %48 = vector.multi_reduction <add>, %47, %cst_22 [2] : vector<2x8x8xf32> to vector<2x8xf32>
    %49 = vector.shape_cast %48 : vector<2x8xf32> to vector<2x8x1xf32>
    %50 = tpu.reciprocal %49 {approx = true} : vector<2x8x1xf32> -> vector<2x8x1xf32>
    %51 = vector.broadcast %50 : vector<2x8x1xf32> to vector<2x8x8xf32>
    %52 = arith.mulf %47, %51 : vector<2x8x8xf32>
    %53 = arith.truncf %52 : vector<2x8x8xf32> to vector<2x8x8xbf16>
    %54 = vector.extract_strided_slice %36 {offsets = [0, 0, 0], sizes = [2, 8, 8], strides = [1, 1, 1]} : vector<2x8x32xbf16> to vector<2x8x8xbf16>
    "tpu.trace_start"() <{level = 10 : i32, message = "bqk,bkd->bqd"}> : () -> ()
    %cst_23 = arith.constant dense<0.000000e+00> : vector<2x8x8xf32>
    %55 = tpu.matmul %53, %54, %cst_23 {dimension_numbers = #tpu.dot_dimension_numbers<[2], [1], [1], [2], [0, 0, 0, 1, 1, 2], [0], [0]>} : vector<2x8x8xbf16>, vector<2x8x8xbf16>, vector<2x8x8xf32> -> vector<2x8x8xf32>
    "tpu.trace_stop"() : () -> ()
    %56 = vector.shape_cast %55 : vector<2x8x8xf32> to vector<16x8xf32>
    %c0_24 = arith.constant 0 : index
    %c0_25 = arith.constant 0 : index
    %57 = vector.load %arg21[%c0_24, %c0_25] : memref<16x32xf32, #tpu.memory_space<vmem>>, vector<16x8xf32>
    tpu.vector_store %arg21[%c0_24, %c0_25], %56 {strides = array<i32>} : memref<16x32xf32, #tpu.memory_space<vmem>>, vector<16x8xf32>,
    %58 = vector.extract_strided_slice %32 {offsets = [0, 0, 8], sizes = [2, 8, 8], strides = [1, 1, 1]} : vector<2x8x32xbf16> to vector<2x8x8xbf16>
    %59 = vector.extract_strided_slice %34 {offsets = [0, 0, 8], sizes = [2, 8, 8], strides = [1, 1, 1]} : vector<2x8x32xbf16> to vector<2x8x8xbf16>
    "tpu.trace_start"() <{level = 10 : i32, message = "bqd,bkd->bqk"}> : () -> ()
    %cst_26 = arith.constant dense<0.000000e+00> : vector<2x8x8xf32>
    %60 = tpu.matmul %58, %59, %cst_26 {dimension_numbers = #tpu.dot_dimension_numbers<[2], [2], [1], [1], [0, 0, 0, 1, 1, 1], [0], [0]>} : vector<2x8x8xbf16>, vector<2x8x8xbf16>, vector<2x8x8xf32> -> vector<2x8x8xf32>
    "tpu.trace_stop"() : () -> ()
    %cst_27 = arith.constant 0.353553385 : f32
    %61 = vector.broadcast %cst_27 : f32 to vector<2x8x8xf32>
    %62 = arith.mulf %60, %61 : vector<2x8x8xf32>
    %63 = arith.addf %62, %28 : vector<2x8x8xf32>
    %cst_28 = arith.constant dense<0xFF800000> : vector<2x8xf32>
    %64 = vector.multi_reduction <maximumf>, %63, %cst_28 [2] : vector<2x8x8xf32> to vector<2x8xf32>
    %65 = vector.shape_cast %64 : vector<2x8xf32> to vector<2x8x1xf32>
    %66 = vector.broadcast %65 : vector<2x8x1xf32> to vector<2x8x8xf32>
    %67 = arith.subf %63, %66 : vector<2x8x8xf32>
    %68 = math.exp %67 : vector<2x8x8xf32>
    %cst_29 = arith.constant dense<0.000000e+00> : vector<2x8xf32>
    %69 = vector.multi_reduction <add>, %68, %cst_29 [2] : vector<2x8x8xf32> to vector<2x8xf32>
    %70 = vector.shape_cast %69 : vector<2x8xf32> to vector<2x8x1xf32>
    %71 = tpu.reciprocal %70 {approx = true} : vector<2x8x1xf32> -> vector<2x8x1xf32>
    %72 = vector.broadcast %71 : vector<2x8x1xf32> to vector<2x8x8xf32>
    %73 = arith.mulf %68, %72 : vector<2x8x8xf32>
    %74 = arith.truncf %73 : vector<2x8x8xf32> to vector<2x8x8xbf16>
    %75 = vector.extract_strided_slice %36 {offsets = [0, 0, 8], sizes = [2, 8, 8], strides = [1, 1, 1]} : vector<2x8x32xbf16> to vector<2x8x8xbf16>
    "tpu.trace_start"() <{level = 10 : i32, message = "bqk,bkd->bqd"}> : () -> ()
    %cst_30 = arith.constant dense<0.000000e+00> : vector<2x8x8xf32>
    %76 = tpu.matmul %74, %75, %cst_30 {dimension_numbers = #tpu.dot_dimension_numbers<[2], [1], [1], [2], [0, 0, 0, 1, 1, 2], [0], [0]>} : vector<2x8x8xbf16>, vector<2x8x8xbf16>, vector<2x8x8xf32> -> vector<2x8x8xf32>
    "tpu.trace_stop"() : () -> ()
    %77 = vector.shape_cast %76 : vector<2x8x8xf32> to vector<16x8xf32>
    %c0_31 = arith.constant 0 : index
    %c8 = arith.constant 8 : index
    %78 = vector.load %arg21[%c0_31, %c8] : memref<16x32xf32, #tpu.memory_space<vmem>>, vector<16x8xf32>
    tpu.vector_store %arg21[%c0_31, %c8], %77 {strides = array<i32>} : memref<16x32xf32, #tpu.memory_space<vmem>>, vector<16x8xf32>,
    %79 = vector.extract_strided_slice %32 {offsets = [0, 0, 16], sizes = [2, 8, 8], strides = [1, 1, 1]} : vector<2x8x32xbf16> to vector<2x8x8xbf16>
    %80 = vector.extract_strided_slice %34 {offsets = [0, 0, 16], sizes = [2, 8, 8], strides = [1, 1, 1]} : vector<2x8x32xbf16> to vector<2x8x8xbf16>
    "tpu.trace_start"() <{level = 10 : i32, message = "bqd,bkd->bqk"}> : () -> ()
    %cst_32 = arith.constant dense<0.000000e+00> : vector<2x8x8xf32>
    %81 = tpu.matmul %79, %80, %cst_32 {dimension_numbers = #tpu.dot_dimension_numbers<[2], [2], [1], [1], [0, 0, 0, 1, 1, 1], [0], [0]>} : vector<2x8x8xbf16>, vector<2x8x8xbf16>, vector<2x8x8xf32> -> vector<2x8x8xf32>
    "tpu.trace_stop"() : () -> ()
    %cst_33 = arith.constant 0.353553385 : f32
    %82 = vector.broadcast %cst_33 : f32 to vector<2x8x8xf32>
    %83 = arith.mulf %81, %82 : vector<2x8x8xf32>
    %84 = arith.addf %83, %28 : vector<2x8x8xf32>
    %cst_34 = arith.constant dense<0xFF800000> : vector<2x8xf32>
    %85 = vector.multi_reduction <maximumf>, %84, %cst_34 [2] : vector<2x8x8xf32> to vector<2x8xf32>
    %86 = vector.shape_cast %85 : vector<2x8xf32> to vector<2x8x1xf32>
    %87 = vector.broadcast %86 : vector<2x8x1xf32> to vector<2x8x8xf32>
    %88 = arith.subf %84, %87 : vector<2x8x8xf32>
    %89 = math.exp %88 : vector<2x8x8xf32>
    %cst_35 = arith.constant dense<0.000000e+00> : vector<2x8xf32>
    %90 = vector.multi_reduction <add>, %89, %cst_35 [2] : vector<2x8x8xf32> to vector<2x8xf32>
    %91 = vector.shape_cast %90 : vector<2x8xf32> to vector<2x8x1xf32>
    %92 = tpu.reciprocal %91 {approx = true} : vector<2x8x1xf32> -> vector<2x8x1xf32>
    %93 = vector.broadcast %92 : vector<2x8x1xf32> to vector<2x8x8xf32>
    %94 = arith.mulf %89, %93 : vector<2x8x8xf32>
    %95 = arith.truncf %94 : vector<2x8x8xf32> to vector<2x8x8xbf16>
    %96 = vector.extract_strided_slice %36 {offsets = [0, 0, 16], sizes = [2, 8, 8], strides = [1, 1, 1]} : vector<2x8x32xbf16> to vector<2x8x8xbf16>
    "tpu.trace_start"() <{level = 10 : i32, message = "bqk,bkd->bqd"}> : () -> ()
    %cst_36 = arith.constant dense<0.000000e+00> : vector<2x8x8xf32>
    %97 = tpu.matmul %95, %96, %cst_36 {dimension_numbers = #tpu.dot_dimension_numbers<[2], [1], [1], [2], [0, 0, 0, 1, 1, 2], [0], [0]>} : vector<2x8x8xbf16>, vector<2x8x8xbf16>, vector<2x8x8xf32> -> vector<2x8x8xf32>
    "tpu.trace_stop"() : () -> ()
    %98 = vector.shape_cast %97 : vector<2x8x8xf32> to vector<16x8xf32>
    %c0_37 = arith.constant 0 : index
    %c16 = arith.constant 16 : index
    %99 = vector.load %arg21[%c0_37, %c16] : memref<16x32xf32, #tpu.memory_space<vmem>>, vector<16x8xf32>
    tpu.vector_store %arg21[%c0_37, %c16], %98 {strides = array<i32>} : memref<16x32xf32, #tpu.memory_space<vmem>>, vector<16x8xf32>,
    %100 = vector.extract_strided_slice %32 {offsets = [0, 0, 24], sizes = [2, 8, 8], strides = [1, 1, 1]} : vector<2x8x32xbf16> to vector<2x8x8xbf16>
    %101 = vector.extract_strided_slice %34 {offsets = [0, 0, 24], sizes = [2, 8, 8], strides = [1, 1, 1]} : vector<2x8x32xbf16> to vector<2x8x8xbf16>
    "tpu.trace_start"() <{level = 10 : i32, message = "bqd,bkd->bqk"}> : () -> ()
    %cst_38 = arith.constant dense<0.000000e+00> : vector<2x8x8xf32>
    %102 = tpu.matmul %100, %101, %cst_38 {dimension_numbers = #tpu.dot_dimension_numbers<[2], [2], [1], [1], [0, 0, 0, 1, 1, 1], [0], [0]>} : vector<2x8x8xbf16>, vector<2x8x8xbf16>, vector<2x8x8xf32> -> vector<2x8x8xf32>
    "tpu.trace_stop"() : () -> ()
    %cst_39 = arith.constant 0.353553385 : f32
    %103 = vector.broadcast %cst_39 : f32 to vector<2x8x8xf32>
    %104 = arith.mulf %102, %103 : vector<2x8x8xf32>
    %105 = arith.addf %104, %28 : vector<2x8x8xf32>
    %cst_40 = arith.constant dense<0xFF800000> : vector<2x8xf32>
    %106 = vector.multi_reduction <maximumf>, %105, %cst_40 [2] : vector<2x8x8xf32> to vector<2x8xf32>
    %107 = vector.shape_cast %106 : vector<2x8xf32> to vector<2x8x1xf32>
    %108 = vector.broadcast %107 : vector<2x8x1xf32> to vector<2x8x8xf32>
    %109 = arith.subf %105, %108 : vector<2x8x8xf32>
    %110 = math.exp %109 : vector<2x8x8xf32>
    %cst_41 = arith.constant dense<0.000000e+00> : vector<2x8xf32>
    %111 = vector.multi_reduction <add>, %110, %cst_41 [2] : vector<2x8x8xf32> to vector<2x8xf32>
    %112 = vector.shape_cast %111 : vector<2x8xf32> to vector<2x8x1xf32>
    %113 = tpu.reciprocal %112 {approx = true} : vector<2x8x1xf32> -> vector<2x8x1xf32>
    %114 = vector.broadcast %113 : vector<2x8x1xf32> to vector<2x8x8xf32>
    %115 = arith.mulf %110, %114 : vector<2x8x8xf32>
    %116 = arith.truncf %115 : vector<2x8x8xf32> to vector<2x8x8xbf16>
    %117 = vector.extract_strided_slice %36 {offsets = [0, 0, 24], sizes = [2, 8, 8], strides = [1, 1, 1]} : vector<2x8x32xbf16> to vector<2x8x8xbf16>
    "tpu.trace_start"() <{level = 10 : i32, message = "bqk,bkd->bqd"}> : () -> ()
    %cst_42 = arith.constant dense<0.000000e+00> : vector<2x8x8xf32>
    %118 = tpu.matmul %116, %117, %cst_42 {dimension_numbers = #tpu.dot_dimension_numbers<[2], [1], [1], [2], [0, 0, 0, 1, 1, 2], [0], [0]>} : vector<2x8x8xbf16>, vector<2x8x8xbf16>, vector<2x8x8xf32> -> vector<2x8x8xf32>
    "tpu.trace_stop"() : () -> ()
    %119 = vector.shape_cast %118 : vector<2x8x8xf32> to vector<16x8xf32>
    %c0_43 = arith.constant 0 : index
    %c24 = arith.constant 24 : index
    %120 = vector.load %arg21[%c0_43, %c24] : memref<16x32xf32, #tpu.memory_space<vmem>>, vector<16x8xf32>
    tpu.vector_store %arg21[%c0_43, %c24], %119 {strides = array<i32>} : memref<16x32xf32, #tpu.memory_space<vmem>>, vector<16x8xf32>,
    %c0_44 = arith.constant 0 : index
    %c0_45 = arith.constant 0 : index
    %121 = vector.load %arg21[%c0_44, %c0_45] : memref<16x32xf32, #tpu.memory_space<vmem>>, vector<16x32xf32>
    %122 = arith.truncf %121 : vector<16x32xf32> to vector<16x32xbf16>
    %cst_46 = arith.constant dense<0.000000e+00> : vector<16x32xf32>
    %123 = tpu.matmul %122, %30, %cst_46 {dimension_numbers = #tpu.dot_dimension_numbers<[1], [0], [0], [1], [0, 0, 1, 1], [], []>} : vector<16x32xbf16>, vector<32x32xbf16>, vector<16x32xf32> -> vector<16x32xf32>
    %124 = vector.broadcast %7 : vector<1x32xf32> to vector<16x32xf32>
    %125 = arith.addf %123, %124 : vector<16x32xf32>
    %126 = arith.addf %3, %125 : vector<16x32xf32>
    %cst_47 = arith.constant dense<0.000000e+00> : vector<16xf32>
    %127 = vector.multi_reduction <add>, %126, %cst_47 [1] : vector<16x32xf32> to vector<16xf32>
    %128 = vector.shape_cast %127 : vector<16xf32> to vector<16x1xf32>
    %cst_48 = arith.constant 3.200000e+01 : f32
    %129 = vector.broadcast %cst_48 : f32 to vector<16x1xf32>
    %130 = arith.divf %128, %129 : vector<16x1xf32>
    %131 = vector.broadcast %130 : vector<16x1xf32> to vector<16x32xf32>
    %132 = arith.subf %126, %131 : vector<16x32xf32>
    %133 = arith.mulf %132, %132 : vector<16x32xf32>
    %cst_49 = arith.constant dense<0.000000e+00> : vector<16xf32>
    %134 = vector.multi_reduction <add>, %133, %cst_49 [1] : vector<16x32xf32> to vector<16xf32>
    %135 = vector.shape_cast %134 : vector<16xf32> to vector<16x1xf32>
    %cst_50 = arith.constant 3.200000e+01 : f32
    %136 = vector.broadcast %cst_50 : f32 to vector<16x1xf32>
    %137 = arith.divf %135, %136 : vector<16x1xf32>
    %138 = vector.broadcast %130 : vector<16x1xf32> to vector<16x32xf32>
    %139 = arith.subf %126, %138 : vector<16x32xf32>
    %cst_51 = arith.constant 9.99999974E-6 : f32
    %140 = vector.broadcast %cst_51 : f32 to vector<16x1xf32>
    %141 = arith.addf %137, %140 : vector<16x1xf32>
    %142 = math.rsqrt %141 : vector<16x1xf32>
    %143 = vector.broadcast %142 : vector<16x1xf32> to vector<16x32xf32>
    %144 = arith.mulf %139, %143 : vector<16x32xf32>
    %145 = vector.broadcast %11 : vector<1x32xf32> to vector<16x32xf32>
    %146 = arith.mulf %144, %145 : vector<16x32xf32>
    %147 = vector.broadcast %12 : vector<1x32xf32> to vector<16x32xf32>
    %148 = arith.addf %146, %147 : vector<16x32xf32>
    %c0_52 = arith.constant 0 : index
    %c0_53 = arith.constant 0 : index
    %c0_54 = arith.constant 0 : index
    %149 = vector.load %arg8[%c0_52, %c0_53, %c0_54] : memref<1x32x32xbf16, #tpu.memory_space<vmem>>, vector<1x32x32xbf16>
    %150 = vector.shape_cast %149 : vector<1x32x32xbf16> to vector<32x32xbf16>
    %151 = arith.truncf %148 : vector<16x32xf32> to vector<16x32xbf16>
    %cst_55 = arith.constant dense<0.000000e+00> : vector<16x32xf32>
    %152 = tpu.matmul %151, %150, %cst_55 {dimension_numbers = #tpu.dot_dimension_numbers<[1], [0], [0], [1], [0, 0, 1, 1], [], []>} : vector<16x32xbf16>, vector<32x32xbf16>, vector<16x32xf32> -> vector<16x32xf32>
    %153 = vector.broadcast %8 : vector<1x32xf32> to vector<16x32xf32>
    %154 = arith.addf %152, %153 : vector<16x32xf32>
    %c0_56 = arith.constant 0 : index
    %c0_57 = arith.constant 0 : index
    %c0_58 = arith.constant 0 : index
    %155 = vector.load %arg9[%c0_56, %c0_57, %c0_58] : memref<1x32x64xbf16, #tpu.memory_space<vmem>>, vector<1x32x64xbf16>
    %156 = vector.shape_cast %155 : vector<1x32x64xbf16> to vector<32x64xbf16>
    %157 = arith.truncf %4 : vector<16x32xf32> to vector<16x32xbf16>
    %cst_59 = arith.constant dense<0.000000e+00> : vector<16x64xf32>
    %158 = tpu.matmul %157, %156, %cst_59 {dimension_numbers = #tpu.dot_dimension_numbers<[1], [0], [0], [1], [0, 0, 1, 1], [], []>} : vector<16x32xbf16>, vector<32x64xbf16>, vector<16x64xf32> -> vector<16x64xf32>
    %c0_60 = arith.constant 0 : index
    %c0_61 = arith.constant 0 : index
    %c0_62 = arith.constant 0 : index
    %159 = vector.load %arg10[%c0_60, %c0_61, %c0_62] : memref<1x1x64xf32, #tpu.memory_space<vmem>>, vector<1x1x64xf32>
    %160 = vector.shape_cast %159 : vector<1x1x64xf32> to vector<1x64xf32>
    %161 = vector.broadcast %160 : vector<1x64xf32> to vector<16x64xf32>
    %162 = arith.addf %158, %161 : vector<16x64xf32>
    %163 = vector.extract_strided_slice %162 {offsets = [0, 0], sizes = [16, 32], strides = [1, 1]} : vector<16x64xf32> to vector<16x32xf32>
    %164 = vector.extract_strided_slice %162 {offsets = [0, 32], sizes = [16, 32], strides = [1, 1]} : vector<16x64xf32> to vector<16x32xf32>
    %c0_63 = arith.constant 0 : index
    %c0_64 = arith.constant 0 : index
    %c0_65 = arith.constant 0 : index
    %165 = vector.load %arg4[%c0_63, %c0_64, %c0_65] : memref<2x8x8xf32, #tpu.memory_space<vmem>>, vector<2x8x8xf32>
    %c0_66 = arith.constant 0 : index
    %c0_67 = arith.constant 0 : index
    %c0_68 = arith.constant 0 : index
    %166 = vector.load %arg11[%c0_66, %c0_67, %c0_68] : memref<1x32x32xbf16, #tpu.memory_space<vmem>>, vector<1x32x32xbf16>
    %167 = vector.shape_cast %166 : vector<1x32x32xbf16> to vector<32x32xbf16>
    %168 = vector.shape_cast %154 : vector<16x32xf32> to vector<2x8x32xf32>
    %169 = arith.truncf %168 : vector<2x8x32xf32> to vector<2x8x32xbf16>
    %170 = vector.shape_cast %163 : vector<16x32xf32> to vector<2x8x32xf32>
    %171 = arith.truncf %170 : vector<2x8x32xf32> to vector<2x8x32xbf16>
    %172 = vector.shape_cast %164 : vector<16x32xf32> to vector<2x8x32xf32>
    %173 = arith.truncf %172 : vector<2x8x32xf32> to vector<2x8x32xbf16>
    %174 = vector.extract_strided_slice %169 {offsets = [0, 0, 0], sizes = [2, 8, 8], strides = [1, 1, 1]} : vector<2x8x32xbf16> to vector<2x8x8xbf16>
    %175 = vector.extract_strided_slice %171 {offsets = [0, 0, 0], sizes = [2, 8, 8], strides = [1, 1, 1]} : vector<2x8x32xbf16> to vector<2x8x8xbf16>
    "tpu.trace_start"() <{level = 10 : i32, message = "bqd,bkd->bqk"}> : () -> ()
    %cst_69 = arith.constant dense<0.000000e+00> : vector<2x8x8xf32>
    %176 = tpu.matmul %174, %175, %cst_69 {dimension_numbers = #tpu.dot_dimension_numbers<[2], [2], [1], [1], [0, 0, 0, 1, 1, 1], [0], [0]>} : vector<2x8x8xbf16>, vector<2x8x8xbf16>, vector<2x8x8xf32> -> vector<2x8x8xf32>
    "tpu.trace_stop"() : () -> ()
    %cst_70 = arith.constant 0.353553385 : f32
    %177 = vector.broadcast %cst_70 : f32 to vector<2x8x8xf32>
    %178 = arith.mulf %176, %177 : vector<2x8x8xf32>
    %179 = arith.addf %178, %165 : vector<2x8x8xf32>
    %cst_71 = arith.constant dense<0xFF800000> : vector<2x8xf32>
    %180 = vector.multi_reduction <maximumf>, %179, %cst_71 [2] : vector<2x8x8xf32> to vector<2x8xf32>
    %181 = vector.shape_cast %180 : vector<2x8xf32> to vector<2x8x1xf32>
    %182 = vector.broadcast %181 : vector<2x8x1xf32> to vector<2x8x8xf32>
    %183 = arith.subf %179, %182 : vector<2x8x8xf32>
    %184 = math.exp %183 : vector<2x8x8xf32>
    %cst_72 = arith.constant dense<0.000000e+00> : vector<2x8xf32>
    %185 = vector.multi_reduction <add>, %184, %cst_72 [2] : vector<2x8x8xf32> to vector<2x8xf32>
    %186 = vector.shape_cast %185 : vector<2x8xf32> to vector<2x8x1xf32>
    %187 = tpu.reciprocal %186 {approx = true} : vector<2x8x1xf32> -> vector<2x8x1xf32>
    %188 = vector.broadcast %187 : vector<2x8x1xf32> to vector<2x8x8xf32>
    %189 = arith.mulf %184, %188 : vector<2x8x8xf32>
    %190 = arith.truncf %189 : vector<2x8x8xf32> to vector<2x8x8xbf16>
    %191 = vector.extract_strided_slice %173 {offsets = [0, 0, 0], sizes = [2, 8, 8], strides = [1, 1, 1]} : vector<2x8x32xbf16> to vector<2x8x8xbf16>
    "tpu.trace_start"() <{level = 10 : i32, message = "bqk,bkd->bqd"}> : () -> ()
    %cst_73 = arith.constant dense<0.000000e+00> : vector<2x8x8xf32>
    %192 = tpu.matmul %190, %191, %cst_73 {dimension_numbers = #tpu.dot_dimension_numbers<[2], [1], [1], [2], [0, 0, 0, 1, 1, 2], [0], [0]>} : vector<2x8x8xbf16>, vector<2x8x8xbf16>, vector<2x8x8xf32> -> vector<2x8x8xf32>
    "tpu.trace_stop"() : () -> ()
    %193 = vector.shape_cast %192 : vector<2x8x8xf32> to vector<16x8xf32>
    %c0_74 = arith.constant 0 : index
    %c0_75 = arith.constant 0 : index
    %194 = vector.load %arg21[%c0_74, %c0_75] : memref<16x32xf32, #tpu.memory_space<vmem>>, vector<16x8xf32>
    tpu.vector_store %arg21[%c0_74, %c0_75], %193 {strides = array<i32>} : memref<16x32xf32, #tpu.memory_space<vmem>>, vector<16x8xf32>,
    %195 = vector.extract_strided_slice %169 {offsets = [0, 0, 8], sizes = [2, 8, 8], strides = [1, 1, 1]} : vector<2x8x32xbf16> to vector<2x8x8xbf16>
    %196 = vector.extract_strided_slice %171 {offsets = [0, 0, 8], sizes = [2, 8, 8], strides = [1, 1, 1]} : vector<2x8x32xbf16> to vector<2x8x8xbf16>
    "tpu.trace_start"() <{level = 10 : i32, message = "bqd,bkd->bqk"}> : () -> ()
    %cst_76 = arith.constant dense<0.000000e+00> : vector<2x8x8xf32>
    %197 = tpu.matmul %195, %196, %cst_76 {dimension_numbers = #tpu.dot_dimension_numbers<[2], [2], [1], [1], [0, 0, 0, 1, 1, 1], [0], [0]>} : vector<2x8x8xbf16>, vector<2x8x8xbf16>, vector<2x8x8xf32> -> vector<2x8x8xf32>
    "tpu.trace_stop"() : () -> ()
    %cst_77 = arith.constant 0.353553385 : f32
    %198 = vector.broadcast %cst_77 : f32 to vector<2x8x8xf32>
    %199 = arith.mulf %197, %198 : vector<2x8x8xf32>
    %200 = arith.addf %199, %165 : vector<2x8x8xf32>
    %cst_78 = arith.constant dense<0xFF800000> : vector<2x8xf32>
    %201 = vector.multi_reduction <maximumf>, %200, %cst_78 [2] : vector<2x8x8xf32> to vector<2x8xf32>
    %202 = vector.shape_cast %201 : vector<2x8xf32> to vector<2x8x1xf32>
    %203 = vector.broadcast %202 : vector<2x8x1xf32> to vector<2x8x8xf32>
    %204 = arith.subf %200, %203 : vector<2x8x8xf32>
    %205 = math.exp %204 : vector<2x8x8xf32>
    %cst_79 = arith.constant dense<0.000000e+00> : vector<2x8xf32>
    %206 = vector.multi_reduction <add>, %205, %cst_79 [2] : vector<2x8x8xf32> to vector<2x8xf32>
    %207 = vector.shape_cast %206 : vector<2x8xf32> to vector<2x8x1xf32>
    %208 = tpu.reciprocal %207 {approx = true} : vector<2x8x1xf32> -> vector<2x8x1xf32>
    %209 = vector.broadcast %208 : vector<2x8x1xf32> to vector<2x8x8xf32>
    %210 = arith.mulf %205, %209 : vector<2x8x8xf32>
    %211 = arith.truncf %210 : vector<2x8x8xf32> to vector<2x8x8xbf16>
    %212 = vector.extract_strided_slice %173 {offsets = [0, 0, 8], sizes = [2, 8, 8], strides = [1, 1, 1]} : vector<2x8x32xbf16> to vector<2x8x8xbf16>
    "tpu.trace_start"() <{level = 10 : i32, message = "bqk,bkd->bqd"}> : () -> ()
    %cst_80 = arith.constant dense<0.000000e+00> : vector<2x8x8xf32>
    %213 = tpu.matmul %211, %212, %cst_80 {dimension_numbers = #tpu.dot_dimension_numbers<[2], [1], [1], [2], [0, 0, 0, 1, 1, 2], [0], [0]>} : vector<2x8x8xbf16>, vector<2x8x8xbf16>, vector<2x8x8xf32> -> vector<2x8x8xf32>
    "tpu.trace_stop"() : () -> ()
    %214 = vector.shape_cast %213 : vector<2x8x8xf32> to vector<16x8xf32>
    %c0_81 = arith.constant 0 : index
    %c8_82 = arith.constant 8 : index
    %215 = vector.load %arg21[%c0_81, %c8_82] : memref<16x32xf32, #tpu.memory_space<vmem>>, vector<16x8xf32>
    tpu.vector_store %arg21[%c0_81, %c8_82], %214 {strides = array<i32>} : memref<16x32xf32, #tpu.memory_space<vmem>>, vector<16x8xf32>,
    %216 = vector.extract_strided_slice %169 {offsets = [0, 0, 16], sizes = [2, 8, 8], strides = [1, 1, 1]} : vector<2x8x32xbf16> to vector<2x8x8xbf16>
    %217 = vector.extract_strided_slice %171 {offsets = [0, 0, 16], sizes = [2, 8, 8], strides = [1, 1, 1]} : vector<2x8x32xbf16> to vector<2x8x8xbf16>
    "tpu.trace_start"() <{level = 10 : i32, message = "bqd,bkd->bqk"}> : () -> ()
    %cst_83 = arith.constant dense<0.000000e+00> : vector<2x8x8xf32>
    %218 = tpu.matmul %216, %217, %cst_83 {dimension_numbers = #tpu.dot_dimension_numbers<[2], [2], [1], [1], [0, 0, 0, 1, 1, 1], [0], [0]>} : vector<2x8x8xbf16>, vector<2x8x8xbf16>, vector<2x8x8xf32> -> vector<2x8x8xf32>
    "tpu.trace_stop"() : () -> ()
    %cst_84 = arith.constant 0.353553385 : f32
    %219 = vector.broadcast %cst_84 : f32 to vector<2x8x8xf32>
    %220 = arith.mulf %218, %219 : vector<2x8x8xf32>
    %221 = arith.addf %220, %165 : vector<2x8x8xf32>
    %cst_85 = arith.constant dense<0xFF800000> : vector<2x8xf32>
    %222 = vector.multi_reduction <maximumf>, %221, %cst_85 [2] : vector<2x8x8xf32> to vector<2x8xf32>
    %223 = vector.shape_cast %222 : vector<2x8xf32> to vector<2x8x1xf32>
    %224 = vector.broadcast %223 : vector<2x8x1xf32> to vector<2x8x8xf32>
    %225 = arith.subf %221, %224 : vector<2x8x8xf32>
    %226 = math.exp %225 : vector<2x8x8xf32>
    %cst_86 = arith.constant dense<0.000000e+00> : vector<2x8xf32>
    %227 = vector.multi_reduction <add>, %226, %cst_86 [2] : vector<2x8x8xf32> to vector<2x8xf32>
    %228 = vector.shape_cast %227 : vector<2x8xf32> to vector<2x8x1xf32>
    %229 = tpu.reciprocal %228 {approx = true} : vector<2x8x1xf32> -> vector<2x8x1xf32>
    %230 = vector.broadcast %229 : vector<2x8x1xf32> to vector<2x8x8xf32>
    %231 = arith.mulf %226, %230 : vector<2x8x8xf32>
    %232 = arith.truncf %231 : vector<2x8x8xf32> to vector<2x8x8xbf16>
    %233 = vector.extract_strided_slice %173 {offsets = [0, 0, 16], sizes = [2, 8, 8], strides = [1, 1, 1]} : vector<2x8x32xbf16> to vector<2x8x8xbf16>
    "tpu.trace_start"() <{level = 10 : i32, message = "bqk,bkd->bqd"}> : () -> ()
    %cst_87 = arith.constant dense<0.000000e+00> : vector<2x8x8xf32>
    %234 = tpu.matmul %232, %233, %cst_87 {dimension_numbers = #tpu.dot_dimension_numbers<[2], [1], [1], [2], [0, 0, 0, 1, 1, 2], [0], [0]>} : vector<2x8x8xbf16>, vector<2x8x8xbf16>, vector<2x8x8xf32> -> vector<2x8x8xf32>
    "tpu.trace_stop"() : () -> ()
    %235 = vector.shape_cast %234 : vector<2x8x8xf32> to vector<16x8xf32>
    %c0_88 = arith.constant 0 : index
    %c16_89 = arith.constant 16 : index
    %236 = vector.load %arg21[%c0_88, %c16_89] : memref<16x32xf32, #tpu.memory_space<vmem>>, vector<16x8xf32>
    tpu.vector_store %arg21[%c0_88, %c16_89], %235 {strides = array<i32>} : memref<16x32xf32, #tpu.memory_space<vmem>>, vector<16x8xf32>,
    %237 = vector.extract_strided_slice %169 {offsets = [0, 0, 24], sizes = [2, 8, 8], strides = [1, 1, 1]} : vector<2x8x32xbf16> to vector<2x8x8xbf16>
    %238 = vector.extract_strided_slice %171 {offsets = [0, 0, 24], sizes = [2, 8, 8], strides = [1, 1, 1]} : vector<2x8x32xbf16> to vector<2x8x8xbf16>
    "tpu.trace_start"() <{level = 10 : i32, message = "bqd,bkd->bqk"}> : () -> ()
    %cst_90 = arith.constant dense<0.000000e+00> : vector<2x8x8xf32>
    %239 = tpu.matmul %237, %238, %cst_90 {dimension_numbers = #tpu.dot_dimension_numbers<[2], [2], [1], [1], [0, 0, 0, 1, 1, 1], [0], [0]>} : vector<2x8x8xbf16>, vector<2x8x8xbf16>, vector<2x8x8xf32> -> vector<2x8x8xf32>
    "tpu.trace_stop"() : () -> ()
    %cst_91 = arith.constant 0.353553385 : f32
    %240 = vector.broadcast %cst_91 : f32 to vector<2x8x8xf32>
    %241 = arith.mulf %239, %240 : vector<2x8x8xf32>
    %242 = arith.addf %241, %165 : vector<2x8x8xf32>
    %cst_92 = arith.constant dense<0xFF800000> : vector<2x8xf32>
    %243 = vector.multi_reduction <maximumf>, %242, %cst_92 [2] : vector<2x8x8xf32> to vector<2x8xf32>
    %244 = vector.shape_cast %243 : vector<2x8xf32> to vector<2x8x1xf32>
    %245 = vector.broadcast %244 : vector<2x8x1xf32> to vector<2x8x8xf32>
    %246 = arith.subf %242, %245 : vector<2x8x8xf32>
    %247 = math.exp %246 : vector<2x8x8xf32>
    %cst_93 = arith.constant dense<0.000000e+00> : vector<2x8xf32>
    %248 = vector.multi_reduction <add>, %247, %cst_93 [2] : vector<2x8x8xf32> to vector<2x8xf32>
    %249 = vector.shape_cast %248 : vector<2x8xf32> to vector<2x8x1xf32>
    %250 = tpu.reciprocal %249 {approx = true} : vector<2x8x1xf32> -> vector<2x8x1xf32>
    %251 = vector.broadcast %250 : vector<2x8x1xf32> to vector<2x8x8xf32>
    %252 = arith.mulf %247, %251 : vector<2x8x8xf32>
    %253 = arith.truncf %252 : vector<2x8x8xf32> to vector<2x8x8xbf16>
    %254 = vector.extract_strided_slice %173 {offsets = [0, 0, 24], sizes = [2, 8, 8], strides = [1, 1, 1]} : vector<2x8x32xbf16> to vector<2x8x8xbf16>
    "tpu.trace_start"() <{level = 10 : i32, message = "bqk,bkd->bqd"}> : () -> ()
    %cst_94 = arith.constant dense<0.000000e+00> : vector<2x8x8xf32>
    %255 = tpu.matmul %253, %254, %cst_94 {dimension_numbers = #tpu.dot_dimension_numbers<[2], [1], [1], [2], [0, 0, 0, 1, 1, 2], [0], [0]>} : vector<2x8x8xbf16>, vector<2x8x8xbf16>, vector<2x8x8xf32> -> vector<2x8x8xf32>
    "tpu.trace_stop"() : () -> ()
    %256 = vector.shape_cast %255 : vector<2x8x8xf32> to vector<16x8xf32>
    %c0_95 = arith.constant 0 : index
    %c24_96 = arith.constant 24 : index
    %257 = vector.load %arg21[%c0_95, %c24_96] : memref<16x32xf32, #tpu.memory_space<vmem>>, vector<16x8xf32>
    tpu.vector_store %arg21[%c0_95, %c24_96], %256 {strides = array<i32>} : memref<16x32xf32, #tpu.memory_space<vmem>>, vector<16x8xf32>,
    %c0_97 = arith.constant 0 : index
    %c0_98 = arith.constant 0 : index
    %258 = vector.load %arg21[%c0_97, %c0_98] : memref<16x32xf32, #tpu.memory_space<vmem>>, vector<16x32xf32>
    %259 = arith.truncf %258 : vector<16x32xf32> to vector<16x32xbf16>
    %cst_99 = arith.constant dense<0.000000e+00> : vector<16x32xf32>
    %260 = tpu.matmul %259, %167, %cst_99 {dimension_numbers = #tpu.dot_dimension_numbers<[1], [0], [0], [1], [0, 0, 1, 1], [], []>} : vector<16x32xbf16>, vector<32x32xbf16>, vector<16x32xf32> -> vector<16x32xf32>
    %261 = vector.broadcast %9 : vector<1x32xf32> to vector<16x32xf32>
    %262 = arith.addf %260, %261 : vector<16x32xf32>
    %263 = arith.addf %148, %262 : vector<16x32xf32>
    %cst_100 = arith.constant dense<0.000000e+00> : vector<16xf32>
    %264 = vector.multi_reduction <add>, %263, %cst_100 [1] : vector<16x32xf32> to vector<16xf32>
    %265 = vector.shape_cast %264 : vector<16xf32> to vector<16x1xf32>
    %cst_101 = arith.constant 3.200000e+01 : f32
    %266 = vector.broadcast %cst_101 : f32 to vector<16x1xf32>
    %267 = arith.divf %265, %266 : vector<16x1xf32>
    %268 = vector.broadcast %267 : vector<16x1xf32> to vector<16x32xf32>
    %269 = arith.subf %263, %268 : vector<16x32xf32>
    %270 = arith.mulf %269, %269 : vector<16x32xf32>
    %cst_102 = arith.constant dense<0.000000e+00> : vector<16xf32>
    %271 = vector.multi_reduction <add>, %270, %cst_102 [1] : vector<16x32xf32> to vector<16xf32>
    %272 = vector.shape_cast %271 : vector<16xf32> to vector<16x1xf32>
    %cst_103 = arith.constant 3.200000e+01 : f32
    %273 = vector.broadcast %cst_103 : f32 to vector<16x1xf32>
    %274 = arith.divf %272, %273 : vector<16x1xf32>
    %275 = vector.broadcast %267 : vector<16x1xf32> to vector<16x32xf32>
    %276 = arith.subf %263, %275 : vector<16x32xf32>
    %cst_104 = arith.constant 9.99999974E-6 : f32
    %277 = vector.broadcast %cst_104 : f32 to vector<16x1xf32>
    %278 = arith.addf %274, %277 : vector<16x1xf32>
    %279 = math.rsqrt %278 : vector<16x1xf32>
    %280 = vector.broadcast %279 : vector<16x1xf32> to vector<16x32xf32>
    %281 = arith.mulf %276, %280 : vector<16x32xf32>
    %282 = vector.broadcast %13 : vector<1x32xf32> to vector<16x32xf32>
    %283 = arith.mulf %281, %282 : vector<16x32xf32>
    %284 = vector.broadcast %14 : vector<1x32xf32> to vector<16x32xf32>
    %285 = arith.addf %283, %284 : vector<16x32xf32>
    %c0_105 = arith.constant 0 : index
    %c0_106 = arith.constant 0 : index
    %c0_107 = arith.constant 0 : index
    %286 = vector.load %arg12[%c0_105, %c0_106, %c0_107] : memref<1x32x64xbf16, #tpu.memory_space<vmem>>, vector<1x32x64xbf16>
    %287 = vector.shape_cast %286 : vector<1x32x64xbf16> to vector<32x64xbf16>
    %288 = arith.truncf %285 : vector<16x32xf32> to vector<16x32xbf16>
    %cst_108 = arith.constant dense<0.000000e+00> : vector<16x64xf32>
    %289 = tpu.matmul %288, %287, %cst_108 {dimension_numbers = #tpu.dot_dimension_numbers<[1], [0], [0], [1], [0, 0, 1, 1], [], []>} : vector<16x32xbf16>, vector<32x64xbf16>, vector<16x64xf32> -> vector<16x64xf32>
    %c0_109 = arith.constant 0 : index
    %c0_110 = arith.constant 0 : index
    %c0_111 = arith.constant 0 : index
    %290 = vector.load %arg13[%c0_109, %c0_110, %c0_111] : memref<1x1x64xf32, #tpu.memory_space<vmem>>, vector<1x1x64xf32>
    %291 = vector.shape_cast %290 : vector<1x1x64xf32> to vector<1x64xf32>
    %292 = vector.broadcast %291 : vector<1x64xf32> to vector<16x64xf32>
    %293 = arith.addf %289, %292 : vector<16x64xf32>
    %cst_112 = arith.constant 0.000000e+00 : f32
    %294 = vector.broadcast %cst_112 : f32 to vector<16x64xf32>
    %295 = arith.maximumf %293, %294 : vector<16x64xf32>
    %c0_113 = arith.constant 0 : index
    %c0_114 = arith.constant 0 : index
    %c0_115 = arith.constant 0 : index
    %296 = vector.load %arg14[%c0_113, %c0_114, %c0_115] : memref<1x64x32xbf16, #tpu.memory_space<vmem>>, vector<1x64x32xbf16>
    %297 = vector.shape_cast %296 : vector<1x64x32xbf16> to vector<64x32xbf16>
    %298 = arith.truncf %295 : vector<16x64xf32> to vector<16x64xbf16>
    %cst_116 = arith.constant dense<0.000000e+00> : vector<16x32xf32>
    %299 = tpu.matmul %298, %297, %cst_116 {dimension_numbers = #tpu.dot_dimension_numbers<[1], [0], [0], [1], [0, 0, 1, 1], [], []>} : vector<16x64xbf16>, vector<64x32xbf16>, vector<16x32xf32> -> vector<16x32xf32>
    %300 = arith.addf %285, %299 : vector<16x32xf32>
    %301 = vector.broadcast %10 : vector<1x32xf32> to vector<16x32xf32>
    %302 = arith.addf %300, %301 : vector<16x32xf32>
    %cst_117 = arith.constant dense<0.000000e+00> : vector<16xf32>
    %303 = vector.multi_reduction <add>, %302, %cst_117 [1] : vector<16x32xf32> to vector<16xf32>
    %304 = vector.shape_cast %303 : vector<16xf32> to vector<16x1xf32>
    %cst_118 = arith.constant 3.200000e+01 : f32
    %305 = vector.broadcast %cst_118 : f32 to vector<16x1xf32>
    %306 = arith.divf %304, %305 : vector<16x1xf32>
    %307 = vector.broadcast %306 : vector<16x1xf32> to vector<16x32xf32>
    %308 = arith.subf %302, %307 : vector<16x32xf32>
    %309 = arith.mulf %308, %308 : vector<16x32xf32>
    %cst_119 = arith.constant dense<0.000000e+00> : vector<16xf32>
    %310 = vector.multi_reduction <add>, %309, %cst_119 [1] : vector<16x32xf32> to vector<16xf32>
    %311 = vector.shape_cast %310 : vector<16xf32> to vector<16x1xf32>
    %cst_120 = arith.constant 3.200000e+01 : f32
    %312 = vector.broadcast %cst_120 : f32 to vector<16x1xf32>
    %313 = arith.divf %311, %312 : vector<16x1xf32>
    %314 = vector.broadcast %306 : vector<16x1xf32> to vector<16x32xf32>
    %315 = arith.subf %302, %314 : vector<16x32xf32>
    %cst_121 = arith.constant 9.99999974E-6 : f32
    %316 = vector.broadcast %cst_121 : f32 to vector<16x1xf32>
    %317 = arith.addf %313, %316 : vector<16x1xf32>
    %318 = math.rsqrt %317 : vector<16x1xf32>
    %319 = vector.broadcast %318 : vector<16x1xf32> to vector<16x32xf32>
    %320 = arith.mulf %315, %319 : vector<16x32xf32>
    %321 = vector.broadcast %15 : vector<1x32xf32> to vector<16x32xf32>
    %322 = arith.mulf %320, %321 : vector<16x32xf32>
    %323 = vector.broadcast %16 : vector<1x32xf32> to vector<16x32xf32>
    %324 = arith.addf %322, %323 : vector<16x32xf32>
    %c0_122 = arith.constant 0 : index
    %c0_123 = arith.constant 0 : index
    %325 = vector.load %arg20[%c0_122, %c0_123] : memref<16x32xf32, #tpu.memory_space<vmem>>, vector<16x32xf32>
    tpu.vector_store %arg20[%c0_122, %c0_123], %324 {strides = array<i32>} : memref<16x32xf32, #tpu.memory_space<vmem>>, vector<16x32xf32>,
    %c1_i32 = arith.constant 1 : i32
    %326 = arith.cmpi eq, %arg0, %c1_i32 : i32
    %327 = arith.extui %326 : i1 to i32
    %c0_i32_124 = arith.constant 0 : i32
    %328 = arith.cmpi ne, %327, %c0_i32_124 : i32
    scf.if %328 {
      %c0_125 = arith.constant 0 : index
      %c0_126 = arith.constant 0 : index
      %329 = vector.load %arg16[%c0_125, %c0_126] : memref<2x32xf32, #tpu.memory_space<vmem>>, vector<1x32xf32>
      %c1 = arith.constant 1 : index
      %c0_127 = arith.constant 0 : index
      %330 = vector.load %arg16[%c1, %c0_127] : memref<2x32xf32, #tpu.memory_space<vmem>>, vector<1x32xf32>
      %cst_128 = arith.constant dense<0.000000e+00> : vector<16xf32>
      %331 = vector.multi_reduction <add>, %324, %cst_128 [1] : vector<16x32xf32> to vector<16xf32>
      %332 = vector.shape_cast %331 : vector<16xf32> to vector<16x1xf32>
      %cst_129 = arith.constant 3.200000e+01 : f32
      %333 = vector.broadcast %cst_129 : f32 to vector<16x1xf32>
      %334 = arith.divf %332, %333 : vector<16x1xf32>
      %335 = vector.broadcast %334 : vector<16x1xf32> to vector<16x32xf32>
      %336 = arith.subf %324, %335 : vector<16x32xf32>
      %337 = arith.mulf %336, %336 : vector<16x32xf32>
      %cst_130 = arith.constant dense<0.000000e+00> : vector<16xf32>
      %338 = vector.multi_reduction <add>, %337, %cst_130 [1] : vector<16x32xf32> to vector<16xf32>
      %339 = vector.shape_cast %338 : vector<16xf32> to vector<16x1xf32>
      %cst_131 = arith.constant 3.200000e+01 : f32
      %340 = vector.broadcast %cst_131 : f32 to vector<16x1xf32>
      %341 = arith.divf %339, %340 : vector<16x1xf32>
      %342 = vector.broadcast %334 : vector<16x1xf32> to vector<16x32xf32>
      %343 = arith.subf %324, %342 : vector<16x32xf32>
      %cst_132 = arith.constant 9.99999974E-6 : f32
      %344 = vector.broadcast %cst_132 : f32 to vector<16x1xf32>
      %345 = arith.addf %341, %344 : vector<16x1xf32>
      %346 = math.rsqrt %345 : vector<16x1xf32>
      %347 = vector.broadcast %346 : vector<16x1xf32> to vector<16x32xf32>
      %348 = arith.mulf %343, %347 : vector<16x32xf32>
      %349 = vector.broadcast %329 : vector<1x32xf32> to vector<16x32xf32>
      %350 = arith.mulf %348, %349 : vector<16x32xf32>
      %351 = vector.broadcast %330 : vector<1x32xf32> to vector<16x32xf32>
      %352 = arith.addf %350, %351 : vector<16x32xf32>
      %c0_133 = arith.constant 0 : index
      %c0_134 = arith.constant 0 : index
      %353 = vector.load %arg17[%c0_133, %c0_134] : memref<32x128xbf16, #tpu.memory_space<vmem>>, vector<32x128xbf16>
      %354 = arith.truncf %352 : vector<16x32xf32> to vector<16x32xbf16>
      %cst_135 = arith.constant dense<0.000000e+00> : vector<16x128xf32>
      %355 = tpu.matmul %354, %353, %cst_135 {dimension_numbers = #tpu.dot_dimension_numbers<[1], [0], [0], [1], [0, 0, 1, 1], [], []>} : vector<16x32xbf16>, vector<32x128xbf16>, vector<16x128xf32> -> vector<16x128xf32>
      %c0_136 = arith.constant 0 : index
      %c0_137 = arith.constant 0 : index
      %356 = vector.load %arg18[%c0_136, %c0_137] : memref<1x128xf32, #tpu.memory_space<vmem>>, vector<1x128xf32>
      %357 = vector.broadcast %356 : vector<1x128xf32> to vector<16x128xf32>
      %358 = arith.addf %355, %357 : vector<16x128xf32>
      %c0_138 = arith.constant 0 : index
      %c0_139 = arith.constant 0 : index
      %359 = vector.load %arg19[%c0_138, %c0_139] : memref<16x128xf32, #tpu.memory_space<vmem>>, vector<16x128xf32>
      tpu.vector_store %arg19[%c0_138, %c0_139], %358 {strides = array<i32>} : memref<16x128xf32, #tpu.memory_space<vmem>>, vector<16x128xf32>,
    } else {
    }
    return
  }
  func.func @transform_0(%arg0: i32) -> (i32, i32) {
    %c0_i32 = arith.constant 0 : i32
    %c0_i32_0 = arith.constant 0 : i32
    %c0_i32_1 = arith.constant 0 : i32
    return %c0_i32, %c0_i32_0 : i32, i32
  }
  func.func @transform_1(%arg0: i32) -> (i32, i32) {
    %c0_i32 = arith.constant 0 : i32
    %c0_i32_0 = arith.constant 0 : i32
    %c0_i32_1 = arith.constant 0 : i32
    return %c0_i32, %c0_i32_0 : i32, i32
  }
  func.func @transform_2(%arg0: i32) -> (i32, i32, i32) {
    %c0_i32 = arith.constant 0 : i32
    %c0_i32_0 = arith.constant 0 : i32
    %c0_i32_1 = arith.constant 0 : i32
    %c0_i32_2 = arith.constant 0 : i32
    return %c0_i32, %c0_i32_0, %c0_i32_1 : i32, i32, i32
  }
  func.func @transform_3(%arg0: i32) -> (i32, i32, i32) {
    %c0_i32 = arith.constant 0 : i32
    %c0_i32_0 = arith.constant 0 : i32
    %c0_i32_1 = arith.constant 0 : i32
    %c0_i32_2 = arith.constant 0 : i32
    return %c0_i32, %c0_i32_0, %c0_i32_1 : i32, i32, i32
  }
  func.func @transform_4(%arg0: i32) -> (i32, i32, i32) {
    %c0_i32 = arith.constant 0 : i32
    %c0_i32_0 = arith.constant 0 : i32
    %c0_i32_1 = arith.constant 0 : i32
    return %arg0, %c0_i32, %c0_i32_0 : i32, i32, i32
  }
  func.func @transform_5(%arg0: i32) -> (i32, i32, i32) {
    %c0_i32 = arith.constant 0 : i32
    %c0_i32_0 = arith.constant 0 : i32
    %c0_i32_1 = arith.constant 0 : i32
    return %arg0, %c0_i32, %c0_i32_0 : i32, i32, i32
  }
  func.func @transform_6(%arg0: i32) -> (i32, i32, i32) {
    %c0_i32 = arith.constant 0 : i32
    %c0_i32_0 = arith.constant 0 : i32
    %c0_i32_1 = arith.constant 0 : i32
    return %arg0, %c0_i32, %c0_i32_0 : i32, i32, i32
  }
  func.func @transform_7(%arg0: i32) -> (i32, i32, i32) {
    %c0_i32 = arith.constant 0 : i32
    %c0_i32_0 = arith.constant 0 : i32
    %c0_i32_1 = arith.constant 0 : i32
    return %arg0, %c0_i32, %c0_i32_0 : i32, i32, i32
  }
  func.func @transform_8(%arg0: i32) -> (i32, i32, i32) {
    %c0_i32 = arith.constant 0 : i32
    %c0_i32_0 = arith.constant 0 : i32
    %c0_i32_1 = arith.constant 0 : i32
    return %arg0, %c0_i32, %c0_i32_0 : i32, i32, i32
  }
  func.func @transform_9(%arg0: i32) -> (i32, i32, i32) {
    %c0_i32 = arith.constant 0 : i32
    %c0_i32_0 = arith.constant 0 : i32
    %c0_i32_1 = arith.constant 0 : i32
    return %arg0, %c0_i32, %c0_i32_0 : i32, i32, i32
  }
  func.func @transform_10(%arg0: i32) -> (i32, i32, i32) {
    %c0_i32 = arith.constant 0 : i32
    %c0_i32_0 = arith.constant 0 : i32
    %c0_i32_1 = arith.constant 0 : i32
    return %arg0, %c0_i32, %c0_i32_0 : i32, i32, i32
  }
  func.func @transform_11(%arg0: i32) -> (i32, i32, i32) {
    %c0_i32 = arith.constant 0 : i32
    %c0_i32_0 = arith.constant 0 : i32
    %c0_i32_1 = arith.constant 0 : i32
    return %arg0, %c0_i32, %c0_i32_0 : i32, i32, i32
  }
  func.func @transform_12(%arg0: i32) -> (i32, i32, i32) {
    %c0_i32 = arith.constant 0 : i32
    %c0_i32_0 = arith.constant 0 : i32
    %c0_i32_1 = arith.constant 0 : i32
    return %arg0, %c0_i32, %c0_i32_0 : i32, i32, i32
  }
  func.func @transform_13(%arg0: i32) -> (i32, i32, i32) {
    %c0_i32 = arith.constant 0 : i32
    %c0_i32_0 = arith.constant 0 : i32
    %c0_i32_1 = arith.constant 0 : i32
    return %arg0, %c0_i32, %c0_i32_0 : i32, i32, i32
  }
  func.func @transform_14(%arg0: i32) -> (i32, i32, i32) {
    %c0_i32 = arith.constant 0 : i32
    %c0_i32_0 = arith.constant 0 : i32
    %c0_i32_1 = arith.constant 0 : i32
    return %arg0, %c0_i32, %c0_i32_0 : i32, i32, i32
  }
  func.func @transform_15(%arg0: i32) -> (i32, i32) {
    %c0_i32 = arith.constant 0 : i32
    %c0_i32_0 = arith.constant 0 : i32
    %c0_i32_1 = arith.constant 0 : i32
    return %c0_i32, %c0_i32_0 : i32, i32
  }
  func.func @transform_16(%arg0: i32) -> (i32, i32) {
    %c0_i32 = arith.constant 0 : i32
    %c0_i32_0 = arith.constant 0 : i32
    %c0_i32_1 = arith.constant 0 : i32
    return %c0_i32, %c0_i32_0 : i32, i32
  }
  func.func @transform_17(%arg0: i32) -> (i32, i32) {
    %c0_i32 = arith.constant 0 : i32
    %c0_i32_0 = arith.constant 0 : i32
    %c0_i32_1 = arith.constant 0 : i32
    return %c0_i32, %c0_i32_0 : i32, i32
  }
  func.func @transform_18(%arg0: i32) -> (i32, i32) {
    %c0_i32 = arith.constant 0 : i32
    %c0_i32_0 = arith.constant 0 : i32
    %c0_i32_1 = arith.constant 0 : i32
    return %c0_i32, %c0_i32_0 : i32, i32
  }
}

</mosaic_0001>

<bundles_post_ra>
// kernel: _lambda_.2
= control target key start
LH: loop header
LB: loop body
LE: loop exit
PB: predicated region body
PF: predicated region fallthrough
CT: control target
= control target key end

     0   :  { %s2301_s13 = smov 0   ;;  %s2606_s0 = inlined_call_operand.vmem [shape: f32[16,32], index: 0, kind: input, shape index: {}]   ;;  %s2607_s1 = inlined_call_operand.vmem [shape: f32[2,8,8], index: 1, kind: input, shape index: {}]   ;;  %s2608_s2 = inlined_call_operand.vmem [shape: bf16[2,32,96], index: 2, kind: input, shape index: {}]   ;;  %s2609_s3 = inlined_call_operand.vmem [shape: f32[2,1,96], index: 3, kind: input, shape index: {}]   ;;  %s2610_s4 = inlined_call_operand.vmem [shape: bf16[2,32,32], index: 4, kind: input, shape index: {}]   ;;  %s2611_s5 = inlined_call_operand.vmem [shape: bf16[2,32,64], index: 5, kind: input, shape index: {}]   ;;  %s2612_s6 = inlined_call_operand.vmem [shape: f32[2,1,64], index: 6, kind: input, shape index: {}]   ;;  %s2613_s7 = inlined_call_operand.vmem [shape: bf16[2,64,32], index: 7, kind: input, shape index: {}]   ;;  %s2614_s8 = inlined_call_operand.vmem [shape: f32[2,6,32], index: 8, kind: input, shape index: {}]   ;;  %s2615_s9 = inlined_call_operand.vmem [shape: f32[2,32], index: 9, kind: input, shape index: {}]   ;;  %s2616_s10 = inlined_call_operand.vmem [shape: f32[16,32], index: 10, kind: output, shape index: {}]  }
   0x1 LB: > { %s2307_s14 = sadd.s32 4294967295, %s2228_s13   ;;  %p1914_p0 = scmp.ge.s32.totalorder %s2228_s13, 1  ;;  %s2228_s13 = sphi %s2301_s13, %s20_s13  }
   0x2   : > { %p362_p1 = scmp.lt.s32.totalorder %s2228_s13, 3 }
   0x4   : > { %p363_p2 = pnand %p1914_p0, %p362_p1 }
   0x5   : > { %p420_p3 = scmp.lt.s32.totalorder (!%p363_p2), %s2307_s14, 1  ;;  %p1924_p4 = scmp.ne.s32.totalorder (!%p363_p2), %s2307_s14, 0 }
   0x6   : > { %366 = sbr.rel (%p363_p2) target bundleno = 4280 (0x10b8), region = 60 }
   0xb   : > { %s2313_s15 = scalar_select %p420_p3, %s2307_s14, 1 }
   0xd   : > { %s1962_s16 = sshll.u32 %s2313_s15, 4  ;;  %s440_s11 = scalar_lea.vmem %s2612_s6, %s2313_s15 }
   0xe   : > { %s424_s22 = scalar_lea.vmem %s2608_s2, %s1962_s16  ;;  %s2326_s25 = scalar_lea.vmem %s2610_s4, %s1962_s16 }
   0xf   : > { %s2331_s28 = scalar_lea.vmem %s2611_s5, %s1962_s16  ;;  %s1965_s12 = sshll.u32 %s2313_s15, 5 }
  0x10   : > { %s1923_s17 = sshll.u32 %s2313_s15, 3  ;;  %s2342_s20 = scalar_lea.vmem %s2613_s7, %s1965_s12 }
  0x11   : > { %s2347_s24 = scalar_lea.vmem %s2614_s8, %s1923_s17  ;;  %454 = sbr.rel (%p1924_p4) target bundleno = 24 (0x18), region = 64 }
  0x16   : > { %v455_v0 = vld [vmem:[%s2606_s0] sm:$0xff]  ;;  %vm457_vm0 = vcmask 261120   ;;  %v456_v1 = vld [vmem:[%s2606_s0 + $0x8] sm:$0xff] }
  0x17   : > { %458 = vst.msk [vmem:[#allocation2] sm:$0xff] %vm457_vm0, %v455_v0  ;;  %459 = vst.msk [vmem:[#allocation2 + $0x8] sm:$0xff] %vm457_vm0, %v456_v1 }
  0x18 PF: > { %v2168_v2 = vld [vmem:[%s424_s22 + $0x8] sm:$0xff]   ;;  %v2230_v3 = vmov 0.0   ;;  %v2169_v4 = vld [vmem:[%s424_s22] sm:$0xff]   ;;  %vm2231_vm1 = vmmov 0   ;;  %vm487_vm2 = vcmask 261120   ;;  %s2617_s30 = scalar_lea.vmem %s2609_s3, %s2313_s15  ;;  %s2232_s12 = smov 96  }
  0x19   : > { %2012 = vmatprep.subr.bf16.mxu0 %v2230_v3  ;;  %2020 = vmatprep.subr.bf16.mxu1 %v2230_v3  ;;  %v1925_v8 = vld [vmem:[%s2617_s30] ss:$0 sm:$0xff]  ;;  %vm543_vm3 = vcmask 64512   ;;  %v2405_v28 = vld [vmem:[%s2607_s1 + $0x8] sm:$0xff]  ;;  %s2233_s16 = smov 64   ;;  %s2234_s26 = smov 88  }
  0x1a   : > { %2013 = vmatpush3.bf16.msra.mxu0 %v2168_v2  ;;  %2016 = vmatprep.mubr.msk.bf16.mxu0 %vm2231_vm1, %v2230_v3  ;;  %v2399_v22 = vld [vmem:[%s2607_s1] sm:$0xff]  ;;  %vm672_vm4 = vcmask 1043456   ;;  %s2235_s27 = smov 120   ;;  %s2236_s29 = smov 56   ;;  %vm998_vm5 = vcmask 130112   ;;  %vm1233_vm6 = vcmask 195712  }
  0x1b   : > { %2014 = vmatprep.subr.bf16.mxu0 %v2230_v3  ;;  %2022 = vmatprep.mubr.msk.bf16.mxu1 %vm2231_vm1, %v2230_v3  ;;  %s2237_s19 = smov 80   ;;  %s2238_s22 = smov 112   ;;  %vm1468_vm7 = vcmask 261312   ;;  %vm1678_vm8 = vcmask 523264  }
  0x1c   : > { %s2239_s30 = smov 48   ;;  %s2241_s17 = smov 104  }
  0x1d   : > { %s2242_s18 = smov 40   ;;  %s2243_s21 = smov 8  }
  0x1e   : > { %v2360_v5 = vld [vmem:[#allocation2] sm:$0xff]  ;;  %v2362_v6 = vld [vmem:[#allocation2 + $0x8] sm:$0xff]  ;;  %2015 = vmatpush3.bf16.msra.mxu0 %v2169_v4  ;;  %s2244_s23 = smov 16   ;;  %p1957_p5 = scmp.ne.s32.totalorder %s2307_s14, 1 }
  0x1f   : > { %v467_v7 = vpack.c.bf16 %v2362_v6, %v2360_v5  ;;  %2026 = vmatprep.subr.bf16.mxu0 %v2230_v3 }
  0x21   : > { %2017 = vmatmul.mubr.msk.bf16.vlgmr.msra.gmra.mxu0 %vm487_vm2, %v467_v7 }
  0x22   : > { %2028 = vmatprep.mubr.msk.bf16.mxu0 %vm2231_vm1, %v2230_v3 }
  0xe1   : > { %v525_v9 = vpop.f32.mrf.mxu0 }
  0xe2   : > { %v526_v10 = vadd.f32 %v1925_v8, %v525_v9 }
  0xe3   : > { %v2018_v11 = vpop.f32.mrf.mxu0 }
  0xe4   : > { %v2378_v12 = vpack.c.bf16 %v526_v10, %v526_v10 }
  0xe5   : > { %v528_v13 = vpop.f32.mrf.mxu0 }
  0xe6   : > { %v529_v14 = vadd.f32 %v1925_v8, %v528_v13  ;;  %541 = vrot.lane.b32.xlu0 %v2378_v12, %s2232_s12 }
  0xe7   : > { %v2019_v15 = vpop.f32.mrf.mxu0 }
  0xe8   : > { %v2381_v16 = vpack.c.bf16 %v529_v14, %v529_v14 }
  0xea   : > { %591 = vrot.lane.b32.xlu0 %v2381_v16, %s2232_s12  ;;  %s2240_s12 = smov 72  }
 0x158   : > { %v542_v17 = vpop.permute.xlu0 %541 }
 0x159   : > { %v548_v18 = vsel %vm543_vm3, %v542_v17, 0 }
 0x15a   : > { %2021 = vmatpush3.bf16.xpose.msra.mxu1 %v548_v18 }
 0x15b   : > { %2032 = vmatprep.subr.bf16.mxu1 %v2230_v3 }
 0x15c   : > { %v592_v19 = vpop.permute.xlu0 %591 }
 0x15d   : > { %v597_v20 = vsel %vm543_vm3, %v592_v19, 0 }
 0x15e   : > { %2027 = vmatpush3.bf16.xpose.msra.mxu0 %v597_v20 }
 0x15f   : > { %2038 = vmatprep.subr.bf16.mxu0 %v2230_v3 }
 0x161   : > { %2023 = vmatmul.mubr.msk.bf16.vlgmr.msra.gmra.mxu1 %vm543_vm3, %v2378_v12 }
 0x162   : > { %2034 = vmatprep.mubr.msk.bf16.mxu1 %vm2231_vm1, %v2230_v3 }
 0x165   : > { %2029 = vmatmul.mubr.msk.bf16.vlgmr.msra.gmra.mxu0 %vm543_vm3, %v2381_v16 }
 0x166   : > { %2040 = vmatprep.mubr.msk.bf16.mxu0 %vm2231_vm1, %v2230_v3 }
 0x221   : > { %v584_v21 = vpop.f32.mrf.mxu1 }
 0x222   : > { %v639_v23 = vmul.f32 0.35355338, %v584_v21 }
 0x223   : > { %v2024_v24 = vpop.f32.mrf.mxu1 }
 0x224   : > { %v641_v25 = vadd.f32 %v639_v23, %v2399_v22 }
 0x225   : > { %v587_v26 = vpop.f32.mrf.mxu1  ;;  %v633_v27 = vpop.f32.mrf.mxu0 }
 0x226   : > { %v640_v29 = vmul.f32 0.35355338, %v633_v27  ;;  %v643_v30 = vsel %vm543_vm3, %v641_v25, -inf }
 0x227   : > { %644 = vmax.xlane.f32.xlu1 %v643_v30  ;;  %v2025_v31 = vpop.f32.mrf.mxu1  ;;  %v2030_v32 = vpop.f32.mrf.mxu0 }
 0x228   : > { %v642_v33 = vadd.f32 %v640_v29, %v2405_v28 }
 0x229   : > { %v636_v34 = vpop.f32.mrf.mxu0 }
 0x22a   : > { %v646_v35 = vsel %vm543_vm3, %v642_v33, -inf }
 0x22b   : > { %647 = vmax.xlane.f32.xlu1 %v646_v35  ;;  %v2031_v36 = vpop.f32.mrf.mxu0 }
 0x23c   : > { %667 = vrot.lane.b32.xlu1 %v2378_v12, %s2233_s16 }
 0x240   : > { %716 = vrot.lane.b32.xlu1 %v2381_v16, %s2233_s16  ;;  %s2245_s16 = smov 24  }
 0x244   : > { %768 = vrot.lane.b32.xlu1 %v2378_v12, %s2234_s26 }
 0x2b0   : > { %v645_v37 = vpop.xlane.xlu1 %644 }
 0x2b1   : > { %v649_v38 = vsub.f32 %v641_v25, %v645_v37 }
 0x2b3   : > { %v651_v39 = vmul.f32 1.442695, %v649_v38 }
 0x2b4   : > { %v648_v40 = vpop.xlane.xlu1 %647 }
 0x2b5   : > { %2178 = vpow2.f32 %v651_v39  ;;  %v650_v41 = vsub.f32 %v642_v33, %v648_v40 }
 0x2b7   : > { %v653_v42 = vmul.f32 1.442695, %v650_v41 }
 0x2b8   : > { %v668_v43 = vpop.permute.xlu1 %667 }
 0x2b9   : > { %2180 = vpow2.f32 %v653_v42  ;;  %v674_v44 = vsel %vm672_vm4, %v668_v43, 0 }
 0x2ba   : > { %2033 = vmatpush3.bf16.msra.mxu1 %v674_v44 }
 0x2bb   : > { %2044 = vmatprep.subr.bf16.mxu1 %v2230_v3 }
 0x2bc   : > { %v717_v45 = vpop.permute.xlu1 %716 }
 0x2bd   : > { %v722_v46 = vsel %vm672_vm4, %v717_v45, 0 }
 0x2be   : > { %2039 = vmatpush3.bf16.msra.mxu0 %v722_v46 }
 0x2bf   : > { %2050 = vmatprep.subr.bf16.mxu0 %v2230_v3 }
 0x2c0   : > { %v769_v51 = vpop.permute.xlu1 %768 }
 0x2c1   : > { %v774_v58 = vsel %vm543_vm3, %v769_v51, 0 }
 0x2c2   : > { %v2179_v47 = vpop.eup %2178 }
 0x2c3   : > { %v655_v48 = vsel %vm543_vm3, %v2179_v47, 0.0 }
 0x2c4   : > { %656 = vadd.xlane.f32.xlu0 %v655_v48 }
 0x2c6   : > { %v2181_v49 = vpop.eup %2180 }
 0x2c7   : > { %v658_v50 = vsel %vm543_vm3, %v2181_v49, 0.0 }
 0x2c8   : > { %659 = vadd.xlane.f32.xlu1 %v658_v50 }
 0x2d9   : > { %818 = vrot.lane.b32.xlu1 %v2381_v16, %s2234_s26 }
 0x2da   : > { %766 = vrot.lane.b32.xlu0 %v2378_v12, %s2235_s27 }
 0x2dd   : > { %816 = vrot.lane.b32.xlu1 %v2381_v16, %s2235_s27 }
 0x34d   : > { %v657_v52 = vpop.xlane.xlu0 %656 }
 0x34e   : > { %2182 = vrcp.f32 %v657_v52 }
 0x351   : > { %v660_v53 = vpop.xlane.xlu1 %659  ;;  %v767_v63 = vpop.permute.xlu0 %766 }
 0x352   : > { %2184 = vrcp.f32 %v660_v53 }
 0x355   : > { %v819_v60 = vpop.permute.xlu1 %818 }
 0x356   : > { %v824_v62 = vsel %vm543_vm3, %v819_v60, 0 }
 0x359   : > { %v817_v0 = vpop.permute.xlu1 %816 }
 0x35b   : > { %v2183_v54 = vpop.eup %2182 }
 0x35c   : > { %v663_v55 = vmul.f32 %v2183_v54, %v2179_v47 }
 0x35e   : > { %v665_v56 = vpack.c.bf16 %v663_v55, %v663_v55 }
 0x35f   : > { %v2185_v57 = vpop.eup %2184 }
 0x360   : > { %2035 = vmatmul.mubr.msk.bf16.vlgmr.msra.gmra.mxu1 %vm543_vm3, %v665_v56  ;;  %v664_v59 = vmul.f32 %v2185_v57, %v2181_v49 }
 0x361   : > { %2045 = vmatpush3.bf16.xpose.msra.mxu1 %v774_v58  ;;  %2046 = vmatprep.mubr.msk.bf16.mxu1 %vm2231_vm1, %v2230_v3 }
 0x362   : > { %v666_v61 = vpack.c.bf16 %v664_v59, %v664_v59  ;;  %2056 = vmatprep.subr.bf16.mxu1 %v2230_v3 }
 0x364   : > { %2041 = vmatmul.mubr.msk.bf16.vlgmr.msra.gmra.mxu0 %vm543_vm3, %v666_v61 }
 0x365   : > { %2051 = vmatpush3.bf16.xpose.msra.mxu0 %v824_v62  ;;  %2052 = vmatprep.mubr.msk.bf16.mxu0 %vm2231_vm1, %v2230_v3 }
 0x366   : > { %2062 = vmatprep.subr.bf16.mxu0 %v2230_v3 }
 0x368   : > { %2047 = vmatmul.mubr.msk.bf16.vlgmr.msra.gmra.mxu1 %vm543_vm3, %v767_v63 }
 0x369   : > { %2058 = vmatprep.mubr.msk.bf16.mxu1 %vm2231_vm1, %v2230_v3 }
 0x36c   : > { %2053 = vmatmul.mubr.msk.bf16.vlgmr.msra.gmra.mxu0 %vm543_vm3, %v817_v0 }
 0x36d   : > { %2064 = vmatprep.mubr.msk.bf16.mxu0 %vm2231_vm1, %v2230_v3 }
 0x420   : > { %v710_v1 = vpop.f32.mrf.mxu1 }
 0x421   : > { %764 = vst.msk [vmem:[#allocation3] sm:$0xff] %vm543_vm3, %v710_v1 }
 0x422   : > { %v2036_v2 = vpop.f32.mrf.mxu1 }
 0x424   : > { %v713_v4 = vpop.f32.mrf.mxu1  ;;  %v758_v7 = vpop.f32.mrf.mxu0 }
 0x425   : > { %765 = vst.msk [vmem:[#allocation3 + $0x8] sm:$0xff] %vm543_vm3, %v758_v7 }
 0x426   : > { %v2037_v8 = vpop.f32.mrf.mxu1  ;;  %v2042_v9 = vpop.f32.mrf.mxu0 }
 0x428   : > { %v761_v10 = vpop.f32.mrf.mxu0  ;;  %v810_v11 = vpop.f32.mrf.mxu1 }
 0x429   : > { %v866_v13 = vmul.f32 0.35355338, %v810_v11 }
 0x42a   : > { %v2043_v14 = vpop.f32.mrf.mxu0  ;;  %v2048_v15 = vpop.f32.mrf.mxu1 }
 0x42b   : > { %v868_v17 = vadd.f32 %v866_v13, %v2399_v22 }
 0x42c   : > { %v813_v18 = vpop.f32.mrf.mxu1  ;;  %v860_v19 = vpop.f32.mrf.mxu0 }
 0x42d   : > { %v867_v20 = vmul.f32 0.35355338, %v860_v19  ;;  %v870_v21 = vsel %vm543_vm3, %v868_v17, -inf }
 0x42e   : > { %871 = vmax.xlane.f32.xlu1 %v870_v21  ;;  %v2049_v23 = vpop.f32.mrf.mxu1  ;;  %v2054_v24 = vpop.f32.mrf.mxu0 }
 0x42f   : > { %v869_v25 = vadd.f32 %v867_v20, %v2405_v28 }
 0x430   : > { %v863_v26 = vpop.f32.mrf.mxu0 }
 0x431   : > { %v873_v27 = vsel %vm543_vm3, %v869_v25, -inf }
 0x432   : > { %874 = vmax.xlane.f32.xlu0 %v873_v27  ;;  %v2055_v29 = vpop.f32.mrf.mxu0 }
 0x43f   : > { %894 = vrot.lane.b32.xlu1 %v2378_v12, %s2236_s29 }
 0x443   : > { %1003 = vrot.lane.b32.xlu1 %v2378_v12, %s2237_s19 }
 0x448   : > { %942 = vrot.lane.b32.xlu0 %v2381_v16, %s2236_s29 }
 0x44c   : > { %1001 = vrot.lane.b32.xlu0 %v2378_v12, %s2238_s22 }
 0x4b7   : > { %v872_v30 = vpop.xlane.xlu1 %871 }
 0x4b8   : > { %v876_v31 = vsub.f32 %v868_v17, %v872_v30 }
 0x4ba   : > { %v878_v32 = vmul.f32 1.442695, %v876_v31 }
 0x4bb   : > { %v895_v33 = vpop.permute.xlu1 %894  ;;  %v875_v34 = vpop.xlane.xlu0 %874 }
 0x4bc   : > { %2186 = vpow2.f32 %v878_v32  ;;  %v900_v35 = vsel %vm672_vm4, %v895_v33, 0  ;;  %v877_v36 = vsub.f32 %v869_v25, %v875_v34 }
 0x4bd   : > { %2057 = vmatpush3.bf16.msra.mxu1 %v900_v35 }
 0x4be   : > { %v880_v37 = vmul.f32 1.442695, %v877_v36  ;;  %2068 = vmatprep.subr.bf16.mxu1 %v2230_v3 }
 0x4bf   : > { %v943_v38 = vpop.permute.xlu0 %942  ;;  %v1004_v44 = vpop.permute.xlu1 %1003 }
 0x4c0   : > { %2188 = vpow2.f32 %v880_v37  ;;  %v948_v39 = vsel %vm672_vm4, %v943_v38, 0  ;;  %v1009_v51 = vsel %vm543_vm3, %v1004_v44, 0 }
 0x4c1   : > { %2063 = vmatpush3.bf16.msra.mxu0 %v948_v39 }
 0x4c2   : > { %2074 = vmatprep.subr.bf16.mxu0 %v2230_v3 }
 0x4c3   : > { %v1002_v56 = vpop.permute.xlu0 %1001 }
 0x4c9   : > { %v2187_v40 = vpop.eup %2186 }
 0x4ca   : > { %v882_v41 = vsel %vm543_vm3, %v2187_v40, 0.0 }
 0x4cb   : > { %883 = vadd.xlane.f32.xlu1 %v882_v41 }
 0x4cd   : > { %v2189_v42 = vpop.eup %2188 }
 0x4ce   : > { %v885_v43 = vsel %vm543_vm3, %v2189_v42, 0.0 }
 0x4cf   : > { %886 = vadd.xlane.f32.xlu1 %v885_v43 }
 0x4e0   : > { %1053 = vrot.lane.b32.xlu1 %v2381_v16, %s2237_s19 }
 0x4e4   : > { %1051 = vrot.lane.b32.xlu1 %v2381_v16, %s2238_s22 }
 0x554   : > { %v884_v45 = vpop.xlane.xlu1 %883 }
 0x555   : > { %2190 = vrcp.f32 %v884_v45 }
 0x558   : > { %v887_v46 = vpop.xlane.xlu1 %886 }
 0x559   : > { %2192 = vrcp.f32 %v887_v46 }
 0x55c   : > { %v1054_v53 = vpop.permute.xlu1 %1053 }
 0x55d   : > { %v1059_v55 = vsel %vm543_vm3, %v1054_v53, 0 }
 0x560   : > { %v1052_v57 = vpop.permute.xlu1 %1051 }
 0x562   : > { %v2191_v47 = vpop.eup %2190 }
 0x563   : > { %v890_v48 = vmul.f32 %v2191_v47, %v2187_v40 }
 0x565   : > { %v892_v49 = vpack.c.bf16 %v890_v48, %v890_v48 }
 0x566   : > { %v2193_v50 = vpop.eup %2192 }
 0x567   : > { %2059 = vmatmul.mubr.msk.bf16.vlgmr.msra.gmra.mxu1 %vm543_vm3, %v892_v49  ;;  %v891_v52 = vmul.f32 %v2193_v50, %v2189_v42 }
 0x568   : > { %2069 = vmatpush3.bf16.xpose.msra.mxu1 %v1009_v51  ;;  %2070 = vmatprep.mubr.msk.bf16.mxu1 %vm2231_vm1, %v2230_v3 }
 0x569   : > { %v893_v54 = vpack.c.bf16 %v891_v52, %v891_v52  ;;  %2080 = vmatprep.subr.bf16.mxu1 %v2230_v3 }
 0x56b   : > { %2065 = vmatmul.mubr.msk.bf16.vlgmr.msra.gmra.mxu0 %vm543_vm3, %v893_v54 }
 0x56c   : > { %2075 = vmatpush3.bf16.xpose.msra.mxu0 %v1059_v55  ;;  %2076 = vmatprep.mubr.msk.bf16.mxu0 %vm2231_vm1, %v2230_v3 }
 0x56d   : > { %2086 = vmatprep.subr.bf16.mxu0 %v2230_v3 }
 0x56f   : > { %2071 = vmatmul.mubr.msk.bf16.vlgmr.msra.gmra.mxu1 %vm543_vm3, %v1002_v56 }
 0x570   : > { %2082 = vmatprep.mubr.msk.bf16.mxu1 %vm2231_vm1, %v2230_v3 }
 0x573   : > { %2077 = vmatmul.mubr.msk.bf16.vlgmr.msra.gmra.mxu0 %vm543_vm3, %v1052_v57 }
 0x574   : > { %2088 = vmatprep.mubr.msk.bf16.mxu0 %vm2231_vm1, %v2230_v3 }
 0x627   : > { %v2472_v58 = vpop.f32.mrf.mxu1 }
 0x629   : > { %v2060_v59 = vpop.f32.mrf.mxu1 }
 0x62b   : > { %v939_v60 = vpop.f32.mrf.mxu1  ;;  %v2474_v61 = vpop.f32.mrf.mxu0 }
 0x62d   : > { %v2061_v62 = vpop.f32.mrf.mxu1  ;;  %v2066_v63 = vpop.f32.mrf.mxu0 }
 0x62f   : > { %v987_v0 = vpop.f32.mrf.mxu0  ;;  %v1045_v1 = vpop.f32.mrf.mxu1 }
 0x630   : > { %v1101_v2 = vmul.f32 0.35355338, %v1045_v1 }
 0x631   : > { %v2067_v4 = vpop.f32.mrf.mxu0  ;;  %v2072_v7 = vpop.f32.mrf.mxu1 }
 0x632   : > { %v1103_v8 = vadd.f32 %v1101_v2, %v2399_v22 }
 0x633   : > { %v1048_v9 = vpop.f32.mrf.mxu1  ;;  %v1095_v10 = vpop.f32.mrf.mxu0 }
 0x634   : > { %v1102_v11 = vmul.f32 0.35355338, %v1095_v10  ;;  %v1105_v13 = vsel %vm543_vm3, %v1103_v8, -inf }
 0x635   : > { %1106 = vmax.xlane.f32.xlu0 %v1105_v13  ;;  %v2073_v14 = vpop.f32.mrf.mxu1  ;;  %v2078_v15 = vpop.f32.mrf.mxu0 }
 0x636   : > { %v1104_v17 = vadd.f32 %v1102_v11, %v2405_v28 }
 0x637   : > { %v1098_v18 = vpop.f32.mrf.mxu0 }
 0x638   : > { %v1108_v19 = vsel %vm543_vm3, %v1104_v17, -inf }
 0x639   : > { %1109 = vmax.xlane.f32.xlu1 %v1108_v19  ;;  %v2079_v20 = vpop.f32.mrf.mxu0 }
 0x64a   : > { %1129 = vrot.lane.b32.xlu1 %v2378_v12, %s2239_s30 }
 0x64e   : > { %1238 = vrot.lane.b32.xlu1 %v2378_v12, %s2240_s12 }
 0x652   : > { %1288 = vrot.lane.b32.xlu1 %v2381_v16, %s2240_s12 }
 0x656   : > { %1286 = vrot.lane.b32.xlu1 %v2381_v16, %s2241_s17 }
 0x6be   : > { %v1107_v21 = vpop.xlane.xlu0 %1106 }
 0x6bf   : > { %v1111_v23 = vsub.f32 %v1103_v8, %v1107_v21 }
 0x6c1   : > { %v1113_v24 = vmul.f32 1.442695, %v1111_v23 }
 0x6c2   : > { %v1110_v25 = vpop.xlane.xlu1 %1109 }
 0x6c3   : > { %2194 = vpow2.f32 %v1113_v24  ;;  %v1112_v26 = vsub.f32 %v1104_v17, %v1110_v25 }
 0x6c5   : > { %v1115_v27 = vmul.f32 1.442695, %v1112_v26 }
 0x6c6   : > { %v1130_v29 = vpop.permute.xlu1 %1129 }
 0x6c7   : > { %2196 = vpow2.f32 %v1115_v27  ;;  %v1135_v30 = vsel %vm672_vm4, %v1130_v29, 0 }
 0x6c8   : > { %2081 = vmatpush3.bf16.msra.mxu1 %v1135_v30 }
 0x6c9   : > { %2092 = vmatprep.subr.bf16.mxu1 %v2230_v3 }
 0x6ca   : > { %v1239_v40 = vpop.permute.xlu1 %1238 }
 0x6cb   : > { %v1244_v44 = vsel %vm543_vm3, %v1239_v40, 0 }
 0x6ce   : > { %v1289_v46 = vpop.permute.xlu1 %1288 }
 0x6cf   : > { %v1294_v48 = vsel %vm543_vm3, %v1289_v46, 0 }
 0x6d0   : > { %v2195_v31 = vpop.eup %2194 }
 0x6d1   : > { %v1117_v32 = vsel %vm543_vm3, %v2195_v31, 0.0 }
 0x6d2   : > { %1118 = vadd.xlane.f32.xlu0 %v1117_v32  ;;  %v1287_v50 = vpop.permute.xlu1 %1286 }
 0x6d4   : > { %v2197_v33 = vpop.eup %2196 }
 0x6d5   : > { %v1120_v34 = vsel %vm543_vm3, %v2197_v33, 0.0 }
 0x6d6   : > { %1121 = vadd.xlane.f32.xlu0 %v1120_v34 }
 0x6ec   : > { %1177 = vrot.lane.b32.xlu0 %v2381_v16, %s2239_s30 }
 0x6f0   : > { %1236 = vrot.lane.b32.xlu0 %v2378_v12, %s2241_s17 }
 0x75b   : > { %v1119_v35 = vpop.xlane.xlu0 %1118 }
 0x75c   : > { %2198 = vrcp.f32 %v1119_v35 }
 0x75f   : > { %v1122_v36 = vpop.xlane.xlu0 %1121 }
 0x760   : > { %2200 = vrcp.f32 %v1122_v36 }
 0x763   : > { %v1178_v37 = vpop.permute.xlu0 %1177 }
 0x764   : > { %v1183_v38 = vsel %vm672_vm4, %v1178_v37, 0 }
 0x765   : > { %2087 = vmatpush3.bf16.msra.mxu0 %v1183_v38  ;;  %v2170_v38 = vld [vmem:[%s2326_s25 + $0x8] sm:$0xff]  }
 0x766   : > { %2098 = vmatprep.subr.bf16.mxu0 %v2230_v3 }
 0x767   : > { %v1237_v49 = vpop.permute.xlu0 %1236 }
 0x769   : > { %v2199_v39 = vpop.eup %2198 }
 0x76a   : > { %v1125_v41 = vmul.f32 %v2199_v39, %v2195_v31  ;;  %v2171_v39 = vld [vmem:[%s2326_s25] sm:$0xff]  }
 0x76c   : > { %v1127_v42 = vpack.c.bf16 %v1125_v41, %v1125_v41 }
 0x76d   : > { %v2201_v43 = vpop.eup %2200 }
 0x76e   : > { %2083 = vmatmul.mubr.msk.bf16.vlgmr.msra.gmra.mxu1 %vm543_vm3, %v1127_v42  ;;  %v1126_v45 = vmul.f32 %v2201_v43, %v2197_v33 }
 0x76f   : > { %2093 = vmatpush3.bf16.xpose.msra.mxu1 %v1244_v44  ;;  %2094 = vmatprep.mubr.msk.bf16.mxu1 %vm2231_vm1, %v2230_v3 }
 0x770   : > { %v1128_v47 = vpack.c.bf16 %v1126_v45, %v1126_v45  ;;  %2104 = vmatprep.subr.bf16.mxu1 %v2230_v3 }
 0x772   : > { %2089 = vmatmul.mubr.msk.bf16.vlgmr.msra.gmra.mxu0 %vm543_vm3, %v1128_v47 }
 0x773   : > { %2099 = vmatpush3.bf16.xpose.msra.mxu0 %v1294_v48  ;;  %2100 = vmatprep.mubr.msk.bf16.mxu0 %vm2231_vm1, %v2230_v3 }
 0x774   : > { %2110 = vmatprep.subr.bf16.mxu0 %v2230_v3 }
 0x776   : > { %2095 = vmatmul.mubr.msk.bf16.vlgmr.msra.gmra.mxu1 %vm543_vm3, %v1237_v49 }
 0x777   : > { %2106 = vmatprep.mubr.msk.bf16.mxu1 %vm2231_vm1, %v2230_v3 }
 0x77a   : > { %2101 = vmatmul.mubr.msk.bf16.vlgmr.msra.gmra.mxu0 %vm543_vm3, %v1287_v50 }
 0x77b   : > { %2112 = vmatprep.mubr.msk.bf16.mxu0 %vm2231_vm1, %v2230_v3 }
 0x82e   : > { %v1171_v51 = vpop.f32.mrf.mxu1 }
 0x830   : > { %v2084_v52 = vpop.f32.mrf.mxu1 }
 0x832   : > { %v1174_v53 = vpop.f32.mrf.mxu1  ;;  %v1219_v54 = vpop.f32.mrf.mxu0 }
 0x833   : > { %v1474_v53 = vlaneseq }
 0x834   : > { %v2085_v55 = vpop.f32.mrf.mxu1  ;;  %v2090_v56 = vpop.f32.mrf.mxu0 }
 0x835   : > { %v2543_v56 = vld [vmem:[%s2347_s24] sm:$0x3f] }
 0x836   : > { %v1222_v57 = vpop.f32.mrf.mxu0  ;;  %v1280_v59 = vpop.f32.mrf.mxu1 }
 0x837   : > { %v1336_v60 = vmul.f32 0.35355338, %v1280_v59 }
 0x838   : > { %v2091_v62 = vpop.f32.mrf.mxu0  ;;  %v2096_v63 = vpop.f32.mrf.mxu1 }
 0x839   : > { %v1338_v0 = vadd.f32 %v1336_v60, %v2399_v22 }
 0x83a   : > { %v1283_v1 = vpop.f32.mrf.mxu1  ;;  %v1330_v2 = vpop.f32.mrf.mxu0 }
 0x83b   : > { %v1337_v4 = vmul.f32 0.35355338, %v1330_v2  ;;  %v1340_v7 = vsel %vm543_vm3, %v1338_v0, -inf }
 0x83c   : > { %1341 = vmax.xlane.f32.xlu0 %v1340_v7  ;;  %v2097_v8 = vpop.f32.mrf.mxu1  ;;  %v2102_v9 = vpop.f32.mrf.mxu0 }
 0x83d   : > { %v1339_v10 = vadd.f32 %v1337_v4, %v2405_v28 }
 0x83e   : > { %v1333_v11 = vpop.f32.mrf.mxu0 }
 0x83f   : > { %v1343_v13 = vsel %vm543_vm3, %v1339_v10, -inf }
 0x840   : > { %1344 = vmax.xlane.f32.xlu1 %v1343_v13  ;;  %v2103_v14 = vpop.f32.mrf.mxu0 }
 0x851   : > { %1364 = vrot.lane.b32.xlu1 %v2378_v12, %s2242_s18 }
 0x855   : > { %992 = vrot.lane.b32.xlu1 %v2472_v58, %s2243_s21 }
 0x859   : > { %994 = vrot.lane.b32.xlu1 %v2474_v61, %s2243_s21 }
 0x85d   : > { %1229 = vrot.lane.b32.xlu1 %v1219_v54, %s2244_s23  ;;  %v2539_v54 = vshrl.u32 %v1474_v53, 7 }
 0x85f   : > { %v1476_v55 = vsub.s32 0, %v2539_v54 }
 0x861   : > { %v1477_v57 = vrot.slane %v2543_v56, %v1476_v55 }
 0x8c5   : > { %v1342_v22 = vpop.xlane.xlu0 %1341 }
 0x8c6   : > { %v1346_v15 = vsub.f32 %v1338_v0, %v1342_v22 }
 0x8c8   : > { %v1348_v17 = vmul.f32 1.442695, %v1346_v15 }
 0x8c9   : > { %v1345_v28 = vpop.xlane.xlu1 %1344 }
 0x8ca   : > { %2202 = vpow2.f32 %v1348_v17  ;;  %v1347_v18 = vsub.f32 %v1339_v10, %v1345_v28 }
 0x8cc   : > { %v1350_v19 = vmul.f32 1.442695, %v1347_v18  ;;  %v2173_v18 = vld [vmem:[%s2331_s28] sm:$0xff]  }
 0x8cd   : > { %v1365_v20 = vpop.permute.xlu1 %1364 }
 0x8ce   : > { %2204 = vpow2.f32 %v1350_v19  ;;  %v1370_v21 = vsel %vm672_vm4, %v1365_v20, 0  ;;  %v2174_v19 = vld [vmem:[%s2342_s20 + $0x18] sm:$0xff]  }
 0x8cf   : > { %2105 = vmatpush3.bf16.msra.mxu1 %v1370_v21 }
 0x8d0   : > { %2116 = vmatprep.subr.bf16.mxu1 %v2230_v3 }
 0x8d1   : > { %v993_v12 = vpop.permute.xlu1 %992 }
 0x8d2   : > { %999 = vst.msk [vmem:[#allocation3] sm:$0xff] %vm998_vm5, %v993_v12 }
 0x8d5   : > { %v995_v58 = vpop.permute.xlu1 %994 }
 0x8d6   : > { %1000 = vst.msk [vmem:[#allocation3 + $0x8] sm:$0xff] %vm998_vm5, %v995_v58 }
 0x8d7   : > { %v2203_v61 = vpop.eup %2202 }
 0x8d8   : > { %v1352_v23 = vsel %vm543_vm3, %v2203_v61, 0.0 }
 0x8d9   : > { %1353 = vadd.xlane.f32.xlu0 %v1352_v23  ;;  %v1230_v24 = vpop.permute.xlu1 %1229 }
 0x8da   : > { %1235 = vst.msk [vmem:[#allocation3 + $0x8] sm:$0xff] %vm1233_vm6, %v1230_v24  ;;  %v1565_v24 = vsub.s32 2, %v2539_v54 }
 0x8db   : > { %v2205_v25 = vpop.eup %2204 }
 0x8dc   : > { %v1355_v26 = vsel %vm543_vm3, %v2205_v25, 0.0 }
 0x8dd   : > { %1356 = vadd.xlane.f32.xlu0 %v1355_v26 }
 0x8f3   : > { %1412 = vrot.lane.b32.xlu0 %v2381_v16, %s2242_s18 }
 0x8f7   : > { %1227 = vrot.lane.b32.xlu0 %v1171_v51, %s2244_s23 }
 0x962   : > { %v1354_v27 = vpop.xlane.xlu0 %1353 }
 0x963   : > { %2206 = vrcp.f32 %v1354_v27  ;;  %v1566_v27 = vrot.slane %v2543_v56, %v1565_v24 }
 0x966   : > { %v1357_v29 = vpop.xlane.xlu0 %1356 }
 0x967   : > { %2208 = vrcp.f32 %v1357_v29  ;;  %v1571_v29 = vsub.s32 3, %v2539_v54 }
 0x96a   : > { %v1413_v30 = vpop.permute.xlu0 %1412 }
 0x96b   : > { %v1418_v31 = vsel %vm672_vm4, %v1413_v30, 0 }
 0x96c   : > { %2111 = vmatpush3.bf16.msra.mxu0 %v1418_v31 }
 0x96d   : > { %2124 = vmatprep.subr.bf16.mxu0 %v2230_v3 }
 0x96e   : > { %v1228_v32 = vpop.permute.xlu0 %1227 }
 0x96f   : > { %1234 = vst.msk [vmem:[#allocation3] sm:$0xff] %vm1233_vm6, %v1228_v32 }
 0x970   : > { %v2207_v33 = vpop.eup %2206 }
 0x971   : > { %v1360_v34 = vmul.f32 %v2207_v33, %v2203_v61  ;;  %v1572_v33 = vrot.slane %v2543_v56, %v1571_v29 }
 0x973   : > { %v1362_v35 = vpack.c.bf16 %v1360_v34, %v1360_v34 }
 0x974   : > { %v2209_v16 = vpop.eup %2208 }
 0x975   : > { %2107 = vmatmul.mubr.msk.bf16.vlgmr.msra.gmra.mxu1 %vm543_vm3, %v1362_v35  ;;  %v1361_v36 = vmul.f32 %v2209_v16, %v2205_v25 }
 0x976   : > { %2120 = vmatprep.mubr.msk.bf16.mxu1 %vm2231_vm1, %v2230_v3  ;;  %2117 = vmatpush3.bf16.msra.mxu1 %v2170_v38  ;;  %v2176_v38 = vld [vmem:[%s2342_s20 + $0x8] sm:$0xff]  }
 0x977   : > { %v1363_v37 = vpack.c.bf16 %v1361_v36, %v1361_v36  ;;  %2118 = vmatprep.subr.bf16.mxu1 %v2230_v3 }
 0x979   : > { %2113 = vmatmul.mubr.msk.bf16.vlgmr.msra.gmra.mxu0 %vm543_vm3, %v1363_v37  ;;  %v2175_v37 = vld [vmem:[%s2342_s20 + $0x10] sm:$0xff]  }
 0x97a   : > { %2128 = vmatprep.mubr.msk.bf16.mxu0 %vm2231_vm1, %v2230_v3  ;;  %2119 = vmatpush3.bf16.msra.mxu1 %v2171_v39  ;;  %v2177_v39 = vld [vmem:[%s2342_s20] sm:$0xff]  }
 0x97b   : > { %2132 = vmatprep.subr.bf16.mxu1 %v2230_v3 }
 0xa35   : > { %v1406_v40 = vpop.f32.mrf.mxu1 }
 0xa36   : > { %1462 = vrot.lane.b32.xlu0 %v1406_v40, %s2245_s16  ;;  %v1948_v40 = vld [vmem:[%s440_s11] ss:$0 sm:$0xff] }
 0xa37   : > { %v2108_v41 = vpop.f32.mrf.mxu1 }
 0xa39   : > { %v1409_v42 = vpop.f32.mrf.mxu1  ;;  %v1454_v43 = vpop.f32.mrf.mxu0 }
 0xa3a   : > { %1464 = vrot.lane.b32.xlu1 %v1454_v43, %s2245_s16 }
 0xa3b   : > { %v2109_v44 = vpop.f32.mrf.mxu1  ;;  %v2114_v45 = vpop.f32.mrf.mxu0 }
 0xa3d   : > { %v1457_v46 = vpop.f32.mrf.mxu0 }
 0xa3f   : > { %v2115_v47 = vpop.f32.mrf.mxu0 }
 0xaa8   : > { %v1463_v48 = vpop.permute.xlu0 %1462 }
 0xaa9   : > { %1469 = vst.msk [vmem:[#allocation3] sm:$0xff] %vm1468_vm7, %v1463_v48 }
 0xaac   : > { %v1465_v49 = vpop.permute.xlu1 %1464 }
 0xaad   : > { %1470 = vst.msk [vmem:[#allocation3 + $0x8] sm:$0xff] %vm1468_vm7, %v1465_v49 }
 0xab0   : > { %v1471_v50 = vld [vmem:[#allocation3] sm:$0xff] }
 0xab4   : > { %v1472_v51 = vld [vmem:[#allocation3 + $0x8] sm:$0xff] }
 0xab5   : > { %v1473_v52 = vpack.c.bf16 %v1472_v51, %v1471_v50 }
 0xab7   : > { %2121 = vmatmul.mubr.msk.bf16.vlgmr.msra.gmra.mxu1 %vm487_vm2, %v1473_v52 }
 0xab8   : > { %2140 = vmatprep.mubr.msk.bf16.mxu1 %vm2231_vm1, %v2230_v3  ;;  %2133 = vmatpush3.bf16.msra.mxu1 %v2174_v19  ;;  %v1765_v19 = vsub.s32 5, %v2539_v54 }
 0xab9   : > { %2134 = vmatprep.subr.bf16.mxu1 %v2230_v3 }
 0xabc   : > { %2135 = vmatpush3.bf16.msra.mxu1 %v2175_v37 }
 0xabd   : > { %2136 = vmatprep.subr.bf16.mxu1 %v2230_v3 }
 0xac0   : > { %2137 = vmatpush3.bf16.msra.mxu1 %v2176_v38 }
 0xac1   : > { %2138 = vmatprep.subr.bf16.mxu1 %v2230_v3 }
 0xac4   : > { %2139 = vmatpush3.bf16.msra.mxu1 %v2177_v39 }
 0xb77   : > { %v1527_v59 = vpop.f32.mrf.mxu1 }
 0xb78   : > { %v1528_v60 = vadd.f32 %v1527_v59, %v1477_v57 }
 0xb79   : > { %v2122_v62 = vpop.f32.mrf.mxu1 }
 0xb7a   : > { %v1534_v63 = vadd.f32 %v1528_v60, %v2360_v5 }
 0xb7b   : > { %v1530_v0 = vpop.f32.mrf.mxu1 }
 0xb7c   : > { %v1531_v1 = vadd.f32 %v1530_v0, %v1477_v57  ;;  %v1536_v2 = vsel %vm487_vm2, %v1534_v63, 0.0 }
 0xb7d   : > { %1537 = vadd.xlane.f32.xlu0 %v1536_v2  ;;  %v2123_v4 = vpop.f32.mrf.mxu1 }
 0xb7e   : > { %v1535_v7 = vadd.f32 %v1531_v1, %v2362_v6  ;;  %v2172_v6 = vld [vmem:[%s2331_s28 + $0x8] sm:$0xff]  }
 0xb7f   : > { %2125 = vmatpush3.bf16.msra.mxu0 %v2172_v6 }
 0xb80   : > { %v1539_v8 = vsel %vm487_vm2, %v1535_v7, 0.0  ;;  %2126 = vmatprep.subr.bf16.mxu0 %v2230_v3  ;;  %v1727_v3 = vsub.s32 1, %v2539_v54 }
 0xb81   : > { %1540 = vadd.xlane.f32.xlu1 %v1539_v8 }
 0xb82   : > { %v1728_v50 = vrot.slane %v2543_v56, %v1727_v3 }
 0xb83   : > { %2127 = vmatpush3.bf16.msra.mxu0 %v2173_v18  ;;  %v1759_v18 = vsub.s32 4, %v2539_v54 }
 0xc06   : > { %v1538_v9 = vpop.xlane.xlu0 %1537 }
 0xc07   : > { %v1543_v10 = vmul.f32 0.03125, %v1538_v9 }
 0xc09   : > { %v1545_v11 = vsub.f32 %v1534_v63, %v1543_v10 }
 0xc0a   : > { %v1541_v13 = vpop.xlane.xlu1 %1540 }
 0xc0b   : > { %v1544_v14 = vmul.f32 0.03125, %v1541_v13  ;;  %v1547_v5 = vmul.f32 %v1545_v11, %v1545_v11 }
 0xc0d   : > { %v1546_v22 = vsub.f32 %v1535_v7, %v1544_v14  ;;  %v1549_v15 = vsel %vm487_vm2, %v1547_v5, 0.0 }
 0xc0e   : > { %1550 = vadd.xlane.f32.xlu0 %v1549_v15 }
 0xc0f   : > { %v1548_v17 = vmul.f32 %v1546_v22, %v1546_v22 }
 0xc11   : > { %v1552_v28 = vsel %vm487_vm2, %v1548_v17, 0.0 }
 0xc12   : > { %1553 = vadd.xlane.f32.xlu0 %v1552_v28 }
 0xc97   : > { %v1551_v20 = vpop.xlane.xlu0 %1550 }
 0xc98   : > { %v1555_v21 = vmul.f32 0.03125, %v1551_v20  ;;  %v1760_v20 = vrot.slane %v2543_v56, %v1759_v18 }
 0xc9a   : > { %v1557_v12 = vadd.f32 1e-05, %v1555_v21 }
 0xc9b   : > { %v1554_v58 = vpop.xlane.xlu0 %1553 }
 0xc9c   : > { %2210 = vrsqrt.f32 %v1557_v12  ;;  %v1556_v61 = vmul.f32 0.03125, %v1554_v58  ;;  %v1766_v12 = vrot.slane %v2543_v56, %v1765_v19 }
 0xc9e   : > { %v1558_v23 = vadd.f32 1e-05, %v1556_v61 }
 0xca0   : > { %2212 = vrsqrt.f32 %v1558_v23 }
 0xca9   : > { %v2211_v25 = vpop.eup %2210 }
 0xcaa   : > { %v1561_v26 = vmul.f32 %v2211_v25, %v1545_v11 }
 0xcac   : > { %v1567_v32 = vmul.f32 %v1566_v27, %v1561_v26 }
 0xcad   : > { %v2213_v30 = vpop.eup %2212 }
 0xcae   : > { %v1562_v31 = vmul.f32 %v2213_v30, %v1546_v22  ;;  %v1573_v35 = vadd.f32 %v1572_v33, %v1567_v32 }
 0xcb0   : > { %v1568_v34 = vmul.f32 %v1566_v27, %v1562_v31 }
 0xcb2   : > { %v1574_v16 = vadd.f32 %v1572_v33, %v1568_v34 }
 0xcb4   : > { %v1579_v36 = vpack.c.bf16 %v1574_v16, %v1573_v35 }
 0xcb6   : > { %2129 = vmatmul.mubr.msk.bf16.vlgmr.msra.gmra.mxu0 %vm487_vm2, %v1579_v36 }
 0xd76   : > { %v1636_v41 = vpop.f32.mrf.mxu0 }
 0xd77   : > { %v1637_v43 = vadd.f32 %v1948_v40, %v1636_v41 }
 0xd78   : > { %v2130_v42 = vpop.f32.mrf.mxu0 }
 0xd79   : > { %v1643_v47 = vmax.f32 %v1637_v43, 0.0 }
 0xd7a   : > { %v1639_v44 = vpop.f32.mrf.mxu0 }
 0xd7b   : > { %v1640_v45 = vadd.f32 %v1948_v40, %v1639_v44 }
 0xd7c   : > { %v2131_v46 = vpop.f32.mrf.mxu0 }
 0xd7d   : > { %v1644_v48 = vmax.f32 %v1640_v45, 0.0 }
 0xd7f   : > { %v1653_v49 = vpack.c.bf16 %v1644_v48, %v1643_v47 }
 0xd81   : > { %2141 = vmatmul.mubr.msk.bf16.vlgmr.msra.gmra.mxu1 %vm1678_vm8, %v1653_v49 }
 0xe41   : > { %v1716_v51 = vpop.f32.mrf.mxu1 }
 0xe42   : > { %v1723_v52 = vadd.f32 %v1716_v51, %v1573_v35 }
 0xe43   : > { %v2142_v53 = vpop.f32.mrf.mxu1 }
 0xe44   : > { %v1729_v55 = vadd.f32 %v1728_v50, %v1723_v52 }
 0xe45   : > { %v1719_v57 = vpop.f32.mrf.mxu1 }
 0xe46   : > { %v1724_v59 = vadd.f32 %v1719_v57, %v1574_v16  ;;  %v1731_v60 = vsel %vm487_vm2, %v1729_v55, 0.0 }
 0xe47   : > { %1732 = vadd.xlane.f32.xlu1 %v1731_v60  ;;  %v2143_v62 = vpop.f32.mrf.mxu1 }
 0xe48   : > { %v1730_v63 = vadd.f32 %v1728_v50, %v1724_v59 }
 0xe4a   : > { %v1734_v0 = vsel %vm487_vm2, %v1730_v63, 0.0 }
 0xe4b   : > { %1735 = vadd.xlane.f32.xlu0 %v1734_v0 }
 0xed0   : > { %v1733_v1 = vpop.xlane.xlu1 %1732 }
 0xed1   : > { %v1737_v2 = vmul.f32 0.03125, %v1733_v1 }
 0xed3   : > { %v1739_v4 = vsub.f32 %v1729_v55, %v1737_v2 }
 0xed4   : > { %v1736_v7 = vpop.xlane.xlu0 %1735 }
 0xed5   : > { %v1738_v8 = vmul.f32 0.03125, %v1736_v7  ;;  %v1741_v9 = vmul.f32 %v1739_v4, %v1739_v4 }
 0xed7   : > { %v1740_v10 = vsub.f32 %v1730_v63, %v1738_v8  ;;  %v1743_v11 = vsel %vm487_vm2, %v1741_v9, 0.0 }
 0xed8   : > { %1744 = vadd.xlane.f32.xlu1 %v1743_v11 }
 0xed9   : > { %v1742_v13 = vmul.f32 %v1740_v10, %v1740_v10 }
 0xedb   : > { %v1746_v14 = vsel %vm487_vm2, %v1742_v13, 0.0 }
 0xedc   : > { %1747 = vadd.xlane.f32.xlu0 %v1746_v14 }
 0xf61   : > { %v1745_v5 = vpop.xlane.xlu1 %1744 }
 0xf62   : > { %v1749_v22 = vmul.f32 0.03125, %v1745_v5 }
 0xf64   : > { %v1751_v15 = vadd.f32 1e-05, %v1749_v22 }
 0xf65   : > { %v1748_v17 = vpop.xlane.xlu0 %1747 }
 0xf66   : > { %2214 = vrsqrt.f32 %v1751_v15  ;;  %v1750_v28 = vmul.f32 0.03125, %v1748_v17 }
 0xf68   : > { %v1752_v6 = vadd.f32 1e-05, %v1750_v28 }
 0xf6a   : > { %2216 = vrsqrt.f32 %v1752_v6 }
 0xf73   : > { %v2215_v21 = vpop.eup %2214 }
 0xf74   : > { %v1755_v58 = vmul.f32 %v2215_v21, %v1739_v4 }
 0xf76   : > { %v1761_v61 = vmul.f32 %v1760_v20, %v1755_v58 }
 0xf77   : > { %v2217_v23 = vpop.eup %2216 }
 0xf78   : > { %v1767_v24 = vadd.f32 %v1766_v12, %v1761_v61  ;;  %v1756_v25 = vmul.f32 %v2217_v23, %v1740_v10 }
 0xf7a   : > { %1769 = vst.msk [vmem:[#allocation2] sm:$0xff] %vm487_vm2, %v1767_v24  ;;  %v1762_v26 = vmul.f32 %v1760_v20, %v1756_v25  ;;  %1774 = sbr.rel (%p1957_p5) target bundleno = 4280 (0x10b8), region = 68 }
 0xf7c   : > { %v1768_v27 = vadd.f32 %v1766_v12, %v1762_v26 }
 0xf7e   : > { %1770 = vst.msk [vmem:[#allocation2 + $0x8] sm:$0xff] %vm487_vm2, %v1768_v27 }
 0xf7f   : > { %v1777_v54 = vsel %vm487_vm2, %v1767_v24, 0.0  ;;  %v1780_v29 = vsel %vm487_vm2, %v1768_v27, 0.0  ;;  %v1958_v45 = vld [vmem:[%s2615_s9] ss:$0 sm:$0xff]  ;;  %v1959_v47 = vld [vmem:[%s2615_s9 + $0x1] ss:$0 sm:$0xff] }
 0xf80   : > { %1778 = vadd.xlane.f32.xlu0 %v1777_v54 }
 0xf84   : > { %1781 = vadd.xlane.f32.xlu0 %v1780_v29 }
0x1009   : > { %v1779_v56 = vpop.xlane.xlu0 %1778 }
0x100a   : > { %v1783_v30 = vmul.f32 0.03125, %v1779_v56 }
0x100c   : > { %v1785_v31 = vsub.f32 %v1767_v24, %v1783_v30 }
0x100d   : > { %v1782_v32 = vpop.xlane.xlu0 %1781 }
0x100e   : > { %v1784_v33 = vmul.f32 0.03125, %v1782_v32  ;;  %v1787_v34 = vmul.f32 %v1785_v31, %v1785_v31 }
0x1010   : > { %v1786_v35 = vsub.f32 %v1768_v27, %v1784_v33  ;;  %v1789_v16 = vsel %vm487_vm2, %v1787_v34, 0.0 }
0x1011   : > { %1790 = vadd.xlane.f32.xlu1 %v1789_v16 }
0x1012   : > { %v1788_v36 = vmul.f32 %v1786_v35, %v1786_v35 }
0x1014   : > { %v1792_v37 = vsel %vm487_vm2, %v1788_v36, 0.0 }
0x1015   : > { %1793 = vadd.xlane.f32.xlu1 %v1792_v37 }
0x109a   : > { %v1791_v38 = vpop.xlane.xlu1 %1790 }
0x109b   : > { %v1795_v39 = vmul.f32 0.03125, %v1791_v38 }
0x109d   : > { %v1797_v40 = vadd.f32 1e-05, %v1795_v39 }
0x109e   : > { %v1794_v41 = vpop.xlane.xlu1 %1793 }
0x109f   : > { %2218 = vrsqrt.f32 %v1797_v40  ;;  %v1796_v42 = vmul.f32 0.03125, %v1794_v41 }
0x10a1   : > { %v1798_v43 = vadd.f32 1e-05, %v1796_v42 }
0x10a3   : > { %2220 = vrsqrt.f32 %v1798_v43 }
0x10ac   : > { %v2219_v44 = vpop.eup %2218 }
0x10ad   : > { %v1801_v46 = vmul.f32 %v2219_v44, %v1785_v31 }
0x10af   : > { %v1807_v48 = vmul.f32 %v1958_v45, %v1801_v46 }
0x10b0   : > { %v2221_v49 = vpop.eup %2220 }
0x10b1   : > { %v1813_v3 = vadd.f32 %v1959_v47, %v1807_v48  ;;  %v1802_v50 = vmul.f32 %v2221_v49, %v1786_v35 }
0x10b3   : > { %1815 = vst.msk [vmem:[%s2616_s10] sm:$0xff] %vm487_vm2, %v1813_v3  ;;  %v1808_v51 = vmul.f32 %v1958_v45, %v1802_v50 }
0x10b5   : > { %v1814_v52 = vadd.f32 %v1959_v47, %v1808_v51 }
0x10b7   : > { %1816 = vst.msk [vmem:[%s2616_s10 + $0x8] sm:$0xff] %vm487_vm2, %v1814_v52 }
0x10b8 PF: > { %s20_s13 = sadd.s32 1, %s2228_s13  }
0x10b9   : > { %p17_p6 = scmp.ge.s32.totalorder %s20_s13, 4  }
0x10bb   :  { %19 = sbr.rel (!%p17_p6) target bundleno = 1 (0x1), region = 112 }

// kernel: _lambda_.3
= control target key start
LH: loop header
LB: loop body
LE: loop exit
PB: predicated region body
PF: predicated region fallthrough
CT: control target
= control target key end

     0   :  { %s4181_s27 = smov 0   ;;  %s4779_s0 = inlined_call_operand.vmem [shape: f32[16,32], index: 0, kind: input, shape index: {}]   ;;  %s4780_s1 = inlined_call_operand.vmem [shape: f32[16,32], index: 1, kind: input, shape index: {}]   ;;  %s4781_s2 = inlined_call_operand.vmem [shape: f32[2,8,8], index: 2, kind: input, shape index: {}]   ;;  %s4782_s3 = inlined_call_operand.vmem [shape: f32[2,8,8], index: 3, kind: input, shape index: {}]   ;;  %s4783_s4 = inlined_call_operand.vmem [shape: bf16[2,32,96], index: 4, kind: input, shape index: {}]   ;;  %s4784_s5 = inlined_call_operand.vmem [shape: f32[2,1,96], index: 5, kind: input, shape index: {}]   ;;  %s4785_s6 = inlined_call_operand.vmem [shape: bf16[2,32,32], index: 6, kind: input, shape index: {}]   ;;  %s4786_s7 = inlined_call_operand.vmem [shape: bf16[2,32,32], index: 7, kind: input, shape index: {}]   ;;  %s4787_s8 = inlined_call_operand.vmem [shape: bf16[2,32,64], index: 8, kind: input, shape index: {}]   ;;  %s4788_s9 = inlined_call_operand.vmem [shape: f32[2,1,64], index: 9, kind: input, shape index: {}]   ;;  %s4789_s10 = inlined_call_operand.vmem [shape: bf16[2,32,32], index: 10, kind: input, shape index: {}]   ;;  %s4790_s11 = inlined_call_operand.vmem [shape: bf16[2,32,64], index: 11, kind: input, shape index: {}]   ;;  %s4791_s12 = inlined_call_operand.vmem [shape: f32[2,1,64], index: 12, kind: input, shape index: {}]   ;;  %s4792_s13 = inlined_call_operand.vmem [shape: bf16[2,64,32], index: 13, kind: input, shape index: {}]   ;;  %s4793_s14 = inlined_call_operand.vmem [shape: f32[2,10,32], index: 14, kind: input, shape index: {}]   ;;  %s4794_s15 = inlined_call_operand.vmem [shape: f32[2,32], index: 15, kind: input, shape index: {}]   ;;  %s4795_s16 = inlined_call_operand.vmem [shape: bf16[32,128], index: 16, kind: input, shape index: {}]   ;;  %s4796_s17 = inlined_call_operand.vmem [shape: f32[1,128], index: 17, kind: input, shape index: {}]   ;;  %s4797_s18 = inlined_call_operand.vmem [shape: f32[16,128], index: 18, kind: output, shape index: {}]  }
   0x1   :  { %4810 = sst [smem:[#allocation5_spill]] %s4779_s0 }
   0x2   :  { %4811 = sst [smem:[#allocation6_spill]] %s4780_s1 }
   0x3   :  { %4812 = sst [smem:[#allocation7_spill]] %s4781_s2 }
   0x4   :  { %4813 = sst [smem:[#allocation8_spill]] %s4783_s4 }
   0x5   :  { %4814 = sst [smem:[#allocation9_spill]] %s4785_s6 }
   0x6   :  { %4815 = sst [smem:[#allocation10_spill]] %s4786_s7 }
   0x7   :  { %4816 = sst [smem:[#allocation11_spill]] %s4787_s8 }
   0x8   :  { %4817 = sst [smem:[#allocation12_spill]] %s4794_s15 }
   0x9   :  { %4818 = sst [smem:[#allocation13_spill]] %s4796_s17 }
   0xa   :  { %4819 = sst [smem:[#allocation14_spill]] %s4797_s18 }
   0xb LB: > { %4820 = sst [smem:[#allocation4_spill]] %s4066_s27  ;;  %s4187_s28 = sadd.s32 4294967295, %s4066_s27   ;;  %s4066_s27 = sphi %s4181_s27, %s28_s27  }
   0xc   : > { %p3493_p0 = scmp.ge.s32.totalorder %s4066_s27, 1  ;;  %p601_p1 = scmp.lt.s32.totalorder %s4066_s27, 3 }
   0xe   : > { %p602_p2 = pnand %p3493_p0, %p601_p1 }
   0xf   : > { %p694_p3 = scmp.lt.s32.totalorder (!%p602_p2), %s4187_s28, 1  ;;  %s4821_s4 = sld [smem:[#allocation8_spill]] (!%p602_p2) }
  0x10   : > { %605 = sbr.rel (%p602_p2) target bundleno = 7590 (0x1da6), region = 92  ;;  %s4822_s6 = sld [smem:[#allocation9_spill]] (!%p602_p2) }
  0x11   : > { %s4823_s7 = sld [smem:[#allocation10_spill]] (!%p602_p2)  ;;  %p3510_p4 = scmp.ne.s32.totalorder (!%p602_p2), %s4187_s28, 0 }
  0x12   : > { %s4824_s8 = sld [smem:[#allocation11_spill]] (!%p602_p2) }
  0x15   : > { %s4193_s29 = scalar_select %p694_p3, %s4187_s28, 1 }
  0x16   : > { %s4825_s23 = sld [smem:[#allocation5_spill]] (!%p3510_p4) }
  0x17   : > { %s3578_s30 = sshll.u32 %s4193_s29, 4  ;;  %s3584_s18 = sshll.u32 %s4193_s29, 5 }
  0x18   : > { %s698_s22 = scalar_lea.vmem %s4821_s4, %s3578_s30  ;;  %s4206_s24 = scalar_lea.vmem %s4822_s6, %s3578_s30 }
  0x19   : > { %s4211_s27 = scalar_lea.vmem %s4823_s7, %s3578_s30  ;;  %s4216_s15 = scalar_lea.vmem %s4824_s8, %s3578_s30 }
  0x1a   : > { %s4225_s2 = scalar_lea.vmem %s4789_s10, %s3578_s30  ;;  %s4230_s25 = scalar_lea.vmem %s4790_s11, %s3578_s30 }
  0x1b   : > { %s4240_s0 = scalar_lea.vmem %s4793_s14, %s3578_s30  ;;  %s4245_s1 = scalar_lea.vmem %s4792_s13, %s3584_s18 }
  0x1c   : > { %747 = sbr.rel (%p3510_p4) target bundleno = 35 (0x23), region = 96 }
  0x21   : > { %v748_v0 = vld [vmem:[%s4825_s23] sm:$0xff]  ;;  %vm750_vm0 = vcmask 261120   ;;  %v749_v1 = vld [vmem:[%s4825_s23 + $0x8] sm:$0xff] }
  0x22   : > { %751 = vst.msk [vmem:[#allocation2] sm:$0xff] %vm750_vm0, %v748_v0  ;;  %752 = vst.msk [vmem:[#allocation2 + $0x8] sm:$0xff] %vm750_vm0, %v749_v1 }
  0x23 PF: > { %v3962_v2 = vld [vmem:[%s698_s22 + $0x8] sm:$0xff]   ;;  %v4068_v3 = vmov 0.0   ;;  %v3963_v4 = vld [vmem:[%s698_s22] sm:$0xff]   ;;  %vm4069_vm1 = vmmov 0   ;;  %vm783_vm2 = vcmask 261120   ;;  %s4826_s30 = scalar_lea.vmem %s4784_s5, %s4193_s29  ;;  %s4070_s22 = smov 96  }
  0x24   : > { %3676 = vmatprep.subr.bf16.mxu1 %v4068_v3  ;;  %3690 = vmatprep.subr.bf16.mxu0 %v4068_v3  ;;  %v3511_v8 = vld [vmem:[%s4826_s30] ss:$0 sm:$0xff]  ;;  %vm839_vm3 = vcmask 64512   ;;  %s4827_s19 = sld [smem:[#allocation7_spill]]  ;;  %s4071_s6 = smov 64   ;;  %vm968_vm4 = vcmask 1043456  }
  0x25   : > { %3677 = vmatpush3.bf16.msra.mxu1 %v3962_v2  ;;  %3680 = vmatprep.mubr.msk.bf16.mxu1 %vm4069_vm1, %v4068_v3  ;;  %s4072_s26 = smov 88   ;;  %s4073_s7 = smov 120   ;;  %vm1294_vm5 = vcmask 130112   ;;  %vm1529_vm6 = vcmask 195712   ;;  %vm1764_vm7 = vcmask 261312   ;;  %vm3144_vm8 = vcmask 523264  }
  0x26   : > { %3678 = vmatprep.subr.bf16.mxu1 %v4068_v3  ;;  %3692 = vmatprep.mubr.msk.bf16.mxu0 %vm4069_vm1, %v4068_v3  ;;  %s4074_s8 = smov 56   ;;  %s4075_s30 = smov 80  }
  0x27   : > { %s4076_s20 = smov 112   ;;  %s4077_s18 = smov 48  }
  0x28   : > { %s4078_s4 = smov 72   ;;  %s4079_s21 = smov 104  }
  0x29   : > { %v4258_v5 = vld [vmem:[#allocation2] sm:$0xff]  ;;  %v4260_v6 = vld [vmem:[#allocation2 + $0x8] sm:$0xff]  ;;  %3679 = vmatpush3.bf16.msra.mxu1 %v3963_v4  ;;  %s4829_s17 = scalar_lea.vmem %s4788_s9, %s4193_s29  ;;  %p3569_p5 = scmp.ne.s32.totalorder %s4187_s28, 1 }
  0x2a   : > { %v763_v7 = vpack.c.bf16 %v4260_v6, %v4258_v5  ;;  %3684 = vmatprep.subr.bf16.mxu1 %v4068_v3  ;;  %v4299_v22 = vld [vmem:[%s4827_s19] sm:$0xff]  ;;  %v4305_v28 = vld [vmem:[%s4827_s19 + $0x8] sm:$0xff] }
  0x2c   : > { %3681 = vmatmul.mubr.msk.bf16.vlgmr.msra.gmra.mxu1 %vm783_vm2, %v763_v7 }
  0x2d   : > { %3686 = vmatprep.mubr.msk.bf16.mxu1 %vm4069_vm1, %v4068_v3 }
  0xec   : > { %v821_v9 = vpop.f32.mrf.mxu1 }
  0xed   : > { %v822_v10 = vadd.f32 %v3511_v8, %v821_v9 }
  0xee   : > { %v3682_v11 = vpop.f32.mrf.mxu1 }
  0xef   : > { %v4276_v12 = vpack.c.bf16 %v822_v10, %v822_v10 }
  0xf0   : > { %v824_v13 = vpop.f32.mrf.mxu1 }
  0xf1   : > { %v825_v14 = vadd.f32 %v3511_v8, %v824_v13  ;;  %837 = vrot.lane.b32.xlu0 %v4276_v12, %s4070_s22 }
  0xf2   : > { %v3683_v15 = vpop.f32.mrf.mxu1 }
  0xf3   : > { %v4280_v16 = vpack.c.bf16 %v825_v14, %v825_v14 }
  0xf5   : > { %887 = vrot.lane.b32.xlu0 %v4280_v16, %s4070_s22 }
 0x163   : > { %v838_v17 = vpop.permute.xlu0 %837 }
 0x164   : > { %v844_v18 = vsel %vm839_vm3, %v838_v17, 0 }
 0x165   : > { %3685 = vmatpush3.bf16.xpose.msra.mxu1 %v844_v18 }
 0x166   : > { %3696 = vmatprep.subr.bf16.mxu1 %v4068_v3 }
 0x167   : > { %v888_v19 = vpop.permute.xlu0 %887 }
 0x168   : > { %v893_v20 = vsel %vm839_vm3, %v888_v19, 0 }
 0x169   : > { %3691 = vmatpush3.bf16.xpose.msra.mxu0 %v893_v20 }
 0x16a   : > { %3702 = vmatprep.subr.bf16.mxu0 %v4068_v3 }
 0x16c   : > { %3687 = vmatmul.mubr.msk.bf16.vlgmr.msra.gmra.mxu1 %vm839_vm3, %v4276_v12 }
 0x16d   : > { %3698 = vmatprep.mubr.msk.bf16.mxu1 %vm4069_vm1, %v4068_v3 }
 0x170   : > { %3693 = vmatmul.mubr.msk.bf16.vlgmr.msra.gmra.mxu0 %vm839_vm3, %v4280_v16 }
 0x171   : > { %3704 = vmatprep.mubr.msk.bf16.mxu0 %vm4069_vm1, %v4068_v3 }
 0x22c   : > { %v880_v21 = vpop.f32.mrf.mxu1 }
 0x22d   : > { %v935_v23 = vmul.f32 0.35355338, %v880_v21 }
 0x22e   : > { %v3688_v24 = vpop.f32.mrf.mxu1 }
 0x22f   : > { %v937_v25 = vadd.f32 %v935_v23, %v4299_v22 }
 0x230   : > { %v883_v26 = vpop.f32.mrf.mxu1  ;;  %v929_v27 = vpop.f32.mrf.mxu0 }
 0x231   : > { %v936_v29 = vmul.f32 0.35355338, %v929_v27  ;;  %v939_v30 = vsel %vm839_vm3, %v937_v25, -inf }
 0x232   : > { %v3694_v31 = vpop.f32.mrf.mxu0  ;;  %940 = vmax.xlane.f32.xlu1 %v939_v30  ;;  %v3689_v32 = vpop.f32.mrf.mxu1 }
 0x233   : > { %v938_v33 = vadd.f32 %v936_v29, %v4305_v28 }
 0x234   : > { %v932_v34 = vpop.f32.mrf.mxu0 }
 0x235   : > { %v942_v35 = vsel %vm839_vm3, %v938_v33, -inf }
 0x236   : > { %v3695_v36 = vpop.f32.mrf.mxu0  ;;  %943 = vmax.xlane.f32.xlu1 %v942_v35 }
 0x247   : > { %963 = vrot.lane.b32.xlu1 %v4276_v12, %s4071_s6 }
 0x24b   : > { %1012 = vrot.lane.b32.xlu1 %v4280_v16, %s4071_s6  ;;  %s4080_s6 = smov 40  }
 0x24f   : > { %1064 = vrot.lane.b32.xlu1 %v4276_v12, %s4072_s26 }
 0x2bb   : > { %v941_v37 = vpop.xlane.xlu1 %940 }
 0x2bc   : > { %v945_v38 = vsub.f32 %v937_v25, %v941_v37 }
 0x2be   : > { %v947_v39 = vmul.f32 1.442695, %v945_v38 }
 0x2bf   : > { %v944_v40 = vpop.xlane.xlu1 %943 }
 0x2c0   : > { %3978 = vpow2.f32 %v947_v39  ;;  %v946_v41 = vsub.f32 %v938_v33, %v944_v40 }
 0x2c2   : > { %v949_v42 = vmul.f32 1.442695, %v946_v41 }
 0x2c3   : > { %v964_v43 = vpop.permute.xlu1 %963 }
 0x2c4   : > { %3980 = vpow2.f32 %v949_v42  ;;  %v970_v44 = vsel %vm968_vm4, %v964_v43, 0 }
 0x2c5   : > { %3697 = vmatpush3.bf16.msra.mxu1 %v970_v44 }
 0x2c6   : > { %3708 = vmatprep.subr.bf16.mxu1 %v4068_v3 }
 0x2c7   : > { %v1013_v45 = vpop.permute.xlu1 %1012 }
 0x2c8   : > { %v1018_v46 = vsel %vm968_vm4, %v1013_v45, 0 }
 0x2c9   : > { %3703 = vmatpush3.bf16.msra.mxu0 %v1018_v46 }
 0x2ca   : > { %3714 = vmatprep.subr.bf16.mxu0 %v4068_v3 }
 0x2cb   : > { %v1065_v51 = vpop.permute.xlu1 %1064 }
 0x2cc   : > { %v1070_v58 = vsel %vm839_vm3, %v1065_v51, 0 }
 0x2cd   : > { %v3979_v47 = vpop.eup %3978 }
 0x2ce   : > { %v951_v48 = vsel %vm839_vm3, %v3979_v47, 0.0 }
 0x2cf   : > { %952 = vadd.xlane.f32.xlu0 %v951_v48 }
 0x2d1   : > { %v3981_v49 = vpop.eup %3980 }
 0x2d2   : > { %v954_v50 = vsel %vm839_vm3, %v3981_v49, 0.0 }
 0x2d3   : > { %955 = vadd.xlane.f32.xlu1 %v954_v50 }
 0x2e4   : > { %1114 = vrot.lane.b32.xlu1 %v4280_v16, %s4072_s26 }
 0x2e5   : > { %1062 = vrot.lane.b32.xlu0 %v4276_v12, %s4073_s7 }
 0x2e8   : > { %1112 = vrot.lane.b32.xlu1 %v4280_v16, %s4073_s7 }
 0x358   : > { %v953_v52 = vpop.xlane.xlu0 %952 }
 0x359   : > { %3982 = vrcp.f32 %v953_v52 }
 0x35c   : > { %v956_v53 = vpop.xlane.xlu1 %955  ;;  %v1063_v63 = vpop.permute.xlu0 %1062 }
 0x35d   : > { %3984 = vrcp.f32 %v956_v53 }
 0x360   : > { %v1115_v60 = vpop.permute.xlu1 %1114 }
 0x361   : > { %v1120_v62 = vsel %vm839_vm3, %v1115_v60, 0 }
 0x364   : > { %v1113_v0 = vpop.permute.xlu1 %1112 }
 0x366   : > { %v3983_v54 = vpop.eup %3982 }
 0x367   : > { %v959_v55 = vmul.f32 %v3983_v54, %v3979_v47 }
 0x369   : > { %v961_v56 = vpack.c.bf16 %v959_v55, %v959_v55 }
 0x36a   : > { %v3985_v57 = vpop.eup %3984 }
 0x36b   : > { %3699 = vmatmul.mubr.msk.bf16.vlgmr.msra.gmra.mxu1 %vm839_vm3, %v961_v56  ;;  %v960_v59 = vmul.f32 %v3985_v57, %v3981_v49 }
 0x36c   : > { %3709 = vmatpush3.bf16.xpose.msra.mxu1 %v1070_v58  ;;  %3710 = vmatprep.mubr.msk.bf16.mxu1 %vm4069_vm1, %v4068_v3 }
 0x36d   : > { %v962_v61 = vpack.c.bf16 %v960_v59, %v960_v59  ;;  %3720 = vmatprep.subr.bf16.mxu1 %v4068_v3 }
 0x36f   : > { %3705 = vmatmul.mubr.msk.bf16.vlgmr.msra.gmra.mxu0 %vm839_vm3, %v962_v61 }
 0x370   : > { %3715 = vmatpush3.bf16.xpose.msra.mxu0 %v1120_v62  ;;  %3716 = vmatprep.mubr.msk.bf16.mxu0 %vm4069_vm1, %v4068_v3 }
 0x371   : > { %3726 = vmatprep.subr.bf16.mxu0 %v4068_v3 }
 0x373   : > { %3711 = vmatmul.mubr.msk.bf16.vlgmr.msra.gmra.mxu1 %vm839_vm3, %v1063_v63 }
 0x374   : > { %3722 = vmatprep.mubr.msk.bf16.mxu1 %vm4069_vm1, %v4068_v3 }
 0x377   : > { %3717 = vmatmul.mubr.msk.bf16.vlgmr.msra.gmra.mxu0 %vm839_vm3, %v1113_v0 }
 0x378   : > { %3728 = vmatprep.mubr.msk.bf16.mxu0 %vm4069_vm1, %v4068_v3 }
 0x42b   : > { %v1006_v1 = vpop.f32.mrf.mxu1 }
 0x42c   : > { %1060 = vst.msk [vmem:[#allocation3] sm:$0xff] %vm839_vm3, %v1006_v1 }
 0x42d   : > { %v3700_v2 = vpop.f32.mrf.mxu1 }
 0x42f   : > { %v1009_v4 = vpop.f32.mrf.mxu1  ;;  %v1054_v7 = vpop.f32.mrf.mxu0 }
 0x430   : > { %1061 = vst.msk [vmem:[#allocation3 + $0x8] sm:$0xff] %vm839_vm3, %v1054_v7 }
 0x431   : > { %v3701_v8 = vpop.f32.mrf.mxu1  ;;  %v3706_v9 = vpop.f32.mrf.mxu0 }
 0x433   : > { %v1057_v10 = vpop.f32.mrf.mxu0  ;;  %v1106_v11 = vpop.f32.mrf.mxu1 }
 0x434   : > { %v1162_v13 = vmul.f32 0.35355338, %v1106_v11 }
 0x435   : > { %v3707_v14 = vpop.f32.mrf.mxu0  ;;  %v3712_v15 = vpop.f32.mrf.mxu1 }
 0x436   : > { %v1164_v17 = vadd.f32 %v1162_v13, %v4299_v22 }
 0x437   : > { %v1109_v18 = vpop.f32.mrf.mxu1  ;;  %v1156_v19 = vpop.f32.mrf.mxu0 }
 0x438   : > { %v1163_v20 = vmul.f32 0.35355338, %v1156_v19  ;;  %v1166_v21 = vsel %vm839_vm3, %v1164_v17, -inf }
 0x439   : > { %v3718_v23 = vpop.f32.mrf.mxu0  ;;  %1167 = vmax.xlane.f32.xlu1 %v1166_v21  ;;  %v3713_v24 = vpop.f32.mrf.mxu1 }
 0x43a   : > { %v1165_v25 = vadd.f32 %v1163_v20, %v4305_v28 }
 0x43b   : > { %v1159_v26 = vpop.f32.mrf.mxu0 }
 0x43c   : > { %v1169_v27 = vsel %vm839_vm3, %v1165_v25, -inf }
 0x43d   : > { %1170 = vmax.xlane.f32.xlu0 %v1169_v27  ;;  %v3719_v29 = vpop.f32.mrf.mxu0 }
 0x44a   : > { %1190 = vrot.lane.b32.xlu1 %v4276_v12, %s4074_s8 }
 0x44e   : > { %1299 = vrot.lane.b32.xlu1 %v4276_v12, %s4075_s30 }
 0x453   : > { %1238 = vrot.lane.b32.xlu0 %v4280_v16, %s4074_s8  ;;  %s4808_s8 = smov 8  }
 0x457   : > { %1297 = vrot.lane.b32.xlu0 %v4276_v12, %s4076_s20 }
 0x4c2   : > { %v1168_v30 = vpop.xlane.xlu1 %1167 }
 0x4c3   : > { %v1172_v31 = vsub.f32 %v1164_v17, %v1168_v30 }
 0x4c5   : > { %v1174_v32 = vmul.f32 1.442695, %v1172_v31 }
 0x4c6   : > { %v1171_v33 = vpop.xlane.xlu0 %1170  ;;  %v1191_v34 = vpop.permute.xlu1 %1190 }
 0x4c7   : > { %3986 = vpow2.f32 %v1174_v32  ;;  %v1173_v35 = vsub.f32 %v1165_v25, %v1171_v33  ;;  %v1196_v36 = vsel %vm968_vm4, %v1191_v34, 0 }
 0x4c8   : > { %3721 = vmatpush3.bf16.msra.mxu1 %v1196_v36 }
 0x4c9   : > { %v1176_v37 = vmul.f32 1.442695, %v1173_v35  ;;  %3732 = vmatprep.subr.bf16.mxu1 %v4068_v3 }
 0x4ca   : > { %v1239_v38 = vpop.permute.xlu0 %1238  ;;  %v1300_v44 = vpop.permute.xlu1 %1299 }
 0x4cb   : > { %3988 = vpow2.f32 %v1176_v37  ;;  %v1244_v39 = vsel %vm968_vm4, %v1239_v38, 0  ;;  %v1305_v51 = vsel %vm839_vm3, %v1300_v44, 0 }
 0x4cc   : > { %3727 = vmatpush3.bf16.msra.mxu0 %v1244_v39 }
 0x4cd   : > { %3738 = vmatprep.subr.bf16.mxu0 %v4068_v3 }
 0x4ce   : > { %v1298_v56 = vpop.permute.xlu0 %1297 }
 0x4d4   : > { %v3987_v40 = vpop.eup %3986 }
 0x4d5   : > { %v1178_v41 = vsel %vm839_vm3, %v3987_v40, 0.0 }
 0x4d6   : > { %1179 = vadd.xlane.f32.xlu1 %v1178_v41 }
 0x4d8   : > { %v3989_v42 = vpop.eup %3988 }
 0x4d9   : > { %v1181_v43 = vsel %vm839_vm3, %v3989_v42, 0.0 }
 0x4da   : > { %1182 = vadd.xlane.f32.xlu1 %v1181_v43 }
 0x4eb   : > { %1349 = vrot.lane.b32.xlu1 %v4280_v16, %s4075_s30 }
 0x4ef   : > { %1347 = vrot.lane.b32.xlu1 %v4280_v16, %s4076_s20 }
 0x55f   : > { %v1180_v45 = vpop.xlane.xlu1 %1179 }
 0x560   : > { %3990 = vrcp.f32 %v1180_v45 }
 0x563   : > { %v1183_v46 = vpop.xlane.xlu1 %1182 }
 0x564   : > { %3992 = vrcp.f32 %v1183_v46 }
 0x567   : > { %v1350_v53 = vpop.permute.xlu1 %1349 }
 0x568   : > { %v1355_v55 = vsel %vm839_vm3, %v1350_v53, 0 }
 0x56b   : > { %v1348_v57 = vpop.permute.xlu1 %1347 }
 0x56d   : > { %v3991_v47 = vpop.eup %3990 }
 0x56e   : > { %v1186_v48 = vmul.f32 %v3991_v47, %v3987_v40 }
 0x570   : > { %v1188_v49 = vpack.c.bf16 %v1186_v48, %v1186_v48 }
 0x571   : > { %v3993_v50 = vpop.eup %3992 }
 0x572   : > { %3723 = vmatmul.mubr.msk.bf16.vlgmr.msra.gmra.mxu1 %vm839_vm3, %v1188_v49  ;;  %v1187_v52 = vmul.f32 %v3993_v50, %v3989_v42 }
 0x573   : > { %3733 = vmatpush3.bf16.xpose.msra.mxu1 %v1305_v51  ;;  %3734 = vmatprep.mubr.msk.bf16.mxu1 %vm4069_vm1, %v4068_v3 }
 0x574   : > { %v1189_v54 = vpack.c.bf16 %v1187_v52, %v1187_v52  ;;  %3744 = vmatprep.subr.bf16.mxu1 %v4068_v3 }
 0x576   : > { %3729 = vmatmul.mubr.msk.bf16.vlgmr.msra.gmra.mxu0 %vm839_vm3, %v1189_v54 }
 0x577   : > { %3739 = vmatpush3.bf16.xpose.msra.mxu0 %v1355_v55  ;;  %3740 = vmatprep.mubr.msk.bf16.mxu0 %vm4069_vm1, %v4068_v3 }
 0x578   : > { %3750 = vmatprep.subr.bf16.mxu0 %v4068_v3 }
 0x57a   : > { %3735 = vmatmul.mubr.msk.bf16.vlgmr.msra.gmra.mxu1 %vm839_vm3, %v1298_v56 }
 0x57b   : > { %3746 = vmatprep.mubr.msk.bf16.mxu1 %vm4069_vm1, %v4068_v3 }
 0x57e   : > { %3741 = vmatmul.mubr.msk.bf16.vlgmr.msra.gmra.mxu0 %vm839_vm3, %v1348_v57 }
 0x57f   : > { %3752 = vmatprep.mubr.msk.bf16.mxu0 %vm4069_vm1, %v4068_v3 }
 0x632   : > { %v4380_v58 = vpop.f32.mrf.mxu1 }
 0x634   : > { %v3724_v59 = vpop.f32.mrf.mxu1 }
 0x636   : > { %v1235_v60 = vpop.f32.mrf.mxu1  ;;  %v4382_v61 = vpop.f32.mrf.mxu0 }
 0x638   : > { %v3725_v62 = vpop.f32.mrf.mxu1  ;;  %v3730_v63 = vpop.f32.mrf.mxu0 }
 0x63a   : > { %v1283_v0 = vpop.f32.mrf.mxu0  ;;  %v1341_v1 = vpop.f32.mrf.mxu1 }
 0x63b   : > { %v1397_v2 = vmul.f32 0.35355338, %v1341_v1 }
 0x63c   : > { %v3731_v4 = vpop.f32.mrf.mxu0  ;;  %v3736_v7 = vpop.f32.mrf.mxu1 }
 0x63d   : > { %v1399_v8 = vadd.f32 %v1397_v2, %v4299_v22 }
 0x63e   : > { %v1344_v9 = vpop.f32.mrf.mxu1  ;;  %v1391_v10 = vpop.f32.mrf.mxu0 }
 0x63f   : > { %v1398_v11 = vmul.f32 0.35355338, %v1391_v10  ;;  %v1401_v13 = vsel %vm839_vm3, %v1399_v8, -inf }
 0x640   : > { %v3742_v14 = vpop.f32.mrf.mxu0  ;;  %1402 = vmax.xlane.f32.xlu0 %v1401_v13  ;;  %v3737_v15 = vpop.f32.mrf.mxu1 }
 0x641   : > { %v1400_v17 = vadd.f32 %v1398_v11, %v4305_v28 }
 0x642   : > { %v1394_v18 = vpop.f32.mrf.mxu0 }
 0x643   : > { %v1404_v19 = vsel %vm839_vm3, %v1400_v17, -inf }
 0x644   : > { %1405 = vmax.xlane.f32.xlu1 %v1404_v19  ;;  %v3743_v20 = vpop.f32.mrf.mxu0 }
 0x655   : > { %1425 = vrot.lane.b32.xlu1 %v4276_v12, %s4077_s18 }
 0x659   : > { %1534 = vrot.lane.b32.xlu1 %v4276_v12, %s4078_s4 }
 0x65d   : > { %1584 = vrot.lane.b32.xlu1 %v4280_v16, %s4078_s4 }
 0x661   : > { %1582 = vrot.lane.b32.xlu1 %v4280_v16, %s4079_s21 }
 0x6c9   : > { %v1403_v21 = vpop.xlane.xlu0 %1402 }
 0x6ca   : > { %v1407_v23 = vsub.f32 %v1399_v8, %v1403_v21 }
 0x6cc   : > { %v1409_v24 = vmul.f32 1.442695, %v1407_v23 }
 0x6cd   : > { %v1406_v25 = vpop.xlane.xlu1 %1405 }
 0x6ce   : > { %3994 = vpow2.f32 %v1409_v24  ;;  %v1408_v26 = vsub.f32 %v1400_v17, %v1406_v25 }
 0x6d0   : > { %v1411_v27 = vmul.f32 1.442695, %v1408_v26 }
 0x6d1   : > { %v1426_v29 = vpop.permute.xlu1 %1425 }
 0x6d2   : > { %3996 = vpow2.f32 %v1411_v27  ;;  %v1431_v30 = vsel %vm968_vm4, %v1426_v29, 0 }
 0x6d3   : > { %3745 = vmatpush3.bf16.msra.mxu1 %v1431_v30 }
 0x6d4   : > { %3756 = vmatprep.subr.bf16.mxu1 %v4068_v3 }
 0x6d5   : > { %v1535_v40 = vpop.permute.xlu1 %1534 }
 0x6d6   : > { %v1540_v44 = vsel %vm839_vm3, %v1535_v40, 0 }
 0x6d9   : > { %v1585_v46 = vpop.permute.xlu1 %1584 }
 0x6da   : > { %v1590_v48 = vsel %vm839_vm3, %v1585_v46, 0 }
 0x6db   : > { %v3995_v31 = vpop.eup %3994 }
 0x6dc   : > { %v1413_v32 = vsel %vm839_vm3, %v3995_v31, 0.0 }
 0x6dd   : > { %1414 = vadd.xlane.f32.xlu0 %v1413_v32  ;;  %v1583_v50 = vpop.permute.xlu1 %1582 }
 0x6df   : > { %v3997_v33 = vpop.eup %3996 }
 0x6e0   : > { %v1416_v34 = vsel %vm839_vm3, %v3997_v33, 0.0 }
 0x6e1   : > { %1417 = vadd.xlane.f32.xlu0 %v1416_v34 }
 0x6f7   : > { %1473 = vrot.lane.b32.xlu0 %v4280_v16, %s4077_s18  ;;  %s4806_s18 = smov 16  }
 0x6fb   : > { %1532 = vrot.lane.b32.xlu0 %v4276_v12, %s4079_s21 }
 0x766   : > { %v1415_v35 = vpop.xlane.xlu0 %1414 }
 0x767   : > { %3998 = vrcp.f32 %v1415_v35 }
 0x76a   : > { %v1418_v36 = vpop.xlane.xlu0 %1417 }
 0x76b   : > { %4000 = vrcp.f32 %v1418_v36 }
 0x76e   : > { %v1474_v37 = vpop.permute.xlu0 %1473 }
 0x76f   : > { %v1479_v38 = vsel %vm968_vm4, %v1474_v37, 0 }
 0x770   : > { %3751 = vmatpush3.bf16.msra.mxu0 %v1479_v38  ;;  %v3964_v38 = vld [vmem:[%s4206_s24 + $0x8] sm:$0xff]  }
 0x771   : > { %3762 = vmatprep.subr.bf16.mxu0 %v4068_v3 }
 0x772   : > { %v1533_v49 = vpop.permute.xlu0 %1532 }
 0x774   : > { %v3999_v39 = vpop.eup %3998 }
 0x775   : > { %v1421_v41 = vmul.f32 %v3999_v39, %v3995_v31  ;;  %v3965_v39 = vld [vmem:[%s4206_s24] sm:$0xff]   ;;  %s4835_s24 = sld [smem:[#allocation13_spill]] (!%p3569_p5) }
 0x777   : > { %v1423_v42 = vpack.c.bf16 %v1421_v41, %v1421_v41 }
 0x778   : > { %v4001_v43 = vpop.eup %4000 }
 0x779   : > { %3747 = vmatmul.mubr.msk.bf16.vlgmr.msra.gmra.mxu1 %vm839_vm3, %v1423_v42  ;;  %v1422_v45 = vmul.f32 %v4001_v43, %v3997_v33 }
 0x77a   : > { %3757 = vmatpush3.bf16.xpose.msra.mxu1 %v1540_v44  ;;  %3758 = vmatprep.mubr.msk.bf16.mxu1 %vm4069_vm1, %v4068_v3 }
 0x77b   : > { %v1424_v47 = vpack.c.bf16 %v1422_v45, %v1422_v45  ;;  %3768 = vmatprep.subr.bf16.mxu1 %v4068_v3 }
 0x77d   : > { %3753 = vmatmul.mubr.msk.bf16.vlgmr.msra.gmra.mxu0 %vm839_vm3, %v1424_v47 }
 0x77e   : > { %3763 = vmatpush3.bf16.xpose.msra.mxu0 %v1590_v48  ;;  %3764 = vmatprep.mubr.msk.bf16.mxu0 %vm4069_vm1, %v4068_v3 }
 0x77f   : > { %3774 = vmatprep.subr.bf16.mxu0 %v4068_v3 }
 0x781   : > { %3759 = vmatmul.mubr.msk.bf16.vlgmr.msra.gmra.mxu1 %vm839_vm3, %v1533_v49 }
 0x782   : > { %3770 = vmatprep.mubr.msk.bf16.mxu1 %vm4069_vm1, %v4068_v3 }
 0x785   : > { %3765 = vmatmul.mubr.msk.bf16.vlgmr.msra.gmra.mxu0 %vm839_vm3, %v1583_v50 }
 0x786   : > { %3776 = vmatprep.mubr.msk.bf16.mxu0 %vm4069_vm1, %v4068_v3 }
 0x839   : > { %v1467_v51 = vpop.f32.mrf.mxu1 }
 0x83b   : > { %v3748_v52 = vpop.f32.mrf.mxu1 }
 0x83d   : > { %v1470_v53 = vpop.f32.mrf.mxu1  ;;  %v1515_v54 = vpop.f32.mrf.mxu0 }
 0x83e   : > { %v1770_v53 = vlaneseq }
 0x83f   : > { %v3749_v55 = vpop.f32.mrf.mxu1  ;;  %v3754_v56 = vpop.f32.mrf.mxu0 }
 0x840   : > { %v4465_v56 = vld [vmem:[%s4240_s0] sm:$0xff] }
 0x841   : > { %v1518_v57 = vpop.f32.mrf.mxu0  ;;  %v1576_v59 = vpop.f32.mrf.mxu1 }
 0x842   : > { %v1632_v60 = vmul.f32 0.35355338, %v1576_v59 }
 0x843   : > { %v3755_v62 = vpop.f32.mrf.mxu0  ;;  %v3760_v63 = vpop.f32.mrf.mxu1 }
 0x844   : > { %v1634_v0 = vadd.f32 %v1632_v60, %v4299_v22 }
 0x845   : > { %v1579_v1 = vpop.f32.mrf.mxu1  ;;  %v1626_v2 = vpop.f32.mrf.mxu0 }
 0x846   : > { %v1633_v4 = vmul.f32 0.35355338, %v1626_v2  ;;  %v1636_v7 = vsel %vm839_vm3, %v1634_v0, -inf }
 0x847   : > { %v3766_v8 = vpop.f32.mrf.mxu0  ;;  %1637 = vmax.xlane.f32.xlu0 %v1636_v7  ;;  %v3761_v9 = vpop.f32.mrf.mxu1 }
 0x848   : > { %v1635_v10 = vadd.f32 %v1633_v4, %v4305_v28 }
 0x849   : > { %v1629_v11 = vpop.f32.mrf.mxu0 }
 0x84a   : > { %v1639_v13 = vsel %vm839_vm3, %v1635_v10, -inf }
 0x84b   : > { %1640 = vmax.xlane.f32.xlu1 %v1639_v13  ;;  %v3767_v14 = vpop.f32.mrf.mxu0 }
 0x85c   : > { %1660 = vrot.lane.b32.xlu1 %v4276_v12, %s4080_s6 }
 0x860   : > { %1288 = vrot.lane.b32.xlu1 %v4380_v58, %s4808_s8 }
 0x864   : > { %1290 = vrot.lane.b32.xlu1 %v4382_v61, %s4808_s8 }
 0x868   : > { %1525 = vrot.lane.b32.xlu1 %v1515_v54, %s4806_s18  ;;  %v4461_v54 = vshrl.u32 %v1770_v53, 7 }
 0x86a   : > { %v1772_v55 = vsub.s32 0, %v4461_v54 }
 0x86c   : > { %v1773_v57 = vrot.slane %v4465_v56, %v1772_v55 }
 0x8d0   : > { %v1638_v22 = vpop.xlane.xlu0 %1637 }
 0x8d1   : > { %v1642_v28 = vsub.f32 %v1634_v0, %v1638_v22 }
 0x8d3   : > { %v1644_v15 = vmul.f32 1.442695, %v1642_v28 }
 0x8d4   : > { %v1641_v17 = vpop.xlane.xlu1 %1640 }
 0x8d5   : > { %4002 = vpow2.f32 %v1644_v15  ;;  %v1643_v18 = vsub.f32 %v1635_v10, %v1641_v17 }
 0x8d7   : > { %v1646_v19 = vmul.f32 1.442695, %v1643_v18  ;;  %v3967_v18 = vld [vmem:[%s4216_s15] sm:$0xff]  }
 0x8d8   : > { %v1661_v20 = vpop.permute.xlu1 %1660 }
 0x8d9   : > { %4004 = vpow2.f32 %v1646_v19  ;;  %v1666_v12 = vsel %vm968_vm4, %v1661_v20, 0 }
 0x8da   : > { %3769 = vmatpush3.bf16.msra.mxu1 %v1666_v12 }
 0x8db   : > { %3780 = vmatprep.subr.bf16.mxu1 %v4068_v3 }
 0x8dc   : > { %v1289_v58 = vpop.permute.xlu1 %1288 }
 0x8dd   : > { %1295 = vst.msk [vmem:[#allocation3] sm:$0xff] %vm1294_vm5, %v1289_v58  ;;  %v3968_v58 = vld [vmem:[%s4211_s27 + $0x8] sm:$0xff]  }
 0x8e0   : > { %v1291_v61 = vpop.permute.xlu1 %1290 }
 0x8e1   : > { %1296 = vst.msk [vmem:[#allocation3 + $0x8] sm:$0xff] %vm1294_vm5, %v1291_v61  ;;  %v3969_v61 = vld [vmem:[%s4211_s27] sm:$0xff]  }
 0x8e2   : > { %v4003_v21 = vpop.eup %4002 }
 0x8e3   : > { %v1648_v23 = vsel %vm839_vm3, %v4003_v21, 0.0 }
 0x8e4   : > { %v1526_v24 = vpop.permute.xlu1 %1525  ;;  %1649 = vadd.xlane.f32.xlu0 %v1648_v23 }
 0x8e5   : > { %1531 = vst.msk [vmem:[#allocation3 + $0x8] sm:$0xff] %vm1529_vm6, %v1526_v24 }
 0x8e6   : > { %v4005_v25 = vpop.eup %4004 }
 0x8e7   : > { %v1651_v26 = vsel %vm839_vm3, %v4005_v25, 0.0 }
 0x8e8   : > { %1652 = vadd.xlane.f32.xlu0 %v1651_v26 }
 0x8fe   : > { %1708 = vrot.lane.b32.xlu0 %v4280_v16, %s4080_s6  ;;  %s4804_s6 = smov 24  }
 0x902   : > { %1523 = vrot.lane.b32.xlu0 %v1467_v51, %s4806_s18 }
 0x96d   : > { %v1650_v27 = vpop.xlane.xlu0 %1649 }
 0x96e   : > { %4006 = vrcp.f32 %v1650_v27 }
 0x971   : > { %v1653_v29 = vpop.xlane.xlu0 %1652 }
 0x972   : > { %4008 = vrcp.f32 %v1653_v29  ;;  %v1861_v29 = vsub.s32 4, %v4461_v54 }
 0x975   : > { %v1709_v30 = vpop.permute.xlu0 %1708 }
 0x976   : > { %v1714_v31 = vsel %vm968_vm4, %v1709_v30, 0 }
 0x977   : > { %3775 = vmatpush3.bf16.msra.mxu0 %v1714_v31 }
 0x978   : > { %3788 = vmatprep.subr.bf16.mxu0 %v4068_v3 }
 0x979   : > { %v1524_v32 = vpop.permute.xlu0 %1523 }
 0x97a   : > { %1530 = vst.msk [vmem:[#allocation3] sm:$0xff] %vm1529_vm6, %v1524_v32  ;;  %v1862_v32 = vrot.slane %v4465_v56, %v1861_v29 }
 0x97b   : > { %v4007_v33 = vpop.eup %4006 }
 0x97c   : > { %v1656_v34 = vmul.f32 %v4007_v33, %v4003_v21  ;;  %v1867_v33 = vsub.s32 5, %v4461_v54 }
 0x97e   : > { %v1658_v16 = vpack.c.bf16 %v1656_v34, %v1656_v34 }
 0x97f   : > { %v4009_v35 = vpop.eup %4008 }
 0x980   : > { %3771 = vmatmul.mubr.msk.bf16.vlgmr.msra.gmra.mxu1 %vm839_vm3, %v1658_v16  ;;  %v1657_v36 = vmul.f32 %v4009_v35, %v4005_v25 }
 0x981   : > { %3784 = vmatprep.mubr.msk.bf16.mxu1 %vm4069_vm1, %v4068_v3  ;;  %3781 = vmatpush3.bf16.msra.mxu1 %v3964_v38 }
 0x982   : > { %v1659_v37 = vpack.c.bf16 %v1657_v36, %v1657_v36  ;;  %3782 = vmatprep.subr.bf16.mxu1 %v4068_v3  ;;  %v1868_v36 = vrot.slane %v4465_v56, %v1867_v33 }
 0x984   : > { %3777 = vmatmul.mubr.msk.bf16.vlgmr.msra.gmra.mxu0 %vm839_vm3, %v1659_v37 }
 0x985   : > { %3792 = vmatprep.mubr.msk.bf16.mxu0 %vm4069_vm1, %v4068_v3  ;;  %3783 = vmatpush3.bf16.msra.mxu1 %v3965_v39 }
 0x986   : > { %3796 = vmatprep.subr.bf16.mxu1 %v4068_v3  ;;  %3789 = vmatpush3.bf16.msra.mxu0 %v3968_v58 }
 0x987   : > { %3790 = vmatprep.subr.bf16.mxu0 %v4068_v3 }
 0x98a   : > { %3791 = vmatpush3.bf16.msra.mxu0 %v3969_v61 }
 0x98b   : > { %3804 = vmatprep.subr.bf16.mxu0 %v4068_v3 }
 0xa40   : > { %v1702_v40 = vpop.f32.mrf.mxu1 }
 0xa41   : > { %1758 = vrot.lane.b32.xlu0 %v1702_v40, %s4804_s6 }
 0xa42   : > { %v3772_v41 = vpop.f32.mrf.mxu1 }
 0xa43   : > { %v3537_v41 = vld [vmem:[%s4829_s17] ss:$0 sm:$0xff] }
 0xa44   : > { %v1705_v42 = vpop.f32.mrf.mxu1  ;;  %v1750_v43 = vpop.f32.mrf.mxu0 }
 0xa45   : > { %1760 = vrot.lane.b32.xlu1 %v1750_v43, %s4804_s6  ;;  %s4828_s6 = sld [smem:[#allocation6_spill]] }
 0xa46   : > { %v3773_v44 = vpop.f32.mrf.mxu1  ;;  %v3778_v45 = vpop.f32.mrf.mxu0 }
 0xa48   : > { %v1753_v46 = vpop.f32.mrf.mxu0 }
 0xa4a   : > { %v3779_v47 = vpop.f32.mrf.mxu0 }
 0xa4b   : > { %v755_v19 = vld [vmem:[%s4828_s6] sm:$0xff]  ;;  %v756_v20 = vld [vmem:[%s4828_s6 + $0x8] sm:$0xff] }
 0xa4c   : > { %v1940_v12 = vpack.c.bf16 %v756_v20, %v755_v19 }
 0xab3   : > { %v1759_v48 = vpop.permute.xlu0 %1758 }
 0xab4   : > { %1765 = vst.msk [vmem:[#allocation3] sm:$0xff] %vm1764_vm7, %v1759_v48 }
 0xab7   : > { %v1761_v49 = vpop.permute.xlu1 %1760 }
 0xab8   : > { %1766 = vst.msk [vmem:[#allocation3 + $0x8] sm:$0xff] %vm1764_vm7, %v1761_v49 }
 0xabb   : > { %v1767_v50 = vld [vmem:[#allocation3] sm:$0xff] }
 0xabf   : > { %v1768_v51 = vld [vmem:[#allocation3 + $0x8] sm:$0xff] }
 0xac0   : > { %v1769_v52 = vpack.c.bf16 %v1768_v51, %v1767_v50 }
 0xac2   : > { %3785 = vmatmul.mubr.msk.bf16.vlgmr.msra.gmra.mxu1 %vm783_vm2, %v1769_v52  ;;  %v1878_v52 = vsub.s32 1, %v4461_v54 }
 0xac3   : > { %3800 = vmatprep.mubr.msk.bf16.mxu1 %vm4069_vm1, %v4068_v3 }
 0xac4   : > { %v1879_v53 = vrot.slane %v4465_v56, %v1878_v52 }
 0xb82   : > { %v1823_v59 = vpop.f32.mrf.mxu1 }
 0xb83   : > { %v1824_v60 = vadd.f32 %v1823_v59, %v1773_v57 }
 0xb84   : > { %v3786_v62 = vpop.f32.mrf.mxu1 }
 0xb85   : > { %v1830_v63 = vadd.f32 %v1824_v60, %v4258_v5 }
 0xb86   : > { %v1826_v0 = vpop.f32.mrf.mxu1 }
 0xb87   : > { %v1827_v1 = vadd.f32 %v1826_v0, %v1773_v57  ;;  %v1832_v2 = vsel %vm783_vm2, %v1830_v63, 0.0 }
 0xb88   : > { %1833 = vadd.xlane.f32.xlu0 %v1832_v2  ;;  %v3787_v4 = vpop.f32.mrf.mxu1 }
 0xb89   : > { %v1831_v7 = vadd.f32 %v1827_v1, %v4260_v6  ;;  %v3966_v6 = vld [vmem:[%s4216_s15 + $0x8] sm:$0xff]  }
 0xb8a   : > { %3797 = vmatpush3.bf16.msra.mxu1 %v3966_v6 }
 0xb8b   : > { %v1835_v8 = vsel %vm783_vm2, %v1831_v7, 0.0  ;;  %3798 = vmatprep.subr.bf16.mxu1 %v4068_v3 }
 0xb8c   : > { %1836 = vadd.xlane.f32.xlu1 %v1835_v8 }
 0xb8e   : > { %3799 = vmatpush3.bf16.msra.mxu1 %v3967_v18 }
 0xb8f   : > { %3810 = vmatprep.subr.bf16.mxu1 %v4068_v3 }
 0xb91   : > { %3801 = vmatmul.mubr.msk.bf16.vlgmr.msra.gmra.mxu1 %vm783_vm2, %v1940_v12 }
 0xb92   : > { %3812 = vmatprep.mubr.msk.bf16.mxu1 %vm4069_vm1, %v4068_v3 }
 0xc11   : > { %v1834_v9 = vpop.xlane.xlu0 %1833 }
 0xc12   : > { %v1839_v10 = vmul.f32 0.03125, %v1834_v9 }
 0xc14   : > { %v1841_v11 = vsub.f32 %v1830_v63, %v1839_v10 }
 0xc15   : > { %v1837_v13 = vpop.xlane.xlu1 %1836 }
 0xc16   : > { %v1840_v14 = vmul.f32 0.03125, %v1837_v13  ;;  %v1843_v22 = vmul.f32 %v1841_v11, %v1841_v11 }
 0xc18   : > { %v1842_v5 = vsub.f32 %v1831_v7, %v1840_v14  ;;  %v1845_v28 = vsel %vm783_vm2, %v1843_v22, 0.0  ;;  %v4540_v7 = vld [vmem:[%s4782_s3] sm:$0xff]  ;;  %v4546_v14 = vld [vmem:[%s4782_s3 + $0x8] sm:$0xff] }
 0xc19   : > { %1846 = vadd.xlane.f32.xlu0 %v1845_v28 }
 0xc1a   : > { %v1844_v15 = vmul.f32 %v1842_v5, %v1842_v5 }
 0xc1c   : > { %v1848_v17 = vsel %vm783_vm2, %v1844_v15, 0.0 }
 0xc1d   : > { %1849 = vadd.xlane.f32.xlu0 %v1848_v17 }
 0xc51   : > { %v1997_v42 = vpop.f32.mrf.mxu1 }
 0xc52   : > { %v1998_v43 = vadd.f32 %v3537_v41, %v1997_v42 }
 0xc53   : > { %v3802_v44 = vpop.f32.mrf.mxu1 }
 0xc54   : > { %v4511_v45 = vpack.c.bf16 %v1998_v43, %v1998_v43 }
 0xc55   : > { %v2000_v46 = vpop.f32.mrf.mxu1 }
 0xc56   : > { %v2001_v47 = vadd.f32 %v3537_v41, %v2000_v46  ;;  %v2018_v48 = vsel %vm839_vm3, %v4511_v45, 0 }
 0xc57   : > { %v3803_v49 = vpop.f32.mrf.mxu1 }
 0xc58   : > { %v4515_v50 = vpack.c.bf16 %v2001_v47, %v2001_v47 }
 0xc5a   : > { %v2064_v51 = vsel %vm839_vm3, %v4515_v50, 0 }
 0xc5b   : > { %3811 = vmatpush3.bf16.xpose.msra.mxu1 %v2064_v51 }
 0xc5c   : > { %3822 = vmatprep.subr.bf16.mxu1 %v4068_v3 }
 0xca2   : > { %v1847_v21 = vpop.xlane.xlu0 %1846 }
 0xca3   : > { %v1851_v23 = vmul.f32 0.03125, %v1847_v21 }
 0xca5   : > { %v1853_v24 = vadd.f32 1e-05, %v1851_v23 }
 0xca6   : > { %v1850_v25 = vpop.xlane.xlu0 %1849 }
 0xca7   : > { %4010 = vrsqrt.f32 %v1853_v24  ;;  %v1852_v26 = vmul.f32 0.03125, %v1850_v25 }
 0xca9   : > { %v1854_v27 = vadd.f32 1e-05, %v1852_v26 }
 0xcab   : > { %4012 = vrsqrt.f32 %v1854_v27 }
 0xcb4   : > { %v4011_v30 = vpop.eup %4010 }
 0xcb5   : > { %v1857_v31 = vmul.f32 %v4011_v30, %v1841_v11 }
 0xcb7   : > { %v1863_v35 = vmul.f32 %v1862_v32, %v1857_v31 }
 0xcb8   : > { %v4013_v34 = vpop.eup %4012 }
 0xcb9   : > { %v1858_v16 = vmul.f32 %v4013_v34, %v1842_v5  ;;  %v4497_v38 = vadd.f32 %v1868_v36, %v1863_v35 }
 0xcbb   : > { %v1864_v37 = vmul.f32 %v1862_v32, %v1858_v16 }
 0xcbd   : > { %v4499_v39 = vadd.f32 %v1868_v36, %v1864_v37 }
 0xcbf   : > { %v1875_v40 = vpack.c.bf16 %v4499_v39, %v4497_v38 }
 0xcc1   : > { %3793 = vmatmul.mubr.msk.bf16.vlgmr.msra.gmra.mxu0 %vm783_vm2, %v1875_v40 }
 0xcc2   : > { %3806 = vmatprep.mubr.msk.bf16.mxu0 %vm4069_vm1, %v4068_v3  ;;  %3805 = vmatpush3.bf16.xpose.msra.mxu0 %v2018_v48 }
 0xcc3   : > { %3816 = vmatprep.subr.bf16.mxu0 %v4068_v3 }
 0xd81   : > { %v1929_v57 = vpop.f32.mrf.mxu0 }
 0xd82   : > { %v1930_v59 = vadd.f32 %v1929_v57, %v1879_v53 }
 0xd83   : > { %v3794_v60 = vpop.f32.mrf.mxu0 }
 0xd84   : > { %v4525_v62 = vpack.c.bf16 %v1930_v59, %v1930_v59 }
 0xd85   : > { %v1932_v63 = vpop.f32.mrf.mxu0 }
 0xd86   : > { %v1933_v0 = vadd.f32 %v1932_v63, %v1879_v53  ;;  %3807 = vmatmul.mubr.msk.bf16.vlgmr.msra.gmra.mxu0 %vm839_vm3, %v4525_v62 }
 0xd87   : > { %v3795_v1 = vpop.f32.mrf.mxu0  ;;  %3818 = vmatprep.mubr.msk.bf16.mxu0 %vm4069_vm1, %v4068_v3 }
 0xd88   : > { %v4531_v2 = vpack.c.bf16 %v1933_v0, %v1933_v0 }
 0xd8a   : > { %3813 = vmatmul.mubr.msk.bf16.vlgmr.msra.gmra.mxu1 %vm839_vm3, %v4531_v2 }
 0xd8b   : > { %3824 = vmatprep.mubr.msk.bf16.mxu1 %vm4069_vm1, %v4068_v3 }
 0xe46   : > { %v2054_v4 = vpop.f32.mrf.mxu0 }
 0xe47   : > { %v2106_v8 = vmul.f32 0.35355338, %v2054_v4 }
 0xe48   : > { %v3808_v9 = vpop.f32.mrf.mxu0 }
 0xe49   : > { %v2108_v10 = vadd.f32 %v2106_v8, %v4540_v7 }
 0xe4a   : > { %v2057_v11 = vpop.f32.mrf.mxu0  ;;  %v2100_v13 = vpop.f32.mrf.mxu1 }
 0xe4b   : > { %v2107_v22 = vmul.f32 0.35355338, %v2100_v13  ;;  %v2110_v5 = vsel %vm839_vm3, %v2108_v10, -inf }
 0xe4c   : > { %2111 = vmax.xlane.f32.xlu1 %v2110_v5  ;;  %v3809_v28 = vpop.f32.mrf.mxu0  ;;  %v3814_v15 = vpop.f32.mrf.mxu1 }
 0xe4d   : > { %v2109_v17 = vadd.f32 %v2107_v22, %v4546_v14 }
 0xe4e   : > { %v2103_v6 = vpop.f32.mrf.mxu1 }
 0xe4f   : > { %v2113_v18 = vsel %vm839_vm3, %v2109_v17, -inf }
 0xe50   : > { %2114 = vmax.xlane.f32.xlu0 %v2113_v18  ;;  %v3815_v19 = vpop.f32.mrf.mxu1 }
 0xe5d   : > { %2135 = vrot.lane.b32.xlu1 %v4511_v45, %s4070_s22 }
 0xed5   : > { %v2112_v20 = vpop.xlane.xlu1 %2111 }
 0xed6   : > { %v2116_v12 = vsub.f32 %v2108_v10, %v2112_v20 }
 0xed8   : > { %v2118_v58 = vmul.f32 1.442695, %v2116_v12 }
 0xed9   : > { %v2136_v61 = vpop.permute.xlu1 %2135  ;;  %v2115_v21 = vpop.xlane.xlu0 %2114 }
 0xeda   : > { %4014 = vpow2.f32 %v2118_v58  ;;  %v2141_v23 = vsel %vm968_vm4, %v2136_v61, 0  ;;  %v2117_v24 = vsub.f32 %v2109_v17, %v2115_v21 }
 0xedb   : > { %3817 = vmatpush3.bf16.msra.mxu0 %v2141_v23 }
 0xedc   : > { %v2120_v25 = vmul.f32 1.442695, %v2117_v24  ;;  %3828 = vmatprep.subr.bf16.mxu0 %v4068_v3 }
 0xede   : > { %4016 = vpow2.f32 %v2120_v25 }
 0xee7   : > { %v4015_v26 = vpop.eup %4014 }
 0xee8   : > { %v2122_v27 = vsel %vm839_vm3, %v4015_v26, 0.0 }
 0xee9   : > { %2123 = vadd.xlane.f32.xlu1 %v2122_v27 }
 0xeeb   : > { %v4017_v29 = vpop.eup %4016 }
 0xeec   : > { %v2125_v30 = vsel %vm839_vm3, %v4017_v29, 0.0 }
 0xeed   : > { %2126 = vadd.xlane.f32.xlu0 %v2125_v30 }
 0xefa   : > { %2237 = vrot.lane.b32.xlu1 %v4511_v45, %s4073_s7 }
 0xefe   : > { %2288 = vrot.lane.b32.xlu1 %v4515_v50, %s4073_s7 }
 0xf02   : > { %2286 = vrot.lane.b32.xlu1 %v4531_v2, %s4073_s7 }
 0xf03   : > { %2184 = vrot.lane.b32.xlu0 %v4515_v50, %s4070_s22  ;;  %s4830_s22 = smov 8  }
 0xf07   : > { %2235 = vrot.lane.b32.xlu0 %v4525_v62, %s4073_s7  ;;  %s4832_s7 = smov 24  }
 0xf72   : > { %v2124_v31 = vpop.xlane.xlu1 %2123 }
 0xf73   : > { %4018 = vrcp.f32 %v2124_v31 }
 0xf76   : > { %v2127_v32 = vpop.xlane.xlu0 %2126  ;;  %v2238_v35 = vpop.permute.xlu1 %2237 }
 0xf77   : > { %4020 = vrcp.f32 %v2127_v32  ;;  %v2243_v41 = vsel %vm839_vm3, %v2238_v35, 0 }
 0xf7a   : > { %v2185_v33 = vpop.permute.xlu0 %2184  ;;  %v2289_v43 = vpop.permute.xlu1 %2288 }
 0xf7b   : > { %v2190_v34 = vsel %vm968_vm4, %v2185_v33, 0  ;;  %v2294_v46 = vsel %vm839_vm3, %v2289_v43, 0 }
 0xf7c   : > { %3823 = vmatpush3.bf16.msra.mxu1 %v2190_v34 }
 0xf7d   : > { %3834 = vmatprep.subr.bf16.mxu1 %v4068_v3 }
 0xf7e   : > { %v2236_v47 = vpop.permute.xlu0 %2235  ;;  %v2287_v48 = vpop.permute.xlu1 %2286 }
 0xf80   : > { %v4019_v16 = vpop.eup %4018 }
 0xf81   : > { %v2130_v36 = vmul.f32 %v4019_v16, %v4015_v26 }
 0xf83   : > { %v2132_v37 = vpack.c.bf16 %v2130_v36, %v2130_v36 }
 0xf84   : > { %v4021_v40 = vpop.eup %4020 }
 0xf85   : > { %3819 = vmatmul.mubr.msk.bf16.vlgmr.msra.gmra.mxu0 %vm839_vm3, %v2132_v37  ;;  %v2131_v42 = vmul.f32 %v4021_v40, %v4017_v29 }
 0xf86   : > { %3829 = vmatpush3.bf16.xpose.msra.mxu0 %v2243_v41  ;;  %3830 = vmatprep.mubr.msk.bf16.mxu0 %vm4069_vm1, %v4068_v3 }
 0xf87   : > { %v2133_v44 = vpack.c.bf16 %v2131_v42, %v2131_v42  ;;  %3840 = vmatprep.subr.bf16.mxu0 %v4068_v3 }
 0xf89   : > { %3825 = vmatmul.mubr.msk.bf16.vlgmr.msra.gmra.mxu1 %vm839_vm3, %v2133_v44 }
 0xf8a   : > { %3835 = vmatpush3.bf16.xpose.msra.mxu1 %v2294_v46  ;;  %3836 = vmatprep.mubr.msk.bf16.mxu1 %vm4069_vm1, %v4068_v3 }
 0xf8b   : > { %3846 = vmatprep.subr.bf16.mxu1 %v4068_v3 }
 0xf8d   : > { %3831 = vmatmul.mubr.msk.bf16.vlgmr.msra.gmra.mxu0 %vm839_vm3, %v2236_v47 }
 0xf8e   : > { %3842 = vmatprep.mubr.msk.bf16.mxu0 %vm4069_vm1, %v4068_v3 }
 0xf91   : > { %3837 = vmatmul.mubr.msk.bf16.vlgmr.msra.gmra.mxu1 %vm839_vm3, %v2287_v48 }
 0xf92   : > { %3848 = vmatprep.mubr.msk.bf16.mxu1 %vm4069_vm1, %v4068_v3 }
0x1045   : > { %v2177_v49 = vpop.f32.mrf.mxu0 }
0x1046   : > { %2232 = vst.msk [vmem:[#allocation3] sm:$0xff] %vm839_vm3, %v2177_v49 }
0x1047   : > { %v3820_v51 = vpop.f32.mrf.mxu0 }
0x1049   : > { %v2180_v53 = vpop.f32.mrf.mxu0  ;;  %v2226_v57 = vpop.f32.mrf.mxu1 }
0x104a   : > { %2233 = vst.msk [vmem:[#allocation3 + $0x8] sm:$0xff] %vm839_vm3, %v2226_v57 }
0x104b   : > { %v3821_v59 = vpop.f32.mrf.mxu0  ;;  %v3826_v60 = vpop.f32.mrf.mxu1 }
0x104d   : > { %v2229_v63 = vpop.f32.mrf.mxu1  ;;  %v2279_v0 = vpop.f32.mrf.mxu0 }
0x104e   : > { %v2336_v1 = vmul.f32 0.35355338, %v2279_v0 }
0x104f   : > { %v3827_v4 = vpop.f32.mrf.mxu1  ;;  %v3832_v8 = vpop.f32.mrf.mxu0 }
0x1050   : > { %v2338_v9 = vadd.f32 %v2336_v1, %v4540_v7 }
0x1051   : > { %v2282_v10 = vpop.f32.mrf.mxu0  ;;  %v2330_v11 = vpop.f32.mrf.mxu1 }
0x1052   : > { %v2337_v13 = vmul.f32 0.35355338, %v2330_v11  ;;  %v2340_v22 = vsel %vm839_vm3, %v2338_v9, -inf }
0x1053   : > { %2341 = vmax.xlane.f32.xlu0 %v2340_v22  ;;  %v3833_v5 = vpop.f32.mrf.mxu0  ;;  %v3838_v28 = vpop.f32.mrf.mxu1 }
0x1054   : > { %v2339_v15 = vadd.f32 %v2337_v13, %v4546_v14 }
0x1055   : > { %v2333_v17 = vpop.f32.mrf.mxu1 }
0x1056   : > { %v2343_v6 = vsel %vm839_vm3, %v2339_v15, -inf }
0x1057   : > { %2344 = vmax.xlane.f32.xlu1 %v2343_v6  ;;  %v3839_v18 = vpop.f32.mrf.mxu1 }
0x1068   : > { %2364 = vrot.lane.b32.xlu1 %v4511_v45, %s4072_s26 }
0x106c   : > { %2472 = vrot.lane.b32.xlu1 %v4511_v45, %s4076_s20 }
0x1070   : > { %2522 = vrot.lane.b32.xlu1 %v4515_v50, %s4076_s20 }
0x1074   : > { %2520 = vrot.lane.b32.xlu1 %v4531_v2, %s4076_s20 }
0x10dc   : > { %v2342_v19 = vpop.xlane.xlu0 %2341 }
0x10dd   : > { %v2346_v20 = vsub.f32 %v2338_v9, %v2342_v19 }
0x10df   : > { %v2348_v12 = vmul.f32 1.442695, %v2346_v20 }
0x10e0   : > { %v2345_v58 = vpop.xlane.xlu1 %2344 }
0x10e1   : > { %4022 = vpow2.f32 %v2348_v12  ;;  %v2347_v61 = vsub.f32 %v2339_v15, %v2345_v58 }
0x10e3   : > { %v2350_v21 = vmul.f32 1.442695, %v2347_v61 }
0x10e4   : > { %v2365_v23 = vpop.permute.xlu1 %2364 }
0x10e5   : > { %4024 = vpow2.f32 %v2350_v21  ;;  %v2370_v24 = vsel %vm968_vm4, %v2365_v23, 0 }
0x10e6   : > { %3841 = vmatpush3.bf16.msra.mxu0 %v2370_v24 }
0x10e7   : > { %3852 = vmatprep.subr.bf16.mxu0 %v4068_v3 }
0x10e8   : > { %v2473_v16 = vpop.permute.xlu1 %2472 }
0x10e9   : > { %v2478_v40 = vsel %vm839_vm3, %v2473_v16, 0 }
0x10ec   : > { %v2523_v42 = vpop.permute.xlu1 %2522 }
0x10ed   : > { %v2528_v44 = vsel %vm839_vm3, %v2523_v42, 0 }
0x10ee   : > { %v4023_v25 = vpop.eup %4022 }
0x10ef   : > { %v2352_v26 = vsel %vm839_vm3, %v4023_v25, 0.0 }
0x10f0   : > { %2353 = vadd.xlane.f32.xlu0 %v2352_v26  ;;  %v2521_v47 = vpop.permute.xlu1 %2520 }
0x10f2   : > { %v4025_v27 = vpop.eup %4024 }
0x10f3   : > { %v2355_v29 = vsel %vm839_vm3, %v4025_v27, 0.0 }
0x10f4   : > { %2356 = vadd.xlane.f32.xlu0 %v2355_v29 }
0x110a   : > { %2412 = vrot.lane.b32.xlu0 %v4515_v50, %s4072_s26  ;;  %s4831_s26 = smov 16  }
0x110e   : > { %2470 = vrot.lane.b32.xlu0 %v4525_v62, %s4076_s20 }
0x1179   : > { %v2354_v30 = vpop.xlane.xlu0 %2353 }
0x117a   : > { %4026 = vrcp.f32 %v2354_v30 }
0x117d   : > { %v2357_v31 = vpop.xlane.xlu0 %2356 }
0x117e   : > { %4028 = vrcp.f32 %v2357_v31 }
0x1181   : > { %v2413_v32 = vpop.permute.xlu0 %2412 }
0x1182   : > { %v2418_v33 = vsel %vm968_vm4, %v2413_v32, 0 }
0x1183   : > { %3847 = vmatpush3.bf16.msra.mxu1 %v2418_v33 }
0x1184   : > { %3858 = vmatprep.subr.bf16.mxu1 %v4068_v3 }
0x1185   : > { %v2471_v46 = vpop.permute.xlu0 %2470 }
0x1187   : > { %v4027_v34 = vpop.eup %4026 }
0x1188   : > { %v2360_v35 = vmul.f32 %v4027_v34, %v4023_v25 }
0x118a   : > { %v2362_v36 = vpack.c.bf16 %v2360_v35, %v2360_v35 }
0x118b   : > { %v4029_v37 = vpop.eup %4028 }
0x118c   : > { %3843 = vmatmul.mubr.msk.bf16.vlgmr.msra.gmra.mxu0 %vm839_vm3, %v2362_v36  ;;  %v2361_v41 = vmul.f32 %v4029_v37, %v4025_v27 }
0x118d   : > { %3853 = vmatpush3.bf16.xpose.msra.mxu0 %v2478_v40  ;;  %3854 = vmatprep.mubr.msk.bf16.mxu0 %vm4069_vm1, %v4068_v3 }
0x118e   : > { %v2363_v43 = vpack.c.bf16 %v2361_v41, %v2361_v41  ;;  %3864 = vmatprep.subr.bf16.mxu0 %v4068_v3 }
0x1190   : > { %3849 = vmatmul.mubr.msk.bf16.vlgmr.msra.gmra.mxu1 %vm839_vm3, %v2363_v43 }
0x1191   : > { %3859 = vmatpush3.bf16.xpose.msra.mxu1 %v2528_v44  ;;  %3860 = vmatprep.mubr.msk.bf16.mxu1 %vm4069_vm1, %v4068_v3 }
0x1192   : > { %3870 = vmatprep.subr.bf16.mxu1 %v4068_v3 }
0x1194   : > { %3855 = vmatmul.mubr.msk.bf16.vlgmr.msra.gmra.mxu0 %vm839_vm3, %v2471_v46 }
0x1195   : > { %3866 = vmatprep.mubr.msk.bf16.mxu0 %vm4069_vm1, %v4068_v3 }
0x1198   : > { %3861 = vmatmul.mubr.msk.bf16.vlgmr.msra.gmra.mxu1 %vm839_vm3, %v2521_v47 }
0x1199   : > { %3872 = vmatprep.mubr.msk.bf16.mxu1 %vm4069_vm1, %v4068_v3 }
0x124c   : > { %v4625_v48 = vpop.f32.mrf.mxu0 }
0x124e   : > { %v3844_v49 = vpop.f32.mrf.mxu0 }
0x1250   : > { %v2409_v51 = vpop.f32.mrf.mxu0  ;;  %v4627_v53 = vpop.f32.mrf.mxu1 }
0x1252   : > { %v3845_v57 = vpop.f32.mrf.mxu0  ;;  %v3850_v59 = vpop.f32.mrf.mxu1 }
0x1254   : > { %v2457_v60 = vpop.f32.mrf.mxu1  ;;  %v2514_v63 = vpop.f32.mrf.mxu0 }
0x1255   : > { %v2570_v0 = vmul.f32 0.35355338, %v2514_v63 }
0x1256   : > { %v3851_v1 = vpop.f32.mrf.mxu1  ;;  %v3856_v4 = vpop.f32.mrf.mxu0 }
0x1257   : > { %v2572_v8 = vadd.f32 %v2570_v0, %v4540_v7 }
0x1258   : > { %v2517_v9 = vpop.f32.mrf.mxu0  ;;  %v2564_v10 = vpop.f32.mrf.mxu1 }
0x1259   : > { %v2571_v11 = vmul.f32 0.35355338, %v2564_v10  ;;  %v2574_v13 = vsel %vm839_vm3, %v2572_v8, -inf }
0x125a   : > { %2575 = vmax.xlane.f32.xlu0 %v2574_v13  ;;  %v3857_v22 = vpop.f32.mrf.mxu0  ;;  %v3862_v5 = vpop.f32.mrf.mxu1 }
0x125b   : > { %v2573_v28 = vadd.f32 %v2571_v11, %v4546_v14 }
0x125c   : > { %v2567_v15 = vpop.f32.mrf.mxu1 }
0x125d   : > { %v2577_v17 = vsel %vm839_vm3, %v2573_v28, -inf }
0x125e   : > { %2578 = vmax.xlane.f32.xlu1 %v2577_v17  ;;  %v3863_v6 = vpop.f32.mrf.mxu1 }
0x126f   : > { %2598 = vrot.lane.b32.xlu1 %v4511_v45, %s4075_s30 }
0x1273   : > { %2706 = vrot.lane.b32.xlu1 %v4511_v45, %s4079_s21 }
0x1277   : > { %2756 = vrot.lane.b32.xlu1 %v4515_v50, %s4079_s21 }
0x127b   : > { %2754 = vrot.lane.b32.xlu1 %v4531_v2, %s4079_s21 }
0x12e3   : > { %v2576_v18 = vpop.xlane.xlu0 %2575 }
0x12e4   : > { %v2580_v19 = vsub.f32 %v2572_v8, %v2576_v18 }
0x12e6   : > { %v2582_v20 = vmul.f32 1.442695, %v2580_v19 }
0x12e7   : > { %v2579_v12 = vpop.xlane.xlu1 %2578 }
0x12e8   : > { %4030 = vpow2.f32 %v2582_v20  ;;  %v2581_v58 = vsub.f32 %v2573_v28, %v2579_v12 }
0x12ea   : > { %v2584_v61 = vmul.f32 1.442695, %v2581_v58 }
0x12eb   : > { %v2599_v21 = vpop.permute.xlu1 %2598 }
0x12ec   : > { %4032 = vpow2.f32 %v2584_v61  ;;  %v2604_v23 = vsel %vm968_vm4, %v2599_v21, 0 }
0x12ed   : > { %3865 = vmatpush3.bf16.msra.mxu0 %v2604_v23 }
0x12ee   : > { %3876 = vmatprep.subr.bf16.mxu0 %v4068_v3 }
0x12ef   : > { %v2707_v33 = vpop.permute.xlu1 %2706 }
0x12f0   : > { %v2712_v36 = vsel %vm839_vm3, %v2707_v33, 0 }
0x12f3   : > { %v2757_v37 = vpop.permute.xlu1 %2756 }
0x12f4   : > { %v2762_v41 = vsel %vm839_vm3, %v2757_v37, 0 }
0x12f5   : > { %v4031_v24 = vpop.eup %4030 }
0x12f6   : > { %v2586_v25 = vsel %vm839_vm3, %v4031_v24, 0.0 }
0x12f7   : > { %2587 = vadd.xlane.f32.xlu0 %v2586_v25  ;;  %v2755_v43 = vpop.permute.xlu1 %2754 }
0x12f9   : > { %v4033_v26 = vpop.eup %4032 }
0x12fa   : > { %v2589_v2 = vsel %vm839_vm3, %v4033_v26, 0.0 }
0x12fb   : > { %2590 = vadd.xlane.f32.xlu0 %v2589_v2 }
0x1311   : > { %2646 = vrot.lane.b32.xlu0 %v4515_v50, %s4075_s30  ;;  %s4833_s30 = scalar_lea.vmem %s4791_s12, %s4193_s29 }
0x1315   : > { %2704 = vrot.lane.b32.xlu0 %v4525_v62, %s4079_s21  ;;  %s4834_s21 = sld [smem:[#allocation12_spill]] (!%p3569_p5) }
0x1380   : > { %v2588_v27 = vpop.xlane.xlu0 %2587 }
0x1381   : > { %4034 = vrcp.f32 %v2588_v27 }
0x1384   : > { %v2591_v29 = vpop.xlane.xlu0 %2590 }
0x1385   : > { %4036 = vrcp.f32 %v2591_v29 }
0x1388   : > { %v2647_v30 = vpop.permute.xlu0 %2646 }
0x1389   : > { %v2652_v31 = vsel %vm968_vm4, %v2647_v30, 0 }
0x138a   : > { %3871 = vmatpush3.bf16.msra.mxu1 %v2652_v31 }
0x138b   : > { %3882 = vmatprep.subr.bf16.mxu1 %v4068_v3 }
0x138c   : > { %v2705_v42 = vpop.permute.xlu0 %2704 }
0x138e   : > { %v4035_v32 = vpop.eup %4034 }
0x138f   : > { %v2594_v34 = vmul.f32 %v4035_v32, %v4031_v24 }
0x1391   : > { %v2596_v16 = vpack.c.bf16 %v2594_v34, %v2594_v34 }
0x1392   : > { %v4037_v35 = vpop.eup %4036 }
0x1393   : > { %3867 = vmatmul.mubr.msk.bf16.vlgmr.msra.gmra.mxu0 %vm839_vm3, %v2596_v16  ;;  %v2595_v62 = vmul.f32 %v4037_v35, %v4033_v26  ;;  %v3970_v16 = vld [vmem:[%s4225_s2 + $0x8] sm:$0xff]   ;;  %v3971_v35 = vld [vmem:[%s4225_s2] sm:$0xff]  }
0x1394   : > { %3877 = vmatpush3.bf16.xpose.msra.mxu0 %v2712_v36  ;;  %3878 = vmatprep.mubr.msk.bf16.mxu0 %vm4069_vm1, %v4068_v3 }
0x1395   : > { %v2597_v40 = vpack.c.bf16 %v2595_v62, %v2595_v62  ;;  %3888 = vmatprep.subr.bf16.mxu0 %v4068_v3 }
0x1397   : > { %3873 = vmatmul.mubr.msk.bf16.vlgmr.msra.gmra.mxu1 %vm839_vm3, %v2597_v40 }
0x1398   : > { %3883 = vmatpush3.bf16.xpose.msra.mxu1 %v2762_v41  ;;  %3884 = vmatprep.mubr.msk.bf16.mxu1 %vm4069_vm1, %v4068_v3 }
0x1399   : > { %3894 = vmatprep.subr.bf16.mxu1 %v4068_v3 }
0x139b   : > { %3879 = vmatmul.mubr.msk.bf16.vlgmr.msra.gmra.mxu0 %vm839_vm3, %v2705_v42 }
0x139c   : > { %3890 = vmatprep.mubr.msk.bf16.mxu0 %vm4069_vm1, %v4068_v3 }
0x139f   : > { %3885 = vmatmul.mubr.msk.bf16.vlgmr.msra.gmra.mxu1 %vm839_vm3, %v2755_v43 }
0x13a0   : > { %3896 = vmatprep.mubr.msk.bf16.mxu1 %vm4069_vm1, %v4068_v3 }
0x1453   : > { %v2640_v44 = vpop.f32.mrf.mxu0 }
0x1455   : > { %v3868_v46 = vpop.f32.mrf.mxu0 }
0x1457   : > { %v2643_v47 = vpop.f32.mrf.mxu0  ;;  %v2688_v49 = vpop.f32.mrf.mxu1 }
0x1459   : > { %v3869_v51 = vpop.f32.mrf.mxu0  ;;  %v3874_v57 = vpop.f32.mrf.mxu1 }
0x145b   : > { %v2691_v59 = vpop.f32.mrf.mxu1  ;;  %v2748_v60 = vpop.f32.mrf.mxu0 }
0x145c   : > { %v2804_v63 = vmul.f32 0.35355338, %v2748_v60  ;;  %v2943_v59 = vsub.s32 2, %v4461_v54 }
0x145d   : > { %v3875_v0 = vpop.f32.mrf.mxu1  ;;  %v3880_v1 = vpop.f32.mrf.mxu0 }
0x145e   : > { %v2806_v4 = vadd.f32 %v2804_v63, %v4540_v7  ;;  %v2944_v60 = vrot.slane %v4465_v56, %v2943_v59 }
0x145f   : > { %v2751_v8 = vpop.f32.mrf.mxu0  ;;  %v2798_v9 = vpop.f32.mrf.mxu1 }
0x1460   : > { %v2805_v10 = vmul.f32 0.35355338, %v2798_v9  ;;  %v2808_v11 = vsel %vm839_vm3, %v2806_v4, -inf }
0x1461   : > { %2809 = vmax.xlane.f32.xlu0 %v2808_v11  ;;  %v3881_v13 = vpop.f32.mrf.mxu0  ;;  %v3886_v22 = vpop.f32.mrf.mxu1 }
0x1462   : > { %v2807_v5 = vadd.f32 %v2805_v10, %v4546_v14 }
0x1463   : > { %v2801_v28 = vpop.f32.mrf.mxu1 }
0x1464   : > { %v2811_v15 = vsel %vm839_vm3, %v2807_v5, -inf }
0x1465   : > { %2812 = vmax.xlane.f32.xlu1 %v2811_v15  ;;  %v3887_v17 = vpop.f32.mrf.mxu1 }
0x1476   : > { %2832 = vrot.lane.b32.xlu1 %v4511_v45, %s4078_s4 }
0x147a   : > { %2462 = vrot.lane.b32.xlu1 %v4625_v48, %s4830_s22 }
0x147e   : > { %2464 = vrot.lane.b32.xlu1 %v4627_v53, %s4830_s22 }
0x1482   : > { %2698 = vrot.lane.b32.xlu1 %v2688_v49, %s4831_s26 }
0x14ea   : > { %v2810_v7 = vpop.xlane.xlu0 %2809 }
0x14eb   : > { %v2814_v6 = vsub.f32 %v2806_v4, %v2810_v7 }
0x14ed   : > { %v2816_v18 = vmul.f32 1.442695, %v2814_v6 }
0x14ee   : > { %v2813_v14 = vpop.xlane.xlu1 %2812 }
0x14ef   : > { %4038 = vpow2.f32 %v2816_v18  ;;  %v2815_v19 = vsub.f32 %v2807_v5, %v2813_v14 }
0x14f1   : > { %v2818_v20 = vmul.f32 1.442695, %v2815_v19 }
0x14f2   : > { %v2833_v12 = vpop.permute.xlu1 %2832 }
0x14f3   : > { %4040 = vpow2.f32 %v2818_v20  ;;  %v2838_v58 = vsel %vm968_vm4, %v2833_v12, 0  ;;  %v3973_v20 = vld [vmem:[%s4230_s25] sm:$0xff]   ;;  %v3974_v12 = vld [vmem:[%s4245_s1 + $0x18] sm:$0xff]  }
0x14f4   : > { %3889 = vmatpush3.bf16.msra.mxu0 %v2838_v58 }
0x14f5   : > { %3900 = vmatprep.subr.bf16.mxu0 %v4068_v3 }
0x14f6   : > { %v2463_v45 = vpop.permute.xlu1 %2462 }
0x14f7   : > { %2468 = vst.msk [vmem:[#allocation3] sm:$0xff] %vm1294_vm5, %v2463_v45 }
0x14fa   : > { %v2465_v48 = vpop.permute.xlu1 %2464 }
0x14fb   : > { %2469 = vst.msk [vmem:[#allocation3 + $0x8] sm:$0xff] %vm1294_vm5, %v2465_v48 }
0x14fc   : > { %v4039_v53 = vpop.eup %4038 }
0x14fd   : > { %v2820_v61 = vsel %vm839_vm3, %v4039_v53, 0.0 }
0x14fe   : > { %2821 = vadd.xlane.f32.xlu0 %v2820_v61  ;;  %v2699_v21 = vpop.permute.xlu1 %2698 }
0x14ff   : > { %2703 = vst.msk [vmem:[#allocation3 + $0x8] sm:$0xff] %vm1529_vm6, %v2699_v21 }
0x1500   : > { %v4041_v23 = vpop.eup %4040 }
0x1501   : > { %v2823_v24 = vsel %vm839_vm3, %v4041_v23, 0.0 }
0x1502   : > { %2824 = vadd.xlane.f32.xlu0 %v2823_v24 }
0x1518   : > { %2880 = vrot.lane.b32.xlu0 %v4515_v50, %s4078_s4 }
0x151c   : > { %2696 = vrot.lane.b32.xlu0 %v2640_v44, %s4831_s26  ;;  %s4836_s26 = sld [smem:[#allocation14_spill]] (!%p3569_p5) }
0x1587   : > { %v2822_v25 = vpop.xlane.xlu0 %2821 }
0x1588   : > { %4042 = vrcp.f32 %v2822_v25 }
0x158b   : > { %v2825_v26 = vpop.xlane.xlu0 %2824 }
0x158c   : > { %4044 = vrcp.f32 %v2825_v26 }
0x158f   : > { %v2881_v2 = vpop.permute.xlu0 %2880 }
0x1590   : > { %v2886_v27 = vsel %vm968_vm4, %v2881_v2, 0  ;;  %v3037_v2 = vsub.s32 7, %v4461_v54 }
0x1591   : > { %3895 = vmatpush3.bf16.msra.mxu1 %v2886_v27 }
0x1592   : > { %3908 = vmatprep.subr.bf16.mxu1 %v4068_v3 }
0x1593   : > { %v2697_v29 = vpop.permute.xlu0 %2696 }
0x1594   : > { %2702 = vst.msk [vmem:[#allocation3] sm:$0xff] %vm1529_vm6, %v2697_v29 }
0x1595   : > { %v4043_v30 = vpop.eup %4042 }
0x1596   : > { %v2828_v31 = vmul.f32 %v4043_v30, %v4039_v53 }
0x1598   : > { %v2830_v50 = vpack.c.bf16 %v2828_v31, %v2828_v31  ;;  %v3038_v31 = vrot.slane %v4465_v56, %v3037_v2 }
0x1599   : > { %v4045_v32 = vpop.eup %4044 }
0x159a   : > { %3891 = vmatmul.mubr.msk.bf16.vlgmr.msra.gmra.mxu0 %vm839_vm3, %v2830_v50  ;;  %v2829_v33 = vmul.f32 %v4045_v32, %v4041_v23  ;;  %v3031_v23 = vsub.s32 6, %v4461_v54 }
0x159b   : > { %3904 = vmatprep.mubr.msk.bf16.mxu0 %vm4069_vm1, %v4068_v3  ;;  %3901 = vmatpush3.bf16.msra.mxu0 %v3970_v16  ;;  %v3975_v16 = vld [vmem:[%s4245_s1 + $0x10] sm:$0xff]  }
0x159c   : > { %v2831_v34 = vpack.c.bf16 %v2829_v33, %v2829_v33  ;;  %3902 = vmatprep.subr.bf16.mxu0 %v4068_v3  ;;  %v3032_v26 = vrot.slane %v4465_v56, %v3031_v23 }
0x159e   : > { %3897 = vmatmul.mubr.msk.bf16.vlgmr.msra.gmra.mxu1 %vm839_vm3, %v2831_v34 }
0x159f   : > { %3912 = vmatprep.mubr.msk.bf16.mxu1 %vm4069_vm1, %v4068_v3  ;;  %3903 = vmatpush3.bf16.msra.mxu0 %v3971_v35  ;;  %v3976_v35 = vld [vmem:[%s4245_s1 + $0x8] sm:$0xff]  }
0x15a0   : > { %3916 = vmatprep.subr.bf16.mxu0 %v4068_v3 }
0x165a   : > { %v2874_v36 = vpop.f32.mrf.mxu0 }
0x165b   : > { %2930 = vrot.lane.b32.xlu0 %v2874_v36, %s4832_s7  ;;  %v3977_v36 = vld [vmem:[%s4245_s1] sm:$0xff]  }
0x165c   : > { %v3892_v62 = vpop.f32.mrf.mxu0 }
0x165d   : > { %v3560_v62 = vld [vmem:[%s4833_s30] ss:$0 sm:$0xff] }
0x165e   : > { %v2877_v37 = vpop.f32.mrf.mxu0  ;;  %v2922_v40 = vpop.f32.mrf.mxu1 }
0x165f   : > { %2932 = vrot.lane.b32.xlu1 %v2922_v40, %s4832_s7 }
0x1660   : > { %v3893_v41 = vpop.f32.mrf.mxu0  ;;  %v3898_v42 = vpop.f32.mrf.mxu1 }
0x1662   : > { %v2925_v43 = vpop.f32.mrf.mxu1 }
0x1664   : > { %v3899_v44 = vpop.f32.mrf.mxu1 }
0x16cd   : > { %v2931_v46 = vpop.permute.xlu0 %2930 }
0x16ce   : > { %2936 = vst.msk [vmem:[#allocation3] sm:$0xff] %vm1764_vm7, %v2931_v46 }
0x16d1   : > { %v2933_v47 = vpop.permute.xlu1 %2932 }
0x16d2   : > { %2937 = vst.msk [vmem:[#allocation3 + $0x8] sm:$0xff] %vm1764_vm7, %v2933_v47 }
0x16d5   : > { %v2938_v49 = vld [vmem:[#allocation3] sm:$0xff] }
0x16d9   : > { %v2939_v51 = vld [vmem:[#allocation3 + $0x8] sm:$0xff] }
0x16da   : > { %v2940_v57 = vpack.c.bf16 %v2939_v51, %v2938_v49 }
0x16dc   : > { %3905 = vmatmul.mubr.msk.bf16.vlgmr.msra.gmra.mxu0 %vm783_vm2, %v2940_v57 }
0x16dd   : > { %3924 = vmatprep.mubr.msk.bf16.mxu0 %vm4069_vm1, %v4068_v3  ;;  %3917 = vmatpush3.bf16.msra.mxu0 %v3974_v12  ;;  %v758_v12 = vld [vmem:[%s4240_s0 + $0x8] sm:$0x3] }
0x16de   : > { %3918 = vmatprep.subr.bf16.mxu0 %v4068_v3 }
0x16e1   : > { %3919 = vmatpush3.bf16.msra.mxu0 %v3975_v16 }
0x16e2   : > { %3920 = vmatprep.subr.bf16.mxu0 %v4068_v3 }
0x16e5   : > { %3921 = vmatpush3.bf16.msra.mxu0 %v3976_v35 }
0x16e6   : > { %3922 = vmatprep.subr.bf16.mxu0 %v4068_v3 }
0x16e9   : > { %3923 = vmatpush3.bf16.msra.mxu0 %v3977_v36 }
0x179c   : > { %v2994_v63 = vpop.f32.mrf.mxu0 }
0x179d   : > { %v2995_v0 = vadd.f32 %v2994_v63, %v2944_v60 }
0x179e   : > { %v3906_v1 = vpop.f32.mrf.mxu0 }
0x179f   : > { %v3001_v4 = vadd.f32 %v2995_v0, %v4497_v38 }
0x17a0   : > { %v2997_v8 = vpop.f32.mrf.mxu0 }
0x17a1   : > { %v2998_v9 = vadd.f32 %v2997_v8, %v2944_v60  ;;  %v3003_v10 = vsel %vm783_vm2, %v3001_v4, 0.0 }
0x17a2   : > { %3004 = vadd.xlane.f32.xlu0 %v3003_v10  ;;  %v3907_v11 = vpop.f32.mrf.mxu0 }
0x17a3   : > { %v3002_v13 = vadd.f32 %v2998_v9, %v4499_v39  ;;  %v3972_v39 = vld [vmem:[%s4230_s25 + $0x8] sm:$0xff]  }
0x17a4   : > { %3909 = vmatpush3.bf16.msra.mxu1 %v3972_v39 }
0x17a5   : > { %v3006_v22 = vsel %vm783_vm2, %v3002_v13, 0.0  ;;  %3910 = vmatprep.subr.bf16.mxu1 %v4068_v3  ;;  %v3193_v3 = vsub.s32 3, %v4461_v54 }
0x17a6   : > { %3007 = vadd.xlane.f32.xlu1 %v3006_v22 }
0x17a7   : > { %v3194_v51 = vrot.slane %v4465_v56, %v3193_v3 }
0x17a8   : > { %3911 = vmatpush3.bf16.msra.mxu1 %v3973_v20 }
0x182b   : > { %v3005_v5 = vpop.xlane.xlu0 %3004 }
0x182c   : > { %v3009_v28 = vmul.f32 0.03125, %v3005_v5 }
0x182e   : > { %v3011_v15 = vsub.f32 %v3001_v4, %v3009_v28 }
0x182f   : > { %v3008_v17 = vpop.xlane.xlu1 %3007 }
0x1830   : > { %v3010_v7 = vmul.f32 0.03125, %v3008_v17  ;;  %v3013_v38 = vmul.f32 %v3011_v15, %v3011_v15 }
0x1832   : > { %v3012_v6 = vsub.f32 %v3002_v13, %v3010_v7  ;;  %v3015_v18 = vsel %vm783_vm2, %v3013_v38, 0.0 }
0x1833   : > { %3016 = vadd.xlane.f32.xlu0 %v3015_v18 }
0x1834   : > { %v3014_v14 = vmul.f32 %v3012_v6, %v3012_v6 }
0x1836   : > { %v3018_v19 = vsel %vm783_vm2, %v3014_v14, 0.0 }
0x1837   : > { %3019 = vadd.xlane.f32.xlu0 %v3018_v19 }
0x18bc   : > { %v3017_v58 = vpop.xlane.xlu0 %3016 }
0x18bd   : > { %v3021_v45 = vmul.f32 0.03125, %v3017_v58  ;;  %v3226_v58 = vrot.slane %v758_v12, %v1772_v55 }
0x18bf   : > { %v3023_v48 = vadd.f32 1e-05, %v3021_v45 }
0x18c0   : > { %v3020_v53 = vpop.xlane.xlu0 %3019 }
0x18c1   : > { %4046 = vrsqrt.f32 %v3023_v48  ;;  %v3022_v61 = vmul.f32 0.03125, %v3020_v53  ;;  %v3232_v48 = vrot.slane %v758_v12, %v1878_v52 }
0x18c3   : > { %v3024_v21 = vadd.f32 1e-05, %v3022_v61 }
0x18c5   : > { %4048 = vrsqrt.f32 %v3024_v21 }
0x18ce   : > { %v4047_v24 = vpop.eup %4046 }
0x18cf   : > { %v3027_v25 = vmul.f32 %v4047_v24, %v3011_v15 }
0x18d1   : > { %v3033_v30 = vmul.f32 %v3032_v26, %v3027_v25 }
0x18d2   : > { %v4049_v27 = vpop.eup %4048 }
0x18d3   : > { %v3028_v29 = vmul.f32 %v4049_v27, %v3012_v6  ;;  %v3039_v32 = vadd.f32 %v3038_v31, %v3033_v30 }
0x18d5   : > { %v3034_v50 = vmul.f32 %v3032_v26, %v3028_v29 }
0x18d7   : > { %v3040_v33 = vadd.f32 %v3038_v31, %v3034_v50 }
0x18d9   : > { %v3045_v34 = vpack.c.bf16 %v3040_v33, %v3039_v32 }
0x18db   : > { %3913 = vmatmul.mubr.msk.bf16.vlgmr.msra.gmra.mxu1 %vm783_vm2, %v3045_v34 }
0x199b   : > { %v3102_v37 = vpop.f32.mrf.mxu1 }
0x199c   : > { %v3103_v41 = vadd.f32 %v3560_v62, %v3102_v37 }
0x199d   : > { %v3914_v40 = vpop.f32.mrf.mxu1 }
0x199e   : > { %v3109_v46 = vmax.f32 %v3103_v41, 0.0 }
0x199f   : > { %v3105_v42 = vpop.f32.mrf.mxu1 }
0x19a0   : > { %v3106_v43 = vadd.f32 %v3560_v62, %v3105_v42 }
0x19a1   : > { %v3915_v44 = vpop.f32.mrf.mxu1 }
0x19a2   : > { %v3110_v47 = vmax.f32 %v3106_v43, 0.0 }
0x19a4   : > { %v3119_v49 = vpack.c.bf16 %v3110_v47, %v3109_v46 }
0x19a6   : > { %3925 = vmatmul.mubr.msk.bf16.vlgmr.msra.gmra.mxu0 %vm3144_vm8, %v3119_v49 }
0x1a66   : > { %v3182_v57 = vpop.f32.mrf.mxu0 }
0x1a67   : > { %v3189_v59 = vadd.f32 %v3182_v57, %v3039_v32 }
0x1a68   : > { %v3926_v60 = vpop.f32.mrf.mxu0 }
0x1a69   : > { %v3195_v63 = vadd.f32 %v3194_v51, %v3189_v59 }
0x1a6a   : > { %v3185_v0 = vpop.f32.mrf.mxu0 }
0x1a6b   : > { %v3190_v1 = vadd.f32 %v3185_v0, %v3040_v33  ;;  %v3197_v4 = vsel %vm783_vm2, %v3195_v63, 0.0 }
0x1a6c   : > { %3198 = vadd.xlane.f32.xlu1 %v3197_v4  ;;  %v3927_v8 = vpop.f32.mrf.mxu0 }
0x1a6d   : > { %v3196_v9 = vadd.f32 %v3194_v51, %v3190_v1 }
0x1a6f   : > { %v3200_v10 = vsel %vm783_vm2, %v3196_v9, 0.0 }
0x1a70   : > { %3201 = vadd.xlane.f32.xlu0 %v3200_v10 }
0x1af5   : > { %v3199_v11 = vpop.xlane.xlu1 %3198 }
0x1af6   : > { %v3203_v13 = vmul.f32 0.03125, %v3199_v11 }
0x1af8   : > { %v3205_v22 = vsub.f32 %v3195_v63, %v3203_v13 }
0x1af9   : > { %v3202_v5 = vpop.xlane.xlu0 %3201 }
0x1afa   : > { %v3204_v28 = vmul.f32 0.03125, %v3202_v5  ;;  %v3207_v56 = vmul.f32 %v3205_v22, %v3205_v22 }
0x1afc   : > { %v3206_v15 = vsub.f32 %v3196_v9, %v3204_v28  ;;  %v3209_v17 = vsel %vm783_vm2, %v3207_v56, 0.0 }
0x1afd   : > { %3210 = vadd.xlane.f32.xlu1 %v3209_v17 }
0x1afe   : > { %v3208_v7 = vmul.f32 %v3206_v15, %v3206_v15 }
0x1b00   : > { %v3212_v38 = vsel %vm783_vm2, %v3208_v7, 0.0 }
0x1b01   : > { %3213 = vadd.xlane.f32.xlu0 %v3212_v38 }
0x1b86   : > { %v3211_v6 = vpop.xlane.xlu1 %3210 }
0x1b87   : > { %v3215_v18 = vmul.f32 0.03125, %v3211_v6 }
0x1b89   : > { %v3217_v14 = vadd.f32 1e-05, %v3215_v18 }
0x1b8a   : > { %v3214_v19 = vpop.xlane.xlu0 %3213 }
0x1b8b   : > { %4050 = vrsqrt.f32 %v3217_v14  ;;  %v3216_v39 = vmul.f32 0.03125, %v3214_v19 }
0x1b8d   : > { %v3218_v20 = vadd.f32 1e-05, %v3216_v39 }
0x1b8f   : > { %4052 = vrsqrt.f32 %v3218_v20 }
0x1b98   : > { %v4051_v45 = vpop.eup %4050 }
0x1b99   : > { %v3221_v53 = vmul.f32 %v4051_v45, %v3205_v22 }
0x1b9b   : > { %v3227_v61 = vmul.f32 %v3226_v58, %v3221_v53 }
0x1b9c   : > { %v4053_v21 = vpop.eup %4052 }
0x1b9d   : > { %v3233_v23 = vadd.f32 %v3232_v48, %v3227_v61  ;;  %v3222_v24 = vmul.f32 %v4053_v21, %v3206_v15 }
0x1b9f   : > { %3235 = vst.msk [vmem:[#allocation2] sm:$0xff] %vm783_vm2, %v3233_v23  ;;  %v3228_v25 = vmul.f32 %v3226_v58, %v3222_v24  ;;  %3240 = sbr.rel (%p3569_p5) target bundleno = 7590 (0x1da6), region = 100 }
0x1ba1   : > { %v3234_v26 = vadd.f32 %v3232_v48, %v3228_v25 }
0x1ba3   : > { %3236 = vst.msk [vmem:[#allocation2 + $0x8] sm:$0xff] %vm783_vm2, %v3234_v26 }
0x1ba4   : > { %v3243_v55 = vsel %vm783_vm2, %v3233_v23, 0.0  ;;  %v3246_v54 = vsel %vm783_vm2, %v3234_v26, 0.0  ;;  %v4054_v16 = vld [vmem:[%s4795_s16 + $0x8] sm:$0xff]   ;;  %v4084_v35 = vmov 0.0   ;;  %vm4085_vm9 = vmmov 0   ;;  %v4055_v36 = vld [vmem:[%s4795_s16] sm:$0xff]  }
0x1ba5   : > { %3244 = vadd.xlane.f32.xlu0 %v3243_v55  ;;  %3928 = vmatprep.subr.bf16.mxu0 %v4084_v35  ;;  %v3570_v47 = vld [vmem:[%s4834_s21] ss:$0 sm:$0xff]  ;;  %v3571_v57 = vld [vmem:[%s4834_s21 + $0x1] ss:$0 sm:$0xff] }
0x1ba6   : > { %3932 = vmatprep.mubr.msk.bf16.mxu0 %vm4085_vm9, %v4084_v35  ;;  %3929 = vmatpush3.bf16.msra.mxu0 %v4054_v16  ;;  %v3572_v1 = vld [vmem:[%s4835_s24] ss:$0 sm:$0xff] }
0x1ba7   : > { %3930 = vmatprep.subr.bf16.mxu0 %v4084_v35 }
0x1ba9   : > { %3247 = vadd.xlane.f32.xlu0 %v3246_v54 }
0x1baa   : > { %3931 = vmatpush3.bf16.msra.mxu0 %v4055_v36 }
0x1c2e   : > { %v3245_v52 = vpop.xlane.xlu0 %3244 }
0x1c2f   : > { %v3249_v2 = vmul.f32 0.03125, %v3245_v52 }
0x1c31   : > { %v3251_v27 = vsub.f32 %v3233_v23, %v3249_v2 }
0x1c32   : > { %v3248_v29 = vpop.xlane.xlu0 %3247 }
0x1c33   : > { %v3250_v30 = vmul.f32 0.03125, %v3248_v29  ;;  %v3253_v31 = vmul.f32 %v3251_v27, %v3251_v27 }
0x1c35   : > { %v3252_v50 = vsub.f32 %v3234_v26, %v3250_v30  ;;  %v3255_v32 = vsel %vm783_vm2, %v3253_v31, 0.0 }
0x1c36   : > { %3256 = vadd.xlane.f32.xlu1 %v3255_v32 }
0x1c37   : > { %v3254_v33 = vmul.f32 %v3252_v50, %v3252_v50 }
0x1c39   : > { %v3258_v34 = vsel %vm783_vm2, %v3254_v33, 0.0 }
0x1c3a   : > { %3259 = vadd.xlane.f32.xlu1 %v3258_v34 }
0x1cbf   : > { %v3257_v62 = vpop.xlane.xlu1 %3256 }
0x1cc0   : > { %v3261_v37 = vmul.f32 0.03125, %v3257_v62 }
0x1cc2   : > { %v3263_v40 = vadd.f32 1e-05, %v3261_v37 }
0x1cc3   : > { %v3260_v41 = vpop.xlane.xlu1 %3259 }
0x1cc4   : > { %4056 = vrsqrt.f32 %v3263_v40  ;;  %v3262_v42 = vmul.f32 0.03125, %v3260_v41 }
0x1cc6   : > { %v3264_v43 = vadd.f32 1e-05, %v3262_v42 }
0x1cc8   : > { %4058 = vrsqrt.f32 %v3264_v43 }
0x1cd1   : > { %v4057_v44 = vpop.eup %4056 }
0x1cd2   : > { %v3267_v46 = vmul.f32 %v4057_v44, %v3251_v27 }
0x1cd4   : > { %v3273_v51 = vmul.f32 %v3570_v47, %v3267_v46 }
0x1cd5   : > { %v4059_v49 = vpop.eup %4058 }
0x1cd6   : > { %v3268_v3 = vmul.f32 %v4059_v49, %v3252_v50  ;;  %v3279_v60 = vadd.f32 %v3571_v57, %v3273_v51 }
0x1cd8   : > { %v3274_v59 = vmul.f32 %v3570_v47, %v3268_v3 }
0x1cda   : > { %v3280_v63 = vadd.f32 %v3571_v57, %v3274_v59 }
0x1cdc   : > { %v3285_v0 = vpack.c.bf16 %v3280_v63, %v3279_v60 }
0x1cde   : > { %3933 = vmatmul.mubr.msk.bf16.vlgmr.msra.gmra.mxu0 %vm783_vm2, %v3285_v0 }
0x1d9e   : > { %v3342_v4 = vpop.f32.mrf.mxu0 }
0x1d9f   : > { %v3343_v8 = vadd.f32 %v3572_v1, %v3342_v4 }
0x1da0   : > { %v3934_v9 = vpop.f32.mrf.mxu0 }
0x1da1   : > { %3349 = vst [vmem:[%s4836_s26] sm:$0xff] %v3343_v8 }
0x1da2   : > { %v3345_v10 = vpop.f32.mrf.mxu0 }
0x1da3   : > { %v3346_v11 = vadd.f32 %v3572_v1, %v3345_v10 }
0x1da4   : > { %v3935_v13 = vpop.f32.mrf.mxu0 }
0x1da5   : > { %3350 = vst [vmem:[%s4836_s26 + $0x8] sm:$0xff] %v3346_v11 }
0x1da6 PF: > { %s4837_s25 = sld [smem:[#allocation4_spill]] }
0x1dac   : > { %s28_s27 = sadd.s32 1, %s4837_s25  }
0x1dad   : > { %p25_p6 = scmp.ge.s32.totalorder %s28_s27, 4  }
0x1daf   :  { %27 = sbr.rel (!%p25_p6) target bundleno = 11 (0xb), region = 156 }

</bundles_post_ra>
